<compile_context>
chip_gen: v7x
topology: tpu7x:2x2x1
jax: 0.10.0
libtpu: 0.0.40
codegen_flags: <defaults>
</compile_context>

<pallas_src>
import functools

import jax
import jax.numpy as jnp
import numpy as np
from jax import lax
from jax.experimental import pallas as pl
from jax.experimental.pallas import tpu as pltpu

RRELU_EVAL_SLOPE = (1.0 / 8.0 + 1.0 / 3.0) / 2.0  # torch.rrelu defaults, eval mode


def _round_up(x, m):
    return ((x + m - 1) // m) * m


def _pick_b_tile(B, S, per_row_bytes):
    """Batch elements fused into one grid step: as big as the VMEM budget allows."""
    vmem_budget = 16 * 1024 * 1024                   # per-step working-set budget
    rows_by_vmem = max(8, vmem_budget // max(per_row_bytes, 1))
    rows = min(2048, rows_by_vmem)                   # target ~2048 matmul rows / step
    bt = max(1, rows // max(S, 1))
    bt = max(8, (bt // 8) * 8)                       # multiple of 8 -> sublane-aligned
    bt = min(bt, _round_up(B, 8))                    # never exceed the (padded) batch
    # TODO(synk): on v7x (2 TCs) prefer an even number of grid steps when the batch is
    # large enough to split; single-TC chips (v5e/v6e) want one big step (done here).
    return bt


def _make_kernel(num_convs, kernel_size, b_tile, seq_len, pad, in_kernel_gather):
    M = b_tile * seq_len

    def kernel(*refs):
        if in_kernel_gather:
            ids_ref, emb_ref = refs[0], refs[1]
            base = 2
        else:
            x_in_ref = refs[0]
            base = 1
        conv_refs = refs[base: base + 2 * num_convs]
        (intent_w_ref, intent_b_ref,
         slot_w_ref, slot_b_ref) = refs[base + 2 * num_convs: base + 2 * num_convs + 4]
        intent_out_ref, slot_out_ref = refs[base + 2 * num_convs + 4:]

        if in_kernel_gather:
            # Embedding lookup on the MXU: one-hot(ids) @ VMEM-resident bf16 table.
            ids = ids_ref[...]                                   # (M, 1) int32
            vp = emb_ref.shape[0]
            onehot = lax.broadcasted_iota(jnp.int32, (M, vp), 1) == ids
            x = jnp.dot(onehot.astype(jnp.bfloat16), emb_ref[...],
                        preferred_element_type=jnp.float32)      # (M, E) f32
        else:
            x = x_in_ref[...].reshape(M, -1).astype(jnp.float32)  # (M, E) f32

        # Row-validity masks per non-zero tap offset (hoisted out of the layer loop);
        # a row is invalid when the tap would cross a sequence (or tile) boundary.
        seq_idx = lax.broadcasted_iota(jnp.int32, (M, 1), 0) % seq_len
        masks = {}
        for dk in range(kernel_size):
            d = dk - pad
            if d != 0:
                masks[d] = jnp.logical_and(seq_idx + d >= 0, seq_idx + d < seq_len)

        # Stacked Conv1d ("same" padding) + rrelu(eval): one im2col matmul per layer.
        for li in range(num_convs):
            w = conv_refs[2 * li][...]          # (K*Cin, Cout) bf16
            b = conv_refs[2 * li + 1][...]      # (1, Cout)     f32
            cols = []
            for dk in range(kernel_size):
                d = dk - pad
                if d == 0:
                    cols.append(x)
                else:
                    shifted = pltpu.roll(x, shift=(-d) % M, axis=0)   # XLU slot
                    cols.append(jnp.where(masks[d], shifted, 0.0))
            im2col = jnp.concatenate(cols, axis=1).astype(jnp.bfloat16)  # (M, K*Cin)
            acc = jnp.dot(im2col, w, preferred_element_type=jnp.float32) + b
            x = jnp.where(acc >= 0, acc, acc * RRELU_EVAL_SLOPE)     # rrelu, eval mode
            # TODO(synk): on v6e/v7x keep x in bf16 between layers (native bf16 VPU);
            # kept f32 so the same kernel stays efficient on v5e (no bf16 VALU).

        # Intent head: max over sequence per batch element, then linear (128-lane pad).
        pooled = jnp.max(x.reshape(b_tile, seq_len, -1), axis=1)     # (B_TILE, C)
        intent = jnp.dot(pooled.astype(jnp.bfloat16), intent_w_ref[...],
                         preferred_element_type=jnp.float32) + intent_b_ref[...]
        intent_out_ref[...] = intent.astype(intent_out_ref.dtype)    # (B_TILE, I_pad)

        # Slot head: per-token linear (128-lane padded output -> unmasked stores).
        slot = jnp.dot(x.astype(jnp.bfloat16), slot_w_ref[...],
                       preferred_element_type=jnp.float32) + slot_b_ref[...]
        slot_out_ref[...] = slot.reshape(
            b_tile, seq_len, -1).astype(slot_out_ref.dtype)          # (B_TILE,S,Sl_pad)

    return kernel


def cnn_joint_forward(query, params, *, kernel_size, b_tile=None):
    """query: (B, S) int32 token ids. Returns (intent_pred (B,I), slot_pred (B,Sl,S))."""
    assert kernel_size % 2 == 1, (
        "only odd kernel_size reproduces PyTorch's pad=(K-1)//2 'same' conv")

    emb_table = params["embedding"]                 # (vocab, E) f32
    conv_ws = params["conv_ws"]                     # list of (K, Cin, Cout) f32
    conv_bs = params["conv_bs"]                     # list of (1, Cout) f32
    intent_w, intent_b = params["intent_w"], params["intent_b"]   # (C,I), (1,I)
    slot_w, slot_b = params["slot_w"], params["slot_b"]           # (C,Sl), (1,Sl)

    B, S = query.shape
    vocab, E = emb_table.shape
    pad = (kernel_size - 1) // 2
    num_convs = len(conv_ws)
    intent_dim = intent_w.shape[1]
    slot_dim = slot_w.shape[1]
    c_last = slot_w.shape[0]

    # Lane-dense (multiple-of-128) head output widths.
    i_pad = _round_up(intent_dim, 128)
    sl_pad = _round_up(slot_dim, 128)

    # In-kernel embedding lookup only when the padded table comfortably fits VMEM.
    vocab_pad = _round_up(vocab, 128)
    in_kernel_gather = (vocab_pad * E * 2 <= 4 * 1024 * 1024) and (vocab_pad <= 4096)

    # Per-row VMEM working-set estimate used to size the batch tile.
    max_c = max([E] + [int(w.shape[2]) for w in conv_ws])
    per_row_bytes = (
        4 * E
        + (2 * vocab_pad if in_kernel_gather else 4 * E)      # one-hot / input block
        + (4 + 2) * kernel_size * max_c                       # f32 cols + bf16 im2col
        + 8 * max_c                                           # conv acc + activation
        + 8 * sl_pad                                          # slot out, double-buffered
    ) * 2                                                     # safety factor

    if b_tile is None:
        b_tile = _pick_b_tile(B, S, per_row_bytes)
    grid_b = -(-B // b_tile)
    B_pad = grid_b * b_tile
    if B_pad != B:
        query = jnp.concatenate(
            [query, jnp.zeros((B_pad - B, S), query.dtype)], axis=0)

    kernel = _make_kernel(num_convs, kernel_size, b_tile, S, pad, in_kernel_gather)

    inputs, in_specs = [], []
    if in_kernel_gather:
        ids_flat = query.reshape(B_pad * S, 1).astype(jnp.int32)
        table = jnp.zeros((vocab_pad, E), jnp.bfloat16).at[:vocab].set(
            emb_table.astype(jnp.bfloat16))
        inputs += [ids_flat, table]
        in_specs += [
            pl.BlockSpec((b_tile * S, 1), lambda b: (b, 0)),
            pl.BlockSpec((vocab_pad, E), lambda b: (0, 0)),   # constant index -> 1 DMA
        ]
    else:
        # TODO(synk): large-vocab fallback keeps the gather in XLA (extra HBM pass of
        # the (B,S,E) activation); an in-kernel DMA row-gather would remove it.
        emb = jnp.take(emb_table, query, axis=0).astype(jnp.bfloat16)   # (B_pad, S, E)
        inputs.append(emb)
        in_specs.append(pl.BlockSpec((b_tile, S, E), lambda b: (b, 0, 0)))

    for w, bb in zip(conv_ws, conv_bs):
        K, cin, cout = w.shape
        w2 = w.reshape(K * cin, cout).astype(jnp.bfloat16)    # im2col weight layout
        inputs += [w2, bb]
        in_specs += [pl.BlockSpec(w2.shape, lambda b: (0, 0)),
                     pl.BlockSpec(bb.shape, lambda b: (0, 0))]

    iw = jnp.zeros((c_last, i_pad), jnp.bfloat16).at[:, :intent_dim].set(
        intent_w.astype(jnp.bfloat16))
    ib = jnp.zeros((1, i_pad), jnp.float32).at[:, :intent_dim].set(intent_b)
    sw = jnp.zeros((c_last, sl_pad), jnp.bfloat16).at[:, :slot_dim].set(
        slot_w.astype(jnp.bfloat16))
    sb = jnp.zeros((1, sl_pad), jnp.float32).at[:, :slot_dim].set(slot_b)
    inputs += [iw, ib, sw, sb]
    in_specs += [pl.BlockSpec(iw.shape, lambda b: (0, 0)),
                 pl.BlockSpec(ib.shape, lambda b: (0, 0)),
                 pl.BlockSpec(sw.shape, lambda b: (0, 0)),
                 pl.BlockSpec(sb.shape, lambda b: (0, 0))]
    # TODO(synk): mark constant weight BlockSpecs pipeline_mode=pl.Buffered(1) once
    # filter sizes grow enough for double-buffered weight VMEM to matter (v7x 64 MiB).

    out_shape = (
        jax.ShapeDtypeStruct((B_pad, i_pad), jnp.float32),
        jax.ShapeDtypeStruct((B_pad, S, sl_pad), jnp.float32),
    )
    out_specs = (
        pl.BlockSpec((b_tile, i_pad), lambda b: (b, 0)),
        pl.BlockSpec((b_tile, S, sl_pad), lambda b: (b, 0, 0)),
    )

    intent_full, slot_full = pl.pallas_call(
        kernel,
        grid=(grid_b,),
        in_specs=in_specs,
        out_specs=out_specs,
        out_shape=out_shape,
        compiler_params=pltpu.CompilerParams(
            dimension_semantics=("parallel",),
            vmem_limit_bytes=48 * 1024 * 1024),
    )(*inputs)

    intent_pred = intent_full[:B, :intent_dim]                    # (B, intent_dim)
    # Match the PyTorch module's (B, slot_dim, S) layout; the transpose acts on the
    # small sliced tensor only (lane-padding already removed).
    slot_pred = jnp.transpose(slot_full[:B, :, :slot_dim], (0, 2, 1))
    return intent_pred, slot_pred


def _reference_forward(query, params, *, kernel_size):
    """Pure-JAX f32 reference (torch eval semantics) for correctness checking."""
    pad = (kernel_size - 1) // 2
    x = jnp.take(params["embedding"], query, axis=0)              # (B, S, E)
    S = x.shape[1]
    for w, b in zip(params["conv_ws"], params["conv_bs"]):        # w: (K, Cin, Cout)
        xp = jnp.pad(x, ((0, 0), (pad, pad), (0, 0)))
        acc = jnp.zeros(x.shape[:2] + (w.shape[2],), jnp.float32) + b[None]
        for dk in range(kernel_size):
            acc = acc + jnp.einsum("bsc,co->bso", xp[:, dk:dk + S, :], w[dk])
        x = jnp.where(acc >= 0, acc, acc * RRELU_EVAL_SLOPE)
    pooled = jnp.max(x, axis=1)
    intent = pooled @ params["intent_w"] + params["intent_b"]
    slot = jnp.einsum("bsc,co->bso", x, params["slot_w"]) + params["slot_b"][None]
    return intent, jnp.transpose(slot, (0, 2, 1))


def init_params(key, *, input_dim, embedding_dim, intent_dim, slot_dim,
                filter_sizes, kernel_size):
    keys = jax.random.split(key, 3 + 2 * len(filter_sizes) + 4)
    ki = iter(keys)
    params = {}
    params["embedding"] = jax.random.normal(
        next(ki), (input_dim, embedding_dim), jnp.float32) * 0.1

    conv_ws, conv_bs = [], []
    cin = embedding_dim
    for cout in filter_sizes:
        fan_in = cin * kernel_size
        bound = 1.0 / float(np.sqrt(fan_in))
        # stored as (K, Cin, Cout) for lane-friendly im2col matmuls in the kernel
        conv_ws.append(jax.random.uniform(
            next(ki), (kernel_size, cin, cout), jnp.float32, -bound, bound))
        conv_bs.append(jax.random.uniform(
            next(ki), (1, cout), jnp.float32, -bound, bound))
        cin = cout
    params["conv_ws"] = conv_ws
    params["conv_bs"] = conv_bs

    c_last = filter_sizes[-1]
    bound = 1.0 / float(np.sqrt(c_last))
    params["intent_w"] = jax.random.uniform(
        next(ki), (c_last, intent_dim), jnp.float32, -bound, bound)
    params["intent_b"] = jax.random.uniform(
        next(ki), (1, intent_dim), jnp.float32, -bound, bound)
    params["slot_w"] = jax.random.uniform(
        next(ki), (c_last, slot_dim), jnp.float32, -bound, bound)
    params["slot_b"] = jax.random.uniform(
        next(ki), (1, slot_dim), jnp.float32, -bound, bound)
    return params


if __name__ == "__main__":
    # Small shapes consistent with the module (exercises batch padding + in-kernel gather).
    B, S = 18, 8
    input_dim = 50          # vocab
    embedding_dim = 32
    intent_dim = 8
    slot_dim = 8
    filter_sizes = (32, 48)
    kernel_size = 3

    key = jax.random.PRNGKey(0)
    pkey, qkey = jax.random.split(key)
    params = init_params(
        pkey, input_dim=input_dim, embedding_dim=embedding_dim,
        intent_dim=intent_dim, slot_dim=slot_dim,
        filter_sizes=filter_sizes, kernel_size=kernel_size)

    query = jax.random.randint(qkey, (B, S), 0, input_dim, dtype=jnp.int32)

    fwd = jax.jit(functools.partial(cnn_joint_forward, kernel_size=kernel_size))
    intent_pred, slot_pred = fwd(query, params)
    jax.block_until_ready((intent_pred, slot_pred))

    assert intent_pred.shape == (B, intent_dim)
    assert slot_pred.shape == (B, slot_dim, S)

    # Correctness vs pure-JAX f32 reference (kernel matmuls are bf16 -> loose tol).
    ref_intent, ref_slot = _reference_forward(query, params, kernel_size=kernel_size)
    np.testing.assert_allclose(np.asarray(intent_pred), np.asarray(ref_intent),
                               rtol=2e-2, atol=2e-2)
    np.testing.assert_allclose(np.asarray(slot_pred), np.asarray(ref_slot),
                               rtol=2e-2, atol=2e-2)

    print("KERNEL_OK")
</pallas_src>

<mosaic_0001>
module attributes {stable_mosaic.version = 11 : i64} {
  func.func @kernel(%arg0: i32, %arg1: memref<192x1xi32, #tpu.memory_space<vmem>>, %arg2: memref<128x32xbf16, #tpu.memory_space<vmem>>, %arg3: memref<96x32xbf16, #tpu.memory_space<vmem>>, %arg4: memref<1x32xf32, #tpu.memory_space<vmem>>, %arg5: memref<96x48xbf16, #tpu.memory_space<vmem>>, %arg6: memref<1x48xf32, #tpu.memory_space<vmem>>, %arg7: memref<48x128xbf16, #tpu.memory_space<vmem>>, %arg8: memref<1x128xf32, #tpu.memory_space<vmem>>, %arg9: memref<48x128xbf16, #tpu.memory_space<vmem>>, %arg10: memref<1x128xf32, #tpu.memory_space<vmem>>, %arg11: memref<24x128xf32, #tpu.memory_space<vmem>>, %arg12: memref<24x8x128xf32, #tpu.memory_space<vmem>>) attributes {dimension_semantics = [#tpu.dimension_semantics<parallel>], iteration_bounds = array<i64: 1>, scalar_prefetch = 0 : i64, scratch_operands = 0 : i64, tpu.core_type = #tpu.core_type<tc>, window_params = [{transform_indices = @transform_0, window_bounds = array<i64: 192, 1>}, {pipeline_mode = #tpu.pipeline_mode<synchronous>, transform_indices = @transform_1, window_bounds = array<i64: 128, 32>}, {pipeline_mode = #tpu.pipeline_mode<synchronous>, transform_indices = @transform_2, window_bounds = array<i64: 96, 32>}, {pipeline_mode = #tpu.pipeline_mode<synchronous>, transform_indices = @transform_3, window_bounds = array<i64: 1, 32>}, {pipeline_mode = #tpu.pipeline_mode<synchronous>, transform_indices = @transform_4, window_bounds = array<i64: 96, 48>}, {pipeline_mode = #tpu.pipeline_mode<synchronous>, transform_indices = @transform_5, window_bounds = array<i64: 1, 48>}, {pipeline_mode = #tpu.pipeline_mode<synchronous>, transform_indices = @transform_6, window_bounds = array<i64: 48, 128>}, {pipeline_mode = #tpu.pipeline_mode<synchronous>, transform_indices = @transform_7, window_bounds = array<i64: 1, 128>}, {pipeline_mode = #tpu.pipeline_mode<synchronous>, transform_indices = @transform_8, window_bounds = array<i64: 48, 128>}, {pipeline_mode = #tpu.pipeline_mode<synchronous>, transform_indices = @transform_9, window_bounds = array<i64: 1, 128>}, {transform_indices = @transform_10, window_bounds = array<i64: 24, 128>}, {transform_indices = @transform_11, window_bounds = array<i64: 24, 8, 128>}]} {
    %c0 = arith.constant 0 : index
    %c0_0 = arith.constant 0 : index
    %0 = vector.load %arg1[%c0, %c0_0] : memref<192x1xi32, #tpu.memory_space<vmem>>, vector<192x1xi32>
    %1 = tpu.iota {dimensions = array<i32: 1>} : vector<192x128xi32>
    %2 = vector.broadcast %0 : vector<192x1xi32> to vector<192x128xi32>
    %3 = arith.cmpi eq, %1, %2 : vector<192x128xi32>
    %4 = arith.extui %3 : vector<192x128xi1> to vector<192x128xi32>
    %5 = arith.sitofp %4 : vector<192x128xi32> to vector<192x128xf32>
    %6 = arith.truncf %5 : vector<192x128xf32> to vector<192x128xbf16>
    %c0_1 = arith.constant 0 : index
    %c0_2 = arith.constant 0 : index
    %7 = vector.load %arg2[%c0_1, %c0_2] : memref<128x32xbf16, #tpu.memory_space<vmem>>, vector<128x32xbf16>
    %cst = arith.constant dense<0.000000e+00> : vector<192x32xf32>
    %8 = tpu.matmul %6, %7, %cst {dimension_numbers = #tpu.dot_dimension_numbers<[1], [0], [0], [1], [0, 0, 1, 1], [], []>} : vector<192x128xbf16>, vector<128x32xbf16>, vector<192x32xf32> -> vector<192x32xf32>
    %9 = tpu.iota {dimensions = array<i32: 0>} : vector<192x1xi32>
    %c8_i32 = arith.constant 8 : i32
    %c0_i32 = arith.constant 0 : i32
    %10 = arith.cmpi eq, %c8_i32, %c0_i32 : i32
    %c1_i32 = arith.constant 1 : i32
    %11 = arith.select %10, %c1_i32, %c8_i32 : i32
    %12 = vector.broadcast %11 : i32 to vector<192x1xi32>
    %13 = arith.remsi %9, %12 : vector<192x1xi32>
    %c0_i32_3 = arith.constant 0 : i32
    %14 = vector.broadcast %c0_i32_3 : i32 to vector<192x1xi32>
    %15 = arith.cmpi ne, %13, %14 : vector<192x1xi32>
    %c0_i32_4 = arith.constant 0 : i32
    %16 = vector.broadcast %c0_i32_4 : i32 to vector<192x1xi32>
    %17 = arith.cmpi slt, %13, %16 : vector<192x1xi32>
    %c0_i32_5 = arith.constant 0 : i32
    %18 = arith.cmpi slt, %11, %c0_i32_5 : i32
    %19 = vector.broadcast %18 : i1 to vector<192x1xi1>
    %20 = vector.broadcast %19 : vector<192x1xi1> to vector<192x1xi1>
    %21 = arith.xori %17, %20 : vector<192x1xi1>
    %22 = arith.andi %21, %15 : vector<192x1xi1>
    %23 = vector.broadcast %11 : i32 to vector<192x1xi32>
    %24 = arith.addi %13, %23 : vector<192x1xi32>
    %25 = arith.select %22, %24, %13 : vector<192x1xi1>, vector<192x1xi32>
    %c-1_i32 = arith.constant -1 : i32
    %26 = vector.broadcast %c-1_i32 : i32 to vector<192x1xi32>
    %27 = arith.addi %25, %26 : vector<192x1xi32>
    %c0_i32_6 = arith.constant 0 : i32
    %28 = vector.broadcast %c0_i32_6 : i32 to vector<192x1xi32>
    %29 = arith.cmpi sge, %27, %28 : vector<192x1xi32>
    %c-1_i32_7 = arith.constant -1 : i32
    %30 = vector.broadcast %c-1_i32_7 : i32 to vector<192x1xi32>
    %31 = arith.addi %25, %30 : vector<192x1xi32>
    %c8_i32_8 = arith.constant 8 : i32
    %32 = vector.broadcast %c8_i32_8 : i32 to vector<192x1xi32>
    %33 = arith.cmpi slt, %31, %32 : vector<192x1xi32>
    %34 = arith.andi %29, %33 : vector<192x1xi1>
    %c1_i32_9 = arith.constant 1 : i32
    %35 = vector.broadcast %c1_i32_9 : i32 to vector<192x1xi32>
    %36 = arith.addi %25, %35 : vector<192x1xi32>
    %c0_i32_10 = arith.constant 0 : i32
    %37 = vector.broadcast %c0_i32_10 : i32 to vector<192x1xi32>
    %38 = arith.cmpi sge, %36, %37 : vector<192x1xi32>
    %c1_i32_11 = arith.constant 1 : i32
    %39 = vector.broadcast %c1_i32_11 : i32 to vector<192x1xi32>
    %40 = arith.addi %25, %39 : vector<192x1xi32>
    %c8_i32_12 = arith.constant 8 : i32
    %41 = vector.broadcast %c8_i32_12 : i32 to vector<192x1xi32>
    %42 = arith.cmpi slt, %40, %41 : vector<192x1xi32>
    %43 = arith.andi %38, %42 : vector<192x1xi1>
    %c0_13 = arith.constant 0 : index
    %c0_14 = arith.constant 0 : index
    %44 = vector.load %arg3[%c0_13, %c0_14] : memref<96x32xbf16, #tpu.memory_space<vmem>>, vector<96x32xbf16>
    %c0_15 = arith.constant 0 : index
    %c0_16 = arith.constant 0 : index
    %45 = vector.load %arg4[%c0_15, %c0_16] : memref<1x32xf32, #tpu.memory_space<vmem>>, vector<1x32xf32>
    %c1_i32_17 = arith.constant 1 : i32
    %46 = tpu.dynamic_rotate %8 by %c1_i32_17 dim 0 : vector<192x32xf32>, i32 -> vector<192x32xf32>
    %cst_18 = arith.constant 0.000000e+00 : f32
    %47 = vector.shape_cast %34 : vector<192x1xi1> to vector<192x1xi1>
    %48 = vector.broadcast %47 : vector<192x1xi1> to vector<192x32xi1>
    %49 = vector.broadcast %cst_18 : f32 to vector<192x32xf32>
    %50 = arith.select %48, %46, %49 : vector<192x32xi1>, vector<192x32xf32>
    %c191_i32 = arith.constant 191 : i32
    %51 = tpu.dynamic_rotate %8 by %c191_i32 dim 0 : vector<192x32xf32>, i32 -> vector<192x32xf32>
    %cst_19 = arith.constant 0.000000e+00 : f32
    %52 = vector.shape_cast %43 : vector<192x1xi1> to vector<192x1xi1>
    %53 = vector.broadcast %52 : vector<192x1xi1> to vector<192x32xi1>
    %54 = vector.broadcast %cst_19 : f32 to vector<192x32xf32>
    %55 = arith.select %53, %51, %54 : vector<192x32xi1>, vector<192x32xf32>
    %56 = tpu.concatenate %50, %8, %55 in 1 : vector<192x32xf32>, vector<192x32xf32>, vector<192x32xf32> -> vector<192x96xf32>
    %57 = arith.truncf %56 : vector<192x96xf32> to vector<192x96xbf16>
    %cst_20 = arith.constant dense<0.000000e+00> : vector<192x32xf32>
    %58 = tpu.matmul %57, %44, %cst_20 {dimension_numbers = #tpu.dot_dimension_numbers<[1], [0], [0], [1], [0, 0, 1, 1], [], []>} : vector<192x96xbf16>, vector<96x32xbf16>, vector<192x32xf32> -> vector<192x32xf32>
    %59 = vector.broadcast %45 : vector<1x32xf32> to vector<192x32xf32>
    %60 = arith.addf %58, %59 : vector<192x32xf32>
    %cst_21 = arith.constant 0.000000e+00 : f32
    %61 = vector.broadcast %cst_21 : f32 to vector<192x32xf32>
    %62 = arith.cmpf oge, %60, %61 : vector<192x32xf32>
    %cst_22 = arith.constant 0.229166672 : f32
    %63 = vector.broadcast %cst_22 : f32 to vector<192x32xf32>
    %64 = arith.mulf %60, %63 : vector<192x32xf32>
    %65 = arith.select %62, %60, %64 : vector<192x32xi1>, vector<192x32xf32>
    %c0_23 = arith.constant 0 : index
    %c0_24 = arith.constant 0 : index
    %66 = vector.load %arg5[%c0_23, %c0_24] : memref<96x48xbf16, #tpu.memory_space<vmem>>, vector<96x48xbf16>
    %c0_25 = arith.constant 0 : index
    %c0_26 = arith.constant 0 : index
    %67 = vector.load %arg6[%c0_25, %c0_26] : memref<1x48xf32, #tpu.memory_space<vmem>>, vector<1x48xf32>
    %c1_i32_27 = arith.constant 1 : i32
    %68 = tpu.dynamic_rotate %65 by %c1_i32_27 dim 0 : vector<192x32xf32>, i32 -> vector<192x32xf32>
    %cst_28 = arith.constant 0.000000e+00 : f32
    %69 = vector.shape_cast %34 : vector<192x1xi1> to vector<192x1xi1>
    %70 = vector.broadcast %69 : vector<192x1xi1> to vector<192x32xi1>
    %71 = vector.broadcast %cst_28 : f32 to vector<192x32xf32>
    %72 = arith.select %70, %68, %71 : vector<192x32xi1>, vector<192x32xf32>
    %c191_i32_29 = arith.constant 191 : i32
    %73 = tpu.dynamic_rotate %65 by %c191_i32_29 dim 0 : vector<192x32xf32>, i32 -> vector<192x32xf32>
    %cst_30 = arith.constant 0.000000e+00 : f32
    %74 = vector.shape_cast %43 : vector<192x1xi1> to vector<192x1xi1>
    %75 = vector.broadcast %74 : vector<192x1xi1> to vector<192x32xi1>
    %76 = vector.broadcast %cst_30 : f32 to vector<192x32xf32>
    %77 = arith.select %75, %73, %76 : vector<192x32xi1>, vector<192x32xf32>
    %78 = tpu.concatenate %72, %65, %77 in 1 : vector<192x32xf32>, vector<192x32xf32>, vector<192x32xf32> -> vector<192x96xf32>
    %79 = arith.truncf %78 : vector<192x96xf32> to vector<192x96xbf16>
    %cst_31 = arith.constant dense<0.000000e+00> : vector<192x48xf32>
    %80 = tpu.matmul %79, %66, %cst_31 {dimension_numbers = #tpu.dot_dimension_numbers<[1], [0], [0], [1], [0, 0, 1, 1], [], []>} : vector<192x96xbf16>, vector<96x48xbf16>, vector<192x48xf32> -> vector<192x48xf32>
    %81 = vector.broadcast %67 : vector<1x48xf32> to vector<192x48xf32>
    %82 = arith.addf %80, %81 : vector<192x48xf32>
    %cst_32 = arith.constant 0.000000e+00 : f32
    %83 = vector.broadcast %cst_32 : f32 to vector<192x48xf32>
    %84 = arith.cmpf oge, %82, %83 : vector<192x48xf32>
    %cst_33 = arith.constant 0.229166672 : f32
    %85 = vector.broadcast %cst_33 : f32 to vector<192x48xf32>
    %86 = arith.mulf %82, %85 : vector<192x48xf32>
    %87 = arith.select %84, %82, %86 : vector<192x48xi1>, vector<192x48xf32>
    %88 = vector.shape_cast %87 : vector<192x48xf32> to vector<24x8x48xf32>
    %cst_34 = arith.constant dense<0xFF800000> : vector<24x48xf32>
    %89 = vector.multi_reduction <maximumf>, %88, %cst_34 [1] : vector<24x8x48xf32> to vector<24x48xf32>
    %90 = arith.truncf %89 : vector<24x48xf32> to vector<24x48xbf16>
    %c0_35 = arith.constant 0 : index
    %c0_36 = arith.constant 0 : index
    %91 = vector.load %arg7[%c0_35, %c0_36] : memref<48x128xbf16, #tpu.memory_space<vmem>>, vector<48x128xbf16>
    %cst_37 = arith.constant dense<0.000000e+00> : vector<24x128xf32>
    %92 = tpu.matmul %90, %91, %cst_37 {dimension_numbers = #tpu.dot_dimension_numbers<[1], [0], [0], [1], [0, 0, 1, 1], [], []>} : vector<24x48xbf16>, vector<48x128xbf16>, vector<24x128xf32> -> vector<24x128xf32>
    %c0_38 = arith.constant 0 : index
    %c0_39 = arith.constant 0 : index
    %93 = vector.load %arg8[%c0_38, %c0_39] : memref<1x128xf32, #tpu.memory_space<vmem>>, vector<1x128xf32>
    %94 = vector.broadcast %93 : vector<1x128xf32> to vector<24x128xf32>
    %95 = arith.addf %92, %94 : vector<24x128xf32>
    %c0_40 = arith.constant 0 : index
    %c0_41 = arith.constant 0 : index
    %96 = vector.load %arg11[%c0_40, %c0_41] : memref<24x128xf32, #tpu.memory_space<vmem>>, vector<24x128xf32>
    tpu.vector_store %arg11[%c0_40, %c0_41], %95 {strides = array<i32>} : memref<24x128xf32, #tpu.memory_space<vmem>>, vector<24x128xf32>,
    %97 = arith.truncf %87 : vector<192x48xf32> to vector<192x48xbf16>
    %c0_42 = arith.constant 0 : index
    %c0_43 = arith.constant 0 : index
    %98 = vector.load %arg9[%c0_42, %c0_43] : memref<48x128xbf16, #tpu.memory_space<vmem>>, vector<48x128xbf16>
    %cst_44 = arith.constant dense<0.000000e+00> : vector<192x128xf32>
    %99 = tpu.matmul %97, %98, %cst_44 {dimension_numbers = #tpu.dot_dimension_numbers<[1], [0], [0], [1], [0, 0, 1, 1], [], []>} : vector<192x48xbf16>, vector<48x128xbf16>, vector<192x128xf32> -> vector<192x128xf32>
    %c0_45 = arith.constant 0 : index
    %c0_46 = arith.constant 0 : index
    %100 = vector.load %arg10[%c0_45, %c0_46] : memref<1x128xf32, #tpu.memory_space<vmem>>, vector<1x128xf32>
    %101 = vector.broadcast %100 : vector<1x128xf32> to vector<192x128xf32>
    %102 = arith.addf %99, %101 : vector<192x128xf32>
    %103 = vector.shape_cast %102 : vector<192x128xf32> to vector<24x8x128xf32>
    %c0_47 = arith.constant 0 : index
    %c0_48 = arith.constant 0 : index
    %c0_49 = arith.constant 0 : index
    %104 = vector.load %arg12[%c0_47, %c0_48, %c0_49] : memref<24x8x128xf32, #tpu.memory_space<vmem>>, vector<24x8x128xf32>
    tpu.vector_store %arg12[%c0_47, %c0_48, %c0_49], %103 {strides = array<i32>} : memref<24x8x128xf32, #tpu.memory_space<vmem>>, vector<24x8x128xf32>,
    return
  }
  func.func @transform_0(%arg0: i32) -> (i32, i32) {
    %c0_i32 = arith.constant 0 : i32
    %c0_i32_0 = arith.constant 0 : i32
    return %arg0, %c0_i32 : i32, i32
  }
  func.func @transform_1(%arg0: i32) -> (i32, i32) {
    %c0_i32 = arith.constant 0 : i32
    %c0_i32_0 = arith.constant 0 : i32
    %c0_i32_1 = arith.constant 0 : i32
    return %c0_i32, %c0_i32_0 : i32, i32
  }
  func.func @transform_2(%arg0: i32) -> (i32, i32) {
    %c0_i32 = arith.constant 0 : i32
    %c0_i32_0 = arith.constant 0 : i32
    %c0_i32_1 = arith.constant 0 : i32
    return %c0_i32, %c0_i32_0 : i32, i32
  }
  func.func @transform_3(%arg0: i32) -> (i32, i32) {
    %c0_i32 = arith.constant 0 : i32
    %c0_i32_0 = arith.constant 0 : i32
    %c0_i32_1 = arith.constant 0 : i32
    return %c0_i32, %c0_i32_0 : i32, i32
  }
  func.func @transform_4(%arg0: i32) -> (i32, i32) {
    %c0_i32 = arith.constant 0 : i32
    %c0_i32_0 = arith.constant 0 : i32
    %c0_i32_1 = arith.constant 0 : i32
    return %c0_i32, %c0_i32_0 : i32, i32
  }
  func.func @transform_5(%arg0: i32) -> (i32, i32) {
    %c0_i32 = arith.constant 0 : i32
    %c0_i32_0 = arith.constant 0 : i32
    %c0_i32_1 = arith.constant 0 : i32
    return %c0_i32, %c0_i32_0 : i32, i32
  }
  func.func @transform_6(%arg0: i32) -> (i32, i32) {
    %c0_i32 = arith.constant 0 : i32
    %c0_i32_0 = arith.constant 0 : i32
    %c0_i32_1 = arith.constant 0 : i32
    return %c0_i32, %c0_i32_0 : i32, i32
  }
  func.func @transform_7(%arg0: i32) -> (i32, i32) {
    %c0_i32 = arith.constant 0 : i32
    %c0_i32_0 = arith.constant 0 : i32
    %c0_i32_1 = arith.constant 0 : i32
    return %c0_i32, %c0_i32_0 : i32, i32
  }
  func.func @transform_8(%arg0: i32) -> (i32, i32) {
    %c0_i32 = arith.constant 0 : i32
    %c0_i32_0 = arith.constant 0 : i32
    %c0_i32_1 = arith.constant 0 : i32
    return %c0_i32, %c0_i32_0 : i32, i32
  }
  func.func @transform_9(%arg0: i32) -> (i32, i32) {
    %c0_i32 = arith.constant 0 : i32
    %c0_i32_0 = arith.constant 0 : i32
    %c0_i32_1 = arith.constant 0 : i32
    return %c0_i32, %c0_i32_0 : i32, i32
  }
  func.func @transform_10(%arg0: i32) -> (i32, i32) {
    %c0_i32 = arith.constant 0 : i32
    %c0_i32_0 = arith.constant 0 : i32
    return %arg0, %c0_i32 : i32, i32
  }
  func.func @transform_11(%arg0: i32) -> (i32, i32, i32) {
    %c0_i32 = arith.constant 0 : i32
    %c0_i32_0 = arith.constant 0 : i32
    %c0_i32_1 = arith.constant 0 : i32
    return %arg0, %c0_i32, %c0_i32_0 : i32, i32, i32
  }
}

</mosaic_0001>

<bundles_post_ra>
// kernel: cnn_joint_forward.1
= control target key start
LH: loop header
LB: loop body
LE: loop exit
PB: predicated region body
PF: predicated region fallthrough
CT: control target
= control target key end

     0   :  { %v3610_v0 = vmov 0   ;;  %v62_v33 = vlaneseq  ;;  %v3611_v39 = vmov 1.0|1.0   ;;  %s3612_s13 = smov 32   ;;  %s5398_s0 = inlined_call_operand.vmem [shape: s32[192,1], index: 0, kind: input, shape index: {}]   ;;  %s5399_s1 = inlined_call_operand.vmem [shape: bf16[128,32], index: 1, kind: input, shape index: {}]   ;;  %s5400_s2 = inlined_call_operand.vmem [shape: bf16[96,32], index: 2, kind: input, shape index: {}]   ;;  %s5401_s4 = inlined_call_operand.vmem [shape: bf16[96,48], index: 4, kind: input, shape index: {}]   ;;  %s5402_s3 = inlined_call_operand.vmem [shape: f32[1,32], index: 3, kind: input, shape index: {}]   ;;  %s5403_s8 = inlined_call_operand.vmem [shape: bf16[48,128], index: 8, kind: input, shape index: {}]   ;;  %s5404_s6 = inlined_call_operand.vmem [shape: bf16[48,128], index: 6, kind: input, shape index: {}]   ;;  %s5405_s5 = inlined_call_operand.vmem [shape: f32[1,48], index: 5, kind: input, shape index: {}]   ;;  %s5406_s9 = inlined_call_operand.vmem [shape: f32[1,128], index: 9, kind: input, shape index: {}]   ;;  %s5407_s11 = inlined_call_operand.vmem [shape: f32[24,8,128], index: 11, kind: output, shape index: {1}]   ;;  %s5408_s7 = inlined_call_operand.vmem [shape: f32[1,128], index: 7, kind: input, shape index: {}]   ;;  %s5409_s10 = inlined_call_operand.vmem [shape: f32[24,128], index: 10, kind: output, shape index: {0}]  }
   0x1   :  { %3343 = vset.pattern.permute.xlu1 %v3610_v0  ;;  %3342 = vset.pattern.permute.xlu0 %v3610_v0  ;;  %v40_v1 = vld [vmem:[%s5398_s0 + $0x10] sm:$0xff]  ;;  %v38_v2 = vld [vmem:[%s5398_s0] sm:$0xff]  ;;  %v41_v3 = vld [vmem:[%s5398_s0 + $0x18] sm:$0xff] }
   0x2   :  { %71 = vperm.xlu1 %3343, %v40_v1   ;;  %65 = vperm.xlu0 %3342, %v38_v2   ;;  %v39_v4 = vld [vmem:[%s5398_s0 + $0x8] sm:$0xff]  ;;  %v42_v6 = vld [vmem:[%s5398_s0 + $0x20] sm:$0xff]  ;;  %v45_v7 = vld [vmem:[%s5398_s0 + $0x38] sm:$0xff]  ;;  %v3771_v36 = vand.u32 127, %v62_v33  ;;  %v3804_v62 = vshrl.u32 %v62_v33, 7 }
   0x3   :  { %v43_v5 = vld [vmem:[%s5398_s0 + $0x28] sm:$0xff]  ;;  %v3584_v8 = vld [vmem:[%s5399_s1] sm:$0xff]   ;;  %v44_v10 = vld [vmem:[%s5398_s0 + $0x30] sm:$0xff] }
   0x4   :  { %v3585_v9 = vld [vmem:[%s5399_s1 + $0x8] sm:$0xff]   ;;  %3186 = vmatprep.subr.bf16.mxu0 %v3584_v8  ;;  %v3586_v11 = vld [vmem:[%s5399_s1 + $0x10] sm:$0xff]   ;;  %v46_v13 = vld [vmem:[%s5398_s0 + $0x40] sm:$0xff]  ;;  %v3807_v63 = vadd.s32 8, %v3804_v62  ;;  %v3810_v0 = vadd.s32 16, %v3804_v62  ;;  %v5423_v1 = vand.u32 7, %v3804_v62 }
   0x5   :  { %3187 = vmatpush3.bf16.msra.mxu0 %v3584_v8  ;;  %v47_v12 = vld [vmem:[%s5398_s0 + $0x48] sm:$0xff]  ;;  %v3587_v14 = vld [vmem:[%s5399_s1 + $0x18] sm:$0xff]   ;;  %v48_v16 = vld [vmem:[%s5398_s0 + $0x50] sm:$0xff]  ;;  %v3828_v8 = vadd.s32 80, %v3804_v62 }
   0x6   :  { %74 = vperm.xlu1 %3343, %v41_v3   ;;  %68 = vperm.xlu0 %3342, %v39_v4   ;;  %v49_v15 = vld [vmem:[%s5398_s0 + $0x58] sm:$0xff]  ;;  %v3588_v17 = vld [vmem:[%s5399_s1 + $0x20] sm:$0xff]   ;;  %v51_v18 = vld [vmem:[%s5398_s0 + $0x68] sm:$0xff]  ;;  %v5422_v2 = vand.u32 7, %v3807_v63  ;;  %v3815_v3 = vadd.s32 48, %v3804_v62  ;;  %v3818_v4 = vadd.s32 24, %v3804_v62 }
   0x7   :  { %3188 = vmatprep.subr.bf16.mxu0 %v3585_v9  ;;  %v50_v19 = vld [vmem:[%s5398_s0 + $0x60] sm:$0xff]  ;;  %v3589_v20 = vld [vmem:[%s5399_s1 + $0x28] sm:$0xff]   ;;  %v53_v21 = vld [vmem:[%s5398_s0 + $0x78] sm:$0xff] }
   0x8   :  { %v52_v22 = vld [vmem:[%s5398_s0 + $0x70] sm:$0xff]  ;;  %v55_v24 = vld [vmem:[%s5398_s0 + $0x88] sm:$0xff]  ;;  %v54_v25 = vld [vmem:[%s5398_s0 + $0x80] sm:$0xff] }
   0x9   :  { %3189 = vmatpush3.bf16.msra.mxu0 %v3585_v9  ;;  %v3590_v23 = vld [vmem:[%s5399_s1 + $0x30] sm:$0xff]   ;;  %v3591_v26 = vld [vmem:[%s5399_s1 + $0x38] sm:$0xff]   ;;  %v59_v29 = vld [vmem:[%s5398_s0 + $0xa8] sm:$0xff]  ;;  %v3832_v9 = vadd.s32 1, %v5423_v1 }
   0xa   :  { %80 = vperm.xlu1 %3343, %v43_v5   ;;  %77 = vperm.xlu0 %3342, %v42_v6   ;;  %v57_v27 = vld [vmem:[%s5398_s0 + $0x98] sm:$0xff]  ;;  %v56_v28 = vld [vmem:[%s5398_s0 + $0x90] sm:$0xff]  ;;  %v58_v30 = vld [vmem:[%s5398_s0 + $0xa0] sm:$0xff]  ;;  %v3821_v5 = vadd.s32 40, %v3804_v62 }
   0xb   :  { %3190 = vmatprep.subr.bf16.mxu0 %v3586_v11  ;;  %v61_v31 = vld [vmem:[%s5398_s0 + $0xb8] sm:$0xff]  ;;  %v60_v32 = vld [vmem:[%s5398_s0 + $0xb0] sm:$0xff]  ;;  %v3592_v60 = vld [vmem:[%s5400_s2] sm:$0xff]   ;;  %5503 = vst [vmem:[#allocation2_spill] sm:$0xff] %v3832_v9 }
   0xc   :  { %v3593_v61 = vld [vmem:[%s5400_s2 + $0x8] sm:$0xff]   ;;  %3226 = vmatprep.subr.bf16.mxu1 %v3592_v60  ;;  %v3594_v6 = vld [vmem:[%s5400_s2 + $0x10] sm:$0xff]  }
   0xd   :  { %3191 = vmatpush3.bf16.msra.mxu0 %v3586_v11  ;;  %3227 = vmatpush3.bf16.msra.mxu1 %v3592_v60  ;;  %v3838_v11 = vadd.s32 56, %v3804_v62 }
   0xe   :  { %86 = vperm.xlu1 %3343, %v45_v7   ;;  %83 = vperm.xlu0 %3342, %v44_v10   ;;  %v5421_v7 = vand.u32 7, %v3810_v0  ;;  %v3835_v10 = vadd.s32 32, %v3804_v62 }
   0xf   :  { %3192 = vmatprep.subr.bf16.mxu0 %v3587_v14  ;;  %3228 = vmatprep.subr.bf16.mxu1 %v3593_v61 }
  0x11   :  { %3193 = vmatpush3.bf16.msra.mxu0 %v3587_v14  ;;  %3229 = vmatpush3.bf16.msra.mxu1 %v3593_v61  ;;  %v5417_v14 = vand.u32 7, %v3815_v3 }
  0x12   :  { %92 = vperm.xlu1 %3343, %v47_v12   ;;  %89 = vperm.xlu0 %3342, %v46_v13   ;;  %v3595_v12 = vld [vmem:[%s5400_s2 + $0x18] sm:$0xff]   ;;  %v3845_v13 = vadd.s32 1, %v5422_v2 }
  0x13   :  { %3194 = vmatprep.subr.bf16.mxu0 %v3588_v17  ;;  %3230 = vmatprep.subr.bf16.mxu1 %v3594_v6 }
  0x14   :  { %5504 = vst [vmem:[#allocation3_spill] sm:$0xff] %v3845_v13 }
  0x15   :  { %3195 = vmatpush3.bf16.msra.mxu0 %v3588_v17  ;;  %3231 = vmatpush3.bf16.msra.mxu1 %v3594_v6  ;;  %v5418_v17 = vand.u32 7, %v3821_v5 }
  0x16   :  { %98 = vperm.xlu1 %3343, %v49_v15   ;;  %95 = vperm.xlu0 %3342, %v48_v16   ;;  %v3849_v15 = vadd.s32 64, %v3804_v62  ;;  %v5420_v16 = vand.u32 7, %v3818_v4 }
  0x17   :  { %3196 = vmatprep.subr.bf16.mxu0 %v3589_v20  ;;  %3232 = vmatprep.subr.bf16.mxu1 %v3595_v12 }
  0x19   :  { %3197 = vmatpush3.bf16.msra.mxu0 %v3589_v20  ;;  %v3863_v20 = vadd.s32 72, %v3804_v62  ;;  %3233 = vmatpush3.bf16.msra.mxu1 %v3595_v12 }
  0x1a   :  { %104 = vperm.xlu1 %3343, %v51_v18   ;;  %101 = vperm.xlu0 %3342, %v50_v19   ;;  %v3855_v18 = vadd.s32 88, %v3804_v62  ;;  %v3860_v19 = vadd.s32 1, %v5421_v7 }
  0x1b   :  { %3198 = vmatprep.subr.bf16.mxu0 %v3590_v23 }
  0x1c   :  { %5505 = vst [vmem:[#allocation4_spill] sm:$0xff] %v3860_v19  ;;  %v5412_v33 = vand.u32 7, %v3855_v18 }
  0x1d   :  { %3199 = vmatpush3.bf16.msra.mxu0 %v3590_v23  ;;  %v5419_v23 = vand.u32 7, %v3835_v10 }
  0x1e   :  { %110 = vperm.xlu1 %3343, %v53_v21   ;;  %107 = vperm.xlu0 %3342, %v52_v22   ;;  %v5413_v21 = vand.u32 7, %v3828_v8  ;;  %v3596_v22 = vld [vmem:[%s5400_s2 + $0x20] sm:$0xff]  }
  0x1f   :  { %3200 = vmatprep.subr.bf16.mxu0 %v3591_v26  ;;  %3234 = vmatprep.subr.bf16.mxu1 %v3596_v22 }
  0x20   :  { %3235 = vmatpush3.bf16.msra.mxu1 %v3596_v22  ;;  %v3963_v22 = vadd.s32 1, %v5412_v33 }
  0x21   :  { %3201 = vmatpush3.bf16.msra.mxu0 %v3591_v26  ;;  %v3878_v26 = vadd.s32 1, %v5420_v16 }
  0x22   :  { %116 = vperm.xlu1 %3343, %v55_v24   ;;  %113 = vperm.xlu0 %3342, %v54_v25   ;;  %v5416_v24 = vand.u32 7, %v3838_v11  ;;  %v3873_v25 = vadd.s32 112, %v3804_v62  ;;  %5514 = vst [vmem:[#allocation13_spill] sm:$0xff] %v3963_v22 }
  0x23   :  { %5506 = vst [vmem:[#allocation5_spill] sm:$0xff] %v3878_v26 }
  0x26   :  { %122 = vperm.xlu1 %3343, %v57_v27   ;;  %119 = vperm.xlu0 %3342, %v56_v28   ;;  %v3882_v27 = vadd.s32 1, %v5417_v14  ;;  %v5415_v28 = vand.u32 7, %v3849_v15 }
  0x28   :  { %5507 = vst [vmem:[#allocation6_spill] sm:$0xff] %v3882_v27 }
  0x2a   :  { %128 = vperm.xlu1 %3343, %v59_v29   ;;  %125 = vperm.xlu0 %3342, %v58_v30   ;;  %v3887_v30 = vadd.s32 1, %v5419_v23 }
  0x2c   :  { %5508 = vst [vmem:[#allocation7_spill] sm:$0xff] %v3887_v30 }
  0x2e   :  { %134 = vperm.xlu1 %3343, %v61_v31   ;;  %131 = vperm.xlu0 %3342, %v60_v32   ;;  %v3891_v31 = vadd.s32 1, %v5418_v17  ;;  %v3895_v32 = vadd.s32 1, %v5416_v24 }
  0x30   :  { %5509 = vst [vmem:[#allocation8_spill] sm:$0xff] %v3891_v31  ;;  %5510 = vst [vmem:[#allocation9_spill] sm:$0xff] %v3895_v32 }
  0x81   :  { %v72_v34 = vpop.permute.xlu1 %71  ;;  %v66_v35 = vpop.permute.xlu0 %65 }
  0x82   :  { %vm138_vm0 = vcmp.eq.s32.totalorder %v3771_v36, %v72_v34  ;;  %vm136_vm3 = vcmp.eq.s32.totalorder %v3771_v36, %v66_v35  ;;  %v5414_v35 = vand.u32 7, %v3863_v20 }
  0x85   :  { %v75_v37 = vpop.permute.xlu1 %74  ;;  %v69_v38 = vpop.permute.xlu0 %68 }
  0x86   :  { %vm139_vm1 = vcmp.eq.s32.totalorder %v3771_v36, %v75_v37  ;;  %vm137_vm2 = vcmp.eq.s32.totalorder %v3771_v36, %v69_v38  ;;  %v3907_v37 = vadd.s32 1, %v5413_v21  ;;  %v3910_v38 = vadd.s32 96, %v3804_v62 }
  0x87   :  { %vm3028_vm4 = vmpackc.low %vm139_vm1, %vm138_vm0 }
  0x88   :  { %vm3026_vm5 = vmpackc.low %vm137_vm2, %vm136_vm3  ;;  %5512 = vst [vmem:[#allocation11_spill] sm:$0xff] %v3907_v37 }
  0x89   :  { %3202 = vmatprep.mubr.msk.bf16.mxu0 %vm3026_vm5, %v3611_v39  ;;  %v81_v40 = vpop.permute.xlu1 %80  ;;  %v78_v41 = vpop.permute.xlu0 %77 }
  0x8a   :  { %vm141_vm6 = vcmp.eq.s32.totalorder %v3771_v36, %v81_v40  ;;  %3203 = vmatmul.mubr.msk.bf16.vlgmr.msra.gmra.mrb[0].mxu0 %vm3028_vm4, %v3611_v39  ;;  %vm140_vm7 = vcmp.eq.s32.totalorder %v3771_v36, %v78_v41  ;;  %v3916_v41 = vadd.s32 104, %v3804_v62 }
  0x8b   :  { %vm3030_vm8 = vmpackc.low %vm141_vm6, %vm140_vm7 }
  0x8c   :  { %3206 = vmatprep.mubr.msk.bf16.mxu0 %vm3030_vm8, %v3611_v39 }
  0x8d   :  { %v87_v42 = vpop.permute.xlu1 %86  ;;  %v84_v43 = vpop.permute.xlu0 %83 }
  0x8e   :  { %vm143_vm9 = vcmp.eq.s32.totalorder %v3771_v36, %v87_v42  ;;  %vm142_vm10 = vcmp.eq.s32.totalorder %v3771_v36, %v84_v43  ;;  %v3919_v42 = vadd.s32 120, %v3804_v62  ;;  %v5410_v43 = vand.u32 7, %v3873_v25 }
  0x8f   :  { %vm3032_vm11 = vmpackc.low %vm143_vm9, %vm142_vm10 }
  0x91   :  { %v93_v44 = vpop.permute.xlu1 %92  ;;  %v90_v45 = vpop.permute.xlu0 %89 }
  0x92   :  { %vm145_vm12 = vcmp.eq.s32.totalorder %v3771_v36, %v93_v44  ;;  %3207 = vmatmul.mubr.msk.bf16.gmra.mrb[4].mxu0 %vm3032_vm11, %v3611_v39  ;;  %vm144_vm13 = vcmp.eq.s32.totalorder %v3771_v36, %v90_v45 }
  0x93   :  { %vm3034_vm14 = vmpackc.low %vm145_vm12, %vm144_vm13 }
  0x94   :  { %3210 = vmatprep.mubr.msk.bf16.mxu0 %vm3034_vm14, %v3611_v39 }
  0x95   :  { %v99_v46 = vpop.permute.xlu1 %98  ;;  %v96_v47 = vpop.permute.xlu0 %95 }
  0x96   :  { %vm147_vm15 = vcmp.eq.s32.totalorder %v3771_v36, %v99_v46  ;;  %vm146_vm0 = vcmp.eq.s32.totalorder %v3771_v36, %v96_v47 }
  0x97   :  { %vm3036_vm1 = vmpackc.low %vm147_vm15, %vm146_vm0 }
  0x99   :  { %v105_v48 = vpop.permute.xlu1 %104  ;;  %v102_v49 = vpop.permute.xlu0 %101 }
  0x9a   :  { %vm149_vm2 = vcmp.eq.s32.totalorder %v3771_v36, %v105_v48  ;;  %3211 = vmatmul.mubr.msk.bf16.gmra.mrb[8].mxu0 %vm3036_vm1, %v3611_v39  ;;  %vm148_vm3 = vcmp.eq.s32.totalorder %v3771_v36, %v102_v49 }
  0x9b   :  { %vm3038_vm4 = vmpackc.low %vm149_vm2, %vm148_vm3 }
  0x9c   :  { %3214 = vmatprep.mubr.msk.bf16.mxu0 %vm3038_vm4, %v3611_v39  ;;  %vm5460_vm4 = vcmp.lt.s32.totalorder %v3804_v62, 1 }
  0x9d   :  { %v111_v50 = vpop.permute.xlu1 %110  ;;  %v108_v51 = vpop.permute.xlu0 %107 }
  0x9e   :  { %vm151_vm5 = vcmp.eq.s32.totalorder %v3771_v36, %v111_v50  ;;  %vm150_vm6 = vcmp.eq.s32.totalorder %v3771_v36, %v108_v51 }
  0x9f   :  { %vm3040_vm7 = vmpackc.low %vm151_vm5, %vm150_vm6  ;;  %vm1076_vm5 = vcmp.lt.s32.totalorder %v3804_v62, 7  ;;  %vm870_vm6 = vcmp.lt.s32.totalorder %v3832_v9, 8 }
  0xa1   :  { %v117_v52 = vpop.permute.xlu1 %116  ;;  %v114_v53 = vpop.permute.xlu0 %113 }
  0xa2   :  { %vm153_vm8 = vcmp.eq.s32.totalorder %v3771_v36, %v117_v52  ;;  %3215 = vmatmul.mubr.msk.bf16.gmra.mrb[12].mxu0 %vm3040_vm7, %v3611_v39  ;;  %vm152_vm9 = vcmp.eq.s32.totalorder %v3771_v36, %v114_v53  ;;  %vm871_vm7 = vcmp.lt.s32.totalorder %v3845_v13, 8 }
  0xa3   :  { %vm3042_vm10 = vmpackc.low %vm153_vm8, %vm152_vm9  ;;  %vm872_vm8 = vcmp.lt.s32.totalorder %v3860_v19, 8  ;;  %vm873_vm9 = vcmp.lt.s32.totalorder %v3878_v26, 8 }
  0xa4   :  { %3218 = vmatprep.mubr.msk.bf16.mxu0 %vm3042_vm10, %v3611_v39  ;;  %vm875_vm10 = vcmp.lt.s32.totalorder %v3891_v31, 8 }
  0xa5   :  { %v123_v54 = vpop.permute.xlu1 %122  ;;  %v120_v55 = vpop.permute.xlu0 %119 }
  0xa6   :  { %vm155_vm11 = vcmp.eq.s32.totalorder %v3771_v36, %v123_v54  ;;  %vm154_vm12 = vcmp.eq.s32.totalorder %v3771_v36, %v120_v55  ;;  %v3939_v55 = vadd.s32 1, %v5414_v35 }
  0xa7   :  { %vm3044_vm13 = vmpackc.low %vm155_vm11, %vm154_vm12  ;;  %vm874_vm11 = vcmp.lt.s32.totalorder %v3887_v30, 8  ;;  %vm5455_vm12 = vcmp.lt.s32.totalorder %v3882_v27, 8  ;;  %v5522_v27 = vand.u32 7, %v3919_v42 }
  0xa8   :  { %5513 = vst [vmem:[#allocation12_spill] sm:$0xff] %v3939_v55 }
  0xa9   :  { %v129_v56 = vpop.permute.xlu1 %128  ;;  %v126_v57 = vpop.permute.xlu0 %125  ;;  %v4098_v19 = vadd.s32 1, %v5522_v27 }
  0xaa   :  { %vm157_vm14 = vcmp.eq.s32.totalorder %v3771_v36, %v129_v56  ;;  %3219 = vmatmul.mubr.msk.bf16.gmra.mrb[16].mxu0 %vm3044_vm13, %v3611_v39  ;;  %vm156_vm15 = vcmp.eq.s32.totalorder %v3771_v36, %v126_v57  ;;  %v5411_v56 = vand.u32 7, %v3910_v38  ;;  %v3597_v57 = vld [vmem:[%s5400_s2 + $0x28] sm:$0xff]   ;;  %s3613_s2 = smov 64   ;;  %vm877_vm13 = vcmp.lt.s32.totalorder %v3895_v32, 8 }
  0xab   :  { %vm3046_vm0 = vmpackc.low %vm157_vm14, %vm156_vm15  ;;  %3236 = vmatprep.subr.bf16.mxu1 %v3597_v57  ;;  %vm5435_vm14 = vcmp.lt.s32.totalorder %v3939_v55, 8  ;;  %5523 = vst [vmem:[#allocation21_spill] sm:$0xff] %v4098_v19 }
  0xac   :  { %3222 = vmatprep.mubr.msk.bf16.mxu0 %vm3046_vm0, %v3611_v39  ;;  %3237 = vmatpush3.bf16.msra.mxu1 %v3597_v57  ;;  %vm5441_vm0 = vcmp.lt.s32.totalorder %v3907_v37, 8 }
  0xad   :  { %v135_v58 = vpop.permute.xlu1 %134  ;;  %v132_v59 = vpop.permute.xlu0 %131 }
  0xae   :  { %vm159_vm1 = vcmp.eq.s32.totalorder %v3771_v36, %v135_v58  ;;  %vm158_vm2 = vcmp.eq.s32.totalorder %v3771_v36, %v132_v59  ;;  %v3903_v36 = vadd.s32 1, %v5415_v28 }
  0xaf   :  { %vm3048_vm3 = vmpackc.low %vm159_vm1, %vm158_vm2  ;;  %vm5442_vm1 = vcmp.lt.s32.totalorder %v3963_v22, 8 }
  0xb0   :  { %5511 = vst [vmem:[#allocation10_spill] sm:$0xff] %v3903_v36  ;;  %vm5437_vm15 = vcmp.lt.s32.totalorder %v3903_v36, 8 }
  0xb2   :  { %3223 = vmatmul.mubr.msk.bf16.gmra.mrb[20].mxu0 %vm3048_vm3, %v3611_v39 }
 0x15d   :  { %v3204_v29 = vpop.f32.mrb[0].mxu0 }
 0x15e   :  { %v3898_v34 = vpop.f32.mrb[1].mxu0  ;;  %v933_v39 = vrot.slane %v3204_v29, 7  ;;  %v1054_v44 = vrot.slane %v3204_v29, 1 }
 0x15f   :  { %v3912_v40 = vpop.f32.mrb[2].mxu0  ;;  %v5426_v49 = vrot.slane %v3898_v34, 1  ;;  %v5425_v58 = vrot.slane %v3898_v34, 7 }
 0x160   :  { %v3344_v45 = vpack.i.bf16 %v3912_v40, %v3204_v29  ;;  %v934_v46 = vrot.slane %v3912_v40, 7  ;;  %v1055_v47 = vrot.slane %v3912_v40, 1  ;;  %v321_v48 = vpop.f32.mrb[3].mxu0 }
 0x161   :  { %v3349_v50 = vpack.i.bf16 %v321_v48, %v3898_v34  ;;  %v932_v51 = vrot.slane %v321_v48, 7  ;;  %v1053_v52 = vrot.slane %v321_v48, 1 }
 0x162   :  { %v3931_v53 = vsel %vm5460_vm4, %v933_v39, %v934_v46  ;;  %3345 = vrot.lane.b32.xlu1 %v3344_v45, %s3612_s13  ;;  %v1097_v54 = vsel %vm1076_vm5, %v1054_v44, %v1055_v47  ;;  %v3971_v45 = vadd.s32 1, %v5410_v43 }
 0x163   :  { %v3948_v59 = vsel %vm5460_vm4, %v932_v51, %v933_v39  ;;  %3350 = vrot.lane.b32.xlu0 %v3349_v50, %s3612_s13  ;;  %v1098_v60 = vsel %vm1076_vm5, %v1053_v52, %v1054_v44  ;;  %v1099_v61 = vsel %vm1076_vm5, %v5426_v49, %v1053_v52  ;;  %v5424_v44 = vand.u32 7, %v3916_v41 }
 0x164   :  { %v1149_v6 = vsel %vm870_vm6, %v1099_v61, 0.0  ;;  %v1150_v12 = vsel %vm871_vm7, %v1098_v60, 0.0  ;;  %5515 = vst [vmem:[#allocation14_spill] sm:$0xff] %v3971_v45  ;;  %v3977_v48 = vsel %vm5460_vm4, %v5425_v58, %v932_v51  ;;  %v3981_v52 = vadd.s32 1, %v5411_v56 }
 0x165   :  { %v3966_v39 = vpop.f32.mrb[4].mxu0  ;;  %v3354_v40 = vpack.i.bf16 %v1150_v12, %v1149_v6  ;;  %v3984_v60 = vadd.s32 128, %v3804_v62  ;;  %v3987_v61 = vadd.s32 144, %v3804_v62  ;;  %v3990_v6 = vadd.s32 152, %v3804_v62 }
 0x166   :  { %v334_v50 = vpop.f32.mrb[5].mxu0  ;;  %5516 = vst [vmem:[#allocation15_spill] sm:$0xff] %v3981_v52  ;;  %v937_v12 = vrot.slane %v3966_v39, 7  ;;  %v3996_v56 = vadd.s32 136, %v3804_v62  ;;  %v1058_v33 = vrot.slane %v3966_v39, 1  ;;  %v4036_v1 = vadd.s32 1, %v5424_v44 }
 0x167   :  { %5517 = vst [vmem:[#allocation16_spill] sm:$0xff] %v3987_v61  ;;  %v935_v43 = vrot.slane %v334_v50, 7  ;;  %v1056_v51 = vrot.slane %v334_v50, 1  ;;  %3355 = vrot.lane.b32.xlu0 %v3354_v40, %s3613_s2  ;;  %v3209_v57 = vpop.f32.mrb[6].mxu0  ;;  %vm5454_vm3 = vcmp.lt.s32.totalorder %v3981_v52, 8 }
 0x168   :  { %v3369_v21 = vpack.i.bf16 %v3209_v57, %v3966_v39  ;;  %v938_v35 = vrot.slane %v3209_v57, 7  ;;  %v1059_v28 = vrot.slane %v3209_v57, 1  ;;  %v337_v24 = vpop.f32.mrb[7].mxu0  ;;  %v1151_v57 = vsel %vm872_vm8, %v1097_v54, 0.0  ;;  %5518 = vst [vmem:[#allocation17_spill] sm:$0xff] %v4036_v1 }
 0x169   :  { %v4003_v14 = vsel %vm5460_vm4, %v934_v46, %v935_v43  ;;  %v3359_v40 = vpack.i.bf16 %v337_v24, %v334_v50  ;;  %v936_v17 = vrot.slane %v337_v24, 7  ;;  %v1057_v23 = vrot.slane %v337_v24, 1 }
 0x16a   :  { %v4008_v16 = vsel %vm5460_vm4, %v937_v12, %v938_v35  ;;  %v1096_v39 = vsel %vm1076_vm5, %v1055_v47, %v1056_v51  ;;  %v1093_v7 = vsel %vm1076_vm5, %v1058_v33, %v1059_v28  ;;  %vm5453_vm2 = vcmp.lt.s32.totalorder %v4036_v1, 8 }
 0x16b   :  { %v4019_v24 = vsel %vm5460_vm4, %v936_v17, %v937_v12  ;;  %v4023_v46 = vsel %vm5460_vm4, %v935_v43, %v936_v17  ;;  %3360 = vrot.lane.b32.xlu0 %v3359_v40, %s3612_s13  ;;  %v1152_v47 = vsel %vm873_vm9, %v1096_v39, 0.0  ;;  %v1094_v54 = vsel %vm1076_vm5, %v1057_v23, %v1058_v33 }
 0x16c   :  { %v3364_v50 = vpack.i.bf16 %v1152_v47, %v1151_v57  ;;  %v1095_v2 = vsel %vm1076_vm5, %v1056_v51, %v1057_v23  ;;  %v1154_v12 = vsel %vm875_vm10, %v1094_v54, 0.0  ;;  %v4048_v47 = vadd.s32 176, %v3804_v62 }
 0x16d   :  { %v4038_v17 = vpop.f32.mrb[8].mxu0  ;;  %v1153_v43 = vsel %vm874_vm11, %v1095_v2, 0.0  ;;  %v4051_v54 = vadd.s32 184, %v3804_v62  ;;  %v4056_v39 = vadd.s32 168, %v3804_v62 }
 0x16e   :  { %3365 = vrot.lane.b32.xlu1 %v3364_v50, %s3613_s2  ;;  %v350_v23 = vpop.f32.mrb[9].mxu0  ;;  %v3374_v51 = vpack.i.bf16 %v1154_v12, %v1153_v43  ;;  %5519 = vst [vmem:[#allocation18_spill] sm:$0xff] %v4048_v47  ;;  %v941_v2 = vrot.slane %v4038_v17, 7  ;;  %v1062_v50 = vrot.slane %v4038_v17, 1 }
 0x16f   :  { %5520 = vst [vmem:[#allocation19_spill] sm:$0xff] %v4051_v54  ;;  %v939_v44 = vrot.slane %v350_v23, 7  ;;  %v1060_v58 = vrot.slane %v350_v23, 1  ;;  %v3213_v49 = vpop.f32.mrb[10].mxu0 }
 0x170   :  { %3375 = vrot.lane.b32.xlu0 %v3374_v51, %s3613_s2  ;;  %v3389_v12 = vpack.i.bf16 %v3213_v49, %v4038_v17  ;;  %v942_v43 = vrot.slane %v3213_v49, 7  ;;  %v1063_v33 = vrot.slane %v3213_v49, 1  ;;  %v353_v57 = vpop.f32.mrb[11].mxu0  ;;  %v1155_v17 = vsel %vm5455_vm12, %v1093_v7, 0.0 }
 0x171   :  { %v4064_v40 = vsel %vm5460_vm4, %v938_v35, %v939_v44  ;;  %v3379_v29 = vpack.i.bf16 %v353_v57, %v350_v23  ;;  %v940_v31 = vrot.slane %v353_v57, 7  ;;  %v1061_v30 = vrot.slane %v353_v57, 1 }
 0x172   :  { %v4069_v26 = vsel %vm5460_vm4, %v941_v2, %v942_v43  ;;  %3370 = vrot.lane.b32.xlu1 %v3369_v21, %s3612_s13  ;;  %v1092_v49 = vsel %vm1076_vm5, %v1059_v28, %v1060_v58  ;;  %v1089_v35 = vsel %vm1076_vm5, %v1062_v50, %v1063_v33 }
 0x173   :  { %5521 = vst [vmem:[#allocation20_spill] sm:$0xff] %v4069_v26  ;;  %v4081_v23 = vsel %vm5460_vm4, %v940_v31, %v941_v2  ;;  %v4085_v51 = vsel %vm5460_vm4, %v939_v44, %v940_v31  ;;  %v1156_v21 = vsel %vm877_vm13, %v1092_v49, 0.0  ;;  %v1090_v28 = vsel %vm1076_vm5, %v1061_v30, %v1062_v50 }
 0x174   :  { %3380 = vrot.lane.b32.xlu0 %v3379_v29, %s3612_s13  ;;  %v3384_v7 = vpack.i.bf16 %v1156_v21, %v1155_v17  ;;  %v1091_v57 = vsel %vm1076_vm5, %v1060_v58, %v1061_v30  ;;  %v1158_v2 = vsel %vm5435_vm14, %v1090_v28, 0.0  ;;  %v5524_v50 = vand.u32 7, %v3984_v60 }
 0x175   :  { %v4100_v31 = vpop.f32.mrb[12].mxu0  ;;  %v1157_v44 = vsel %vm5437_vm15, %v1091_v57, 0.0  ;;  %v5526_v29 = vand.u32 7, %v3996_v56  ;;  %v5528_v30 = vand.u32 7, %v3987_v61  ;;  %v4118_v28 = vadd.s32 160, %v3804_v62 }
 0x176   :  { %v4106_v49 = vadd.s32 1, %v5524_v50  ;;  %3385 = vrot.lane.b32.xlu1 %v3384_v7, %s3613_s2  ;;  %v366_v27 = vpop.f32.mrb[13].mxu0  ;;  %v3394_v21 = vpack.i.bf16 %v1158_v2, %v1157_v44  ;;  %v945_v55 = vrot.slane %v4100_v31, 7  ;;  %vm5450_vm14 = vcmp.lt.s32.totalorder %v3971_v45, 8 }
 0x177   :  { %v4110_v17 = vadd.s32 1, %v5526_v29  ;;  %v4114_v58 = vadd.s32 1, %v5528_v30  ;;  %5529 = vst [vmem:[#allocation24_spill] sm:$0xff] %v4118_v28  ;;  %v943_v36 = vrot.slane %v366_v27, 7  ;;  %v1064_v29 = vrot.slane %v366_v27, 1  ;;  %v3217_v32 = vpop.f32.mrb[14].mxu0 }
 0x178   :  { %5525 = vst [vmem:[#allocation22_spill] sm:$0xff] %v4106_v49  ;;  %v1066_v7 = vrot.slane %v4100_v31, 1  ;;  %3395 = vrot.lane.b32.xlu0 %v3394_v21, %s3613_s2  ;;  %v3409_v2 = vpack.i.bf16 %v3217_v32, %v4100_v31  ;;  %v946_v44 = vrot.slane %v3217_v32, 7  ;;  %v1067_v13 = vrot.slane %v3217_v32, 1  ;;  %v369_v57 = vpop.f32.mrb[15].mxu0 }
 0x179   :  { %5527 = vst [vmem:[#allocation23_spill] sm:$0xff] %v4110_v17  ;;  %vm5452_vm15 = vcmp.lt.s32.totalorder %v4098_v19, 8  ;;  %v4131_v50 = vsel %vm5460_vm4, %v942_v43, %v943_v36  ;;  %v3399_v9 = vpack.i.bf16 %v369_v57, %v366_v27  ;;  %v944_v61 = vrot.slane %v369_v57, 7 }
 0x17a   :  { %v1065_v26 = vrot.slane %v369_v57, 1  ;;  %v4135_v30 = vsel %vm5460_vm4, %v945_v55, %v946_v44  ;;  %3390 = vrot.lane.b32.xlu1 %v3389_v12, %s3612_s13  ;;  %v1088_v31 = vsel %vm1076_vm5, %v1063_v33, %v1064_v29  ;;  %v1159_v32 = vsel %vm5441_vm0, %v1089_v35, 0.0 }
 0x17b   :  { %5530 = vst [vmem:[#allocation25_spill] sm:$0xff] %v4135_v30  ;;  %v1085_v21 = vsel %vm1076_vm5, %v1066_v7, %v1067_v13  ;;  %v4146_v43 = vsel %vm5460_vm4, %v944_v61, %v945_v55  ;;  %v4150_v27 = vsel %vm5460_vm4, %v943_v36, %v944_v61  ;;  %v1160_v12 = vsel %vm5442_vm1, %v1088_v31, 0.0 }
 0x17c   :  { %5531 = vst [vmem:[#allocation26_spill] sm:$0xff] %v4146_v43  ;;  %v1086_v33 = vsel %vm1076_vm5, %v1065_v26, %v1066_v7  ;;  %3400 = vrot.lane.b32.xlu0 %v3399_v9, %s3612_s13  ;;  %v3404_v35 = vpack.i.bf16 %v1160_v12, %v1159_v32  ;;  %v1087_v57 = vsel %vm1076_vm5, %v1064_v29, %v1065_v26  ;;  %v5445_v37 = vand.u32 7, %v4118_v28 }
 0x17d   :  { %v1162_v55 = vsel %vm5453_vm2, %v1086_v33, 0.0  ;;  %v4162_v30 = vpop.f32.mrb[16].mxu0  ;;  %v1161_v36 = vsel %vm5454_vm3, %v1087_v57, 0.0  ;;  %vm886_vm0 = vcmp.lt.s32.totalorder %v4106_v49, 8  ;;  %vm5456_vm1 = vcmp.lt.s32.totalorder %v4110_v17, 8 }
 0x17e   :  { %v5532_v9 = vand.u32 7, %v3990_v6  ;;  %3405 = vrot.lane.b32.xlu1 %v3404_v35, %s3613_s2  ;;  %v382_v26 = vpop.f32.mrb[17].mxu0  ;;  %v3414_v29 = vpack.i.bf16 %v1162_v55, %v1161_v36  ;;  %v4175_v7 = vadd.s32 1, %v5445_v37  ;;  %v5533_v31 = vand.u32 7, %v4048_v47 }
 0x17f   :  { %v5534_v12 = vand.u32 7, %v4051_v54  ;;  %v949_v57 = vrot.slane %v4162_v30, 7  ;;  %v1068_v1 = vrot.slane %v382_v26, 1  ;;  %v3221_v52 = vpop.f32.mrb[18].mxu0  ;;  %v5535_v35 = vand.u32 7, %v4056_v39 }
 0x180   :  { %v4170_v61 = vadd.s32 1, %v5532_v9  ;;  %v4179_v32 = vadd.s32 1, %v5533_v31  ;;  %v947_v9 = vrot.slane %v382_v26, 7  ;;  %v1070_v36 = vrot.slane %v4162_v30, 1  ;;  %3415 = vrot.lane.b32.xlu0 %v3414_v29, %s3613_s2  ;;  %v385_v54 = vpop.f32.mrb[19].mxu0 }
 0x181   :  { %v4183_v33 = vadd.s32 1, %v5534_v12  ;;  %v4188_v55 = vadd.s32 1, %v5535_v35  ;;  %v3429_v31 = vpack.i.bf16 %v3221_v52, %v4162_v30  ;;  %v950_v37 = vrot.slane %v3221_v52, 7 }
 0x182   :  { %v1071_v22 = vrot.slane %v3221_v52, 1  ;;  %v4195_v12 = vsel %vm5460_vm4, %v946_v44, %v947_v9  ;;  %v3419_v47 = vpack.i.bf16 %v385_v54, %v382_v26  ;;  %v948_v43 = vrot.slane %v385_v54, 7  ;;  %3410 = vrot.lane.b32.xlu1 %v3409_v2, %s3612_s13 }
 0x183   :  { %v1069_v28 = vrot.slane %v385_v54, 1  ;;  %v4199_v35 = vsel %vm5460_vm4, %v949_v57, %v950_v37  ;;  %v1084_v29 = vsel %vm1076_vm5, %v1067_v13, %v1068_v1  ;;  %v1163_v52 = vsel %vm5450_vm14, %v1085_v21, 0.0 }
 0x184   :  { %5536 = vst [vmem:[#allocation27_spill] sm:$0xff] %v4199_v35  ;;  %v1081_v30 = vsel %vm1076_vm5, %v1070_v36, %v1071_v22  ;;  %v4210_v44 = vsel %vm5460_vm4, %v948_v43, %v949_v57  ;;  %v4214_v54 = vsel %vm5460_vm4, %v947_v9, %v948_v43  ;;  %v1164_v2 = vsel %vm5452_vm15, %v1084_v29, 0.0  ;;  %3420 = vrot.lane.b32.xlu0 %v3419_v47, %s3612_s13 }
 0x185   :  { %v1082_v13 = vsel %vm1076_vm5, %v1069_v28, %v1070_v36  ;;  %v3424_v21 = vpack.i.bf16 %v1164_v2, %v1163_v52  ;;  %v1083_v26 = vsel %vm1076_vm5, %v1068_v1, %v1069_v28  ;;  %vm5467_vm14 = vcmp.lt.s32.totalorder %v4114_v58, 8  ;;  %v3224_v45 = vpop.f32.mrb[20].mxu0 }
 0x186   :  { %v1166_v57 = vsel %vm5456_vm1, %v1082_v13, 0.0  ;;  %v1165_v43 = vsel %vm886_vm0, %v1083_v26, 0.0  ;;  %vm5468_vm15 = vcmp.lt.s32.totalorder %v4170_v61, 8  ;;  %vm5462_vm2 = vcmp.lt.s32.totalorder %v4179_v32, 8  ;;  %v398_v47 = vpop.f32.mrb[21].mxu0 }
 0x187   :  { %3425 = vrot.lane.b32.xlu1 %v3424_v21, %s3613_s2  ;;  %v3434_v9 = vpack.i.bf16 %v1166_v57, %v1165_v43  ;;  %vm5463_vm3 = vcmp.lt.s32.totalorder %v4175_v7, 8  ;;  %vm5466_vm12 = vcmp.lt.s32.totalorder %v4188_v55, 8  ;;  %vm5461_vm1 = vcmp.lt.s32.totalorder %v4183_v33, 8  ;;  %v3225_v29 = vpop.f32.mrb[22].mxu0 }
 0x188   :  { %v953_v1 = vrot.slane %v3224_v45, 7  ;;  %v951_v28 = vrot.slane %v398_v47, 7  ;;  %v1072_v36 = vrot.slane %v398_v47, 1  ;;  %v1167_v52 = vsel %vm5467_vm14, %v1081_v30, 0.0  ;;  %v401_v57 = vpop.f32.mrb[23].mxu0 }
 0x189   :  { %v1074_v2 = vrot.slane %v3224_v45, 1  ;;  %3435 = vrot.lane.b32.xlu0 %v3434_v9, %s3613_s2  ;;  %v3449_v13 = vpack.i.bf16 %v3225_v29, %v3224_v45  ;;  %v954_v21 = vrot.slane %v3225_v29, 7  ;;  %v1075_v26 = vrot.slane %v3225_v29, 1 }
 0x18a   :  { %v4239_v43 = vsel %vm5460_vm4, %v950_v37, %v951_v28  ;;  %v3439_v17 = vpack.i.bf16 %v401_v57, %v398_v47  ;;  %v952_v49 = vrot.slane %v401_v57, 7  ;;  %v1073_v19 = vrot.slane %v401_v57, 1 }
 0x18b   :  { %v4243_v35 = vsel %vm5460_vm4, %v953_v1, %v954_v21  ;;  %3430 = vrot.lane.b32.xlu1 %v3429_v31, %s3612_s13  ;;  %v1080_v30 = vsel %vm1076_vm5, %v1071_v22, %v1072_v36  ;;  %v1077_v45 = vsel %vm1076_vm5, %v1074_v2, %v1075_v26  ;;  %v5537_v9 = vrot.slane %v3898_v34, 1 }
 0x18c   :  { %v4256_v47 = vsel %vm5460_vm4, %v952_v49, %v953_v1  ;;  %v4260_v29 = vsel %vm5460_vm4, %v951_v28, %v952_v49  ;;  %v1168_v31 = vsel %vm5468_vm15, %v1080_v30, 0.0  ;;  %v1078_v22 = vsel %vm1076_vm5, %v1073_v19, %v1074_v2 }
 0x18d   :  { %v1100_v37 = vsel %vm1076_vm5, %v1075_v26, %v5537_v9  ;;  %3440 = vrot.lane.b32.xlu0 %v3439_v17, %s3612_s13  ;;  %v3444_v57 = vpack.i.bf16 %v1168_v31, %v1167_v52  ;;  %v1079_v26 = vsel %vm1076_vm5, %v1072_v36, %v1073_v19  ;;  %v1170_v1 = vsel %vm5466_vm12, %v1078_v22, 0.0 }
 0x18e   :  { %v1171_v9 = vsel %vm5462_vm2, %v1077_v45, 0.0  ;;  %v1169_v49 = vsel %vm5463_vm3, %v1079_v26, 0.0  ;;  %v1172_v28 = vsel %vm5461_vm1, %v1100_v37, 0.0  ;;  %v5538_v2 = vrot.slane %v3898_v34, 7 }
 0x18f   :  { %3445 = vrot.lane.b32.xlu1 %v3444_v57, %s3613_s2  ;;  %v3454_v19 = vpack.i.bf16 %v1170_v1, %v1169_v49  ;;  %v3459_v36 = vpack.i.bf16 %v1172_v28, %v1171_v9  ;;  %v5539_v52 = vand.u32 7, %v3804_v62  ;;  %v5540_v45 = vand.u32 7, %v3807_v63 }
 0x190   :  { %v979_v17 = vsel %vm5460_vm4, %v954_v21, %v5538_v2  ;;  %vm1365_vm2 = vcmask 261120   ;;  %v5542_v57 = vand.u32 7, %v3818_v4  ;;  %vm1390_vm3 = vcmask 523264  }
 0x191   :  { %3455 = vrot.lane.b32.xlu0 %v3454_v19, %s3613_s2  ;;  %v4287_v30 = vadd.s32 4294967295, %v5539_v52  ;;  %v4291_v34 = vadd.s32 4294967295, %v5540_v45  ;;  %v5544_v4 = vand.u32 7, %v3821_v5  ;;  %v5545_v5 = vand.u32 7, %v3815_v3 }
 0x192   :  { %v4301_v26 = vadd.s32 4294967295, %v5542_v57 }
 0x193   :  { %3450 = vrot.lane.b32.xlu1 %v3449_v13, %s3612_s13  ;;  %vm5464_vm4 = vcmp.ge.s32.totalorder %v4287_v30, 0  ;;  %vm5465_vm1 = vcmp.ge.s32.totalorder %v4291_v34, 0  ;;  %v5541_v13 = vand.u32 7, %v3810_v0  ;;  %v5543_v0 = vand.u32 7, %v3835_v10 }
 0x194   :  { %v1028_v49 = vsel %vm5464_vm4, %v979_v17, 0.0  ;;  %v1029_v28 = vsel %vm5465_vm1, %v3977_v48, 0.0  ;;  %vm1469_vm4 = vcmask 785408   ;;  %vm5471_vm12 = vcmp.ge.s32.totalorder %v4301_v26, 0 }
 0x195   :  { %v4297_v22 = vadd.s32 4294967295, %v5541_v13  ;;  %v4310_v19 = vadd.s32 4294967295, %v5543_v0  ;;  %v5548_v0 = vand.u32 7, %v3863_v20 }
 0x197   :  { %3460 = vrot.lane.b32.xlu1 %v3459_v36, %s3613_s2  ;;  %v4314_v36 = vadd.s32 4294967295, %v5544_v4  ;;  %vm5472_vm1 = vcmp.ge.s32.totalorder %v4297_v22, 0  ;;  %vm5469_vm14 = vcmp.ge.s32.totalorder %v4310_v19, 0  ;;  %v4339_v4 = vadd.s32 4294967295, %v5548_v0 }
 0x198   :  { %v1030_v3 = vsel %vm5472_vm1, %v3948_v59, 0.0  ;;  %v1032_v20 = vsel %vm5469_vm14, %v4003_v14, 0.0 }
 0x199   :  { %vm5470_vm15 = vcmp.ge.s32.totalorder %v4314_v36, 0  ;;  %vm5474_vm1 = vcmp.ge.s32.totalorder %v4339_v4, 0 }
 0x1d4   :  { %v3346_v2 = vpop.permute.xlu1 %3345 }
 0x1d5   :  { %v3351_v37 = vpop.permute.xlu0 %3350  ;;  %v3348_v10 = vunpack.i.h.bf16 %v3346_v2  ;;  %v3347_v57 = vunpack.i.l.bf16 %v3346_v2 }
 0x1d6   :  { %v3353_v21 = vunpack.i.h.bf16 %v3351_v37  ;;  %v3352_v31 = vunpack.i.l.bf16 %v3351_v37 }
 0x1d8   :  { %v1366_v52 = vsel %vm1365_vm2, %v1028_v49, %v3352_v31  ;;  %v1367_v45 = vsel %vm1365_vm2, %v1029_v28, %v3353_v21  ;;  %v4327_v21 = vadd.s32 4294967295, %v5545_v5  ;;  %v5546_v31 = vand.u32 7, %v3838_v11 }
 0x1d9   :  { %v3356_v1 = vpop.permute.xlu0 %3355  ;;  %v5547_v28 = vand.u32 7, %v3849_v15  ;;  %v1031_v11 = vsel %vm5471_vm12, %v3931_v53, 0.0 }
 0x1da   :  { %v3358_v63 = vunpack.i.h.bf16 %v3356_v1  ;;  %v3357_v9 = vunpack.i.l.bf16 %v3356_v1  ;;  %v4331_v1 = vadd.s32 4294967295, %v5546_v31  ;;  %v1369_v15 = vsel %vm1365_vm2, %v1031_v11, %v3348_v10 }
 0x1db   :  { %v4335_v2 = vadd.s32 4294967295, %v5547_v28 }
 0x1dc   :  { %v1391_v37 = vsel %vm1390_vm3, %v1366_v52, %v3357_v9  ;;  %v1392_v17 = vsel %vm1390_vm3, %v1367_v45, %v3358_v63  ;;  %vm5475_vm14 = vcmp.ge.s32.totalorder %v4331_v1, 0 }
 0x1dd   :  { %v3361_v13 = vpop.permute.xlu0 %3360  ;;  %v1415_v48 = vpack.c.bf16 %v1392_v17, %v1391_v37  ;;  %v1368_v37 = vsel %vm1365_vm2, %v1030_v3, %v3347_v57  ;;  %v1033_v17 = vsel %vm5470_vm15, %v4023_v46, 0.0  ;;  %vm5476_vm15 = vcmp.ge.s32.totalorder %v4327_v21, 0 }
 0x1de   :  { %v3363_v63 = vunpack.i.h.bf16 %v3361_v13  ;;  %v3362_v9 = vunpack.i.l.bf16 %v3361_v13  ;;  %vm5473_vm12 = vcmp.ge.s32.totalorder %v4335_v2, 0 }
 0x1df   :  { %3238 = vmatprep.mubr.msk.bf16.mxu1 %vm1469_vm4, %v1415_v48 }
 0x1e0   :  { %v3366_v49 = vpop.permute.xlu1 %3365  ;;  %v1371_v31 = vsel %vm1365_vm2, %v1033_v17, %v3363_v63  ;;  %v1370_v57 = vsel %vm1365_vm2, %v1032_v20, %v3362_v9  ;;  %v5549_v63 = vand.u32 7, %v3828_v8  ;;  %v5551_v17 = vand.u32 7, %v3910_v38 }
 0x1e1   :  { %v3368_v52 = vunpack.i.h.bf16 %v3366_v49  ;;  %v3367_v45 = vunpack.i.l.bf16 %v3366_v49  ;;  %v1034_v8 = vsel %vm5476_vm15, %v4019_v24, 0.0 }
 0x1e2   :  { %v3376_v13 = vpop.permute.xlu0 %3375  ;;  %v4368_v9 = vadd.s32 4294967295, %v5549_v63 }
 0x1e3   :  { %v1394_v59 = vsel %vm1390_vm3, %v1369_v15, %v3368_v52  ;;  %v1393_v48 = vsel %vm1390_vm3, %v1368_v37, %v3367_v45  ;;  %v3378_v53 = vunpack.i.h.bf16 %v3376_v13  ;;  %v3377_v5 = vunpack.i.l.bf16 %v3376_v13 }
 0x1e4   :  { %v1416_v10 = vpack.c.bf16 %v1394_v59, %v1393_v48  ;;  %v3371_v49 = vpop.permute.xlu1 %3370  ;;  %v5550_v52 = vand.u32 7, %v3855_v18  ;;  %v4377_v13 = vadd.s32 4294967295, %v5551_v17  ;;  %v5552_v59 = vand.u32 7, %v3916_v41 }
 0x1e5   :  { %v1395_v28 = vsel %vm1390_vm3, %v1370_v57, %v3377_v5  ;;  %v1396_v14 = vsel %vm1390_vm3, %v1371_v31, %v3378_v53  ;;  %v3373_v0 = vunpack.i.h.bf16 %v3371_v49  ;;  %v3372_v3 = vunpack.i.l.bf16 %v3371_v49 }
 0x1e6   :  { %v1417_v46 = vpack.c.bf16 %v1396_v14, %v1395_v28  ;;  %v3381_v11 = vpop.permute.xlu0 %3380  ;;  %3239 = vmatmul.mubr.msk.bf16.vlgmr.msra.gmra.mrb[0].mxu1 %vm1469_vm4, %v1416_v10  ;;  %v4372_v45 = vadd.s32 4294967295, %v5550_v52  ;;  %v4381_v48 = vadd.s32 4294967295, %v5552_v59  ;;  %v1035_v18 = vsel %vm5475_vm14, %v4008_v16, 0.0 }
 0x1e7   :  { %v3383_v37 = vunpack.i.h.bf16 %v3381_v11  ;;  %v3382_v15 = vunpack.i.l.bf16 %v3381_v11  ;;  %v1372_v31 = vsel %vm1365_vm2, %v1034_v8, %v3372_v3  ;;  %v1373_v38 = vsel %vm1365_vm2, %v1035_v18, %v3373_v0 }
 0x1e8   :  { %v3386_v20 = vpop.permute.xlu1 %3385  ;;  %3242 = vmatprep.mubr.msk.bf16.mxu1 %vm1469_vm4, %v1417_v46  ;;  %5553 = vst [vmem:[#allocation28_spill] sm:$0xff] %v4381_v48  ;;  %v1036_v41 = vsel %vm5473_vm12, %v4064_v40, 0.0  ;;  %v1037_v57 = vsel %vm5474_vm1, %v4085_v51, 0.0  ;;  %vm5479_vm12 = vcmp.ge.s32.totalorder %v4372_v45, 0  ;;  %vm5480_vm1 = vcmp.ge.s32.totalorder %v4368_v9, 0 }
 0x1e9   :  { %v3388_v53 = vunpack.i.h.bf16 %v3386_v20  ;;  %v3387_v5 = vunpack.i.l.bf16 %v3386_v20  ;;  %v1375_v14 = vsel %vm1365_vm2, %v1037_v57, %v3383_v37  ;;  %v1374_v46 = vsel %vm1365_vm2, %v1036_v41, %v3382_v15 }
 0x1ea   :  { %v3396_v10 = vpop.permute.xlu0 %3395  ;;  %vm5477_vm14 = vcmp.ge.s32.totalorder %v4377_v13, 0  ;;  %vm5478_vm15 = vcmp.ge.s32.totalorder %v4381_v48, 0  ;;  %v5554_v37 = vand.u32 7, %v3873_v25  ;;  %v5556_v17 = vand.u32 7, %v3919_v42  ;;  %v5562_v42 = vld [vmem:[#allocation20_spill] sm:$0xff]  ;;  %v5605_v48 = vld [vmem:[#allocation14_spill] sm:$0xff] }
 0x1eb   :  { %v1398_v24 = vsel %vm1390_vm3, %v1373_v38, %v3388_v53  ;;  %v1397_v49 = vsel %vm1390_vm3, %v1372_v31, %v3387_v5  ;;  %v3398_v16 = vunpack.i.h.bf16 %v3396_v10  ;;  %v3397_v28 = vunpack.i.l.bf16 %v3396_v10 }
 0x1ec   :  { %v1418_v0 = vpack.c.bf16 %v1398_v24, %v1397_v49  ;;  %v3391_v3 = vpop.permute.xlu1 %3390  ;;  %v4410_v15 = vadd.s32 4294967295, %v5554_v37  ;;  %v4414_v59 = vadd.s32 4294967295, %v5556_v17  ;;  %v5558_v5 = vand.u32 7, %v3984_v60  ;;  %v5563_v17 = vld [vmem:[#allocation16_spill] sm:$0xff] }
 0x1ed   :  { %v1399_v11 = vsel %vm1390_vm3, %v1374_v46, %v3397_v28  ;;  %v1400_v40 = vsel %vm1390_vm3, %v1375_v14, %v3398_v16  ;;  %v3393_v63 = vunpack.i.h.bf16 %v3391_v3  ;;  %v3392_v52 = vunpack.i.l.bf16 %v3391_v3 }
 0x1ee   :  { %v1419_v51 = vpack.c.bf16 %v1400_v40, %v1399_v11  ;;  %v3401_v20 = vpop.permute.xlu0 %3400  ;;  %3243 = vmatmul.mubr.msk.bf16.gmra.mrb[4].mxu1 %vm1469_vm4, %v1418_v0  ;;  %5555 = vst [vmem:[#allocation29_spill] sm:$0xff] %v4410_v15  ;;  %5557 = vst [vmem:[#allocation30_spill] sm:$0xff] %v4414_v59  ;;  %v4419_v31 = vadd.s32 4294967295, %v5558_v5  ;;  %v5560_v38 = vand.u32 7, %v3996_v56  ;;  %v1038_v25 = vsel %vm5480_vm1, %v4081_v23, 0.0 }
 0x1ef   :  { %v3403_v8 = vunpack.i.h.bf16 %v3401_v20  ;;  %v3402_v18 = vunpack.i.l.bf16 %v3401_v20  ;;  %v1039_v57 = vsel %vm5479_vm12, %v5562_v42, 0.0  ;;  %v1376_v49 = vsel %vm1365_vm2, %v1038_v25, %v3392_v52 }
 0x1f0   :  { %v3406_v53 = vpop.permute.xlu1 %3405  ;;  %3246 = vmatprep.mubr.msk.bf16.mxu1 %vm1469_vm4, %v1419_v51  ;;  %5559 = vst [vmem:[#allocation31_spill] sm:$0xff] %v4419_v31  ;;  %v4423_v41 = vadd.s32 4294967295, %v5560_v38  ;;  %v1377_v60 = vsel %vm1365_vm2, %v1039_v57, %v3393_v63  ;;  %v1040_v56 = vsel %vm5477_vm14, %v4131_v50, 0.0  ;;  %v1041_v16 = vsel %vm5478_vm15, %v4150_v27, 0.0  ;;  %v5568_v57 = vld [vmem:[#allocation24_spill] sm:$0xff] }
 0x1f1   :  { %v3408_v10 = vunpack.i.h.bf16 %v3406_v53  ;;  %v3407_v24 = vunpack.i.l.bf16 %v3406_v53  ;;  %v1379_v3 = vsel %vm1365_vm2, %v1041_v16, %v3403_v8  ;;  %v1378_v11 = vsel %vm1365_vm2, %v1040_v56, %v3402_v18  ;;  %v5573_v56 = vld [vmem:[#allocation26_spill] sm:$0xff] }
 0x1f2   :  { %5561 = vst [vmem:[#allocation32_spill] sm:$0xff] %v4423_v41  ;;  %v3416_v28 = vpop.permute.xlu0 %3415  ;;  %vm5483_vm14 = vcmp.ge.s32.totalorder %v4414_v59, 0  ;;  %vm5484_vm15 = vcmp.ge.s32.totalorder %v4410_v15, 0  ;;  %vm5481_vm12 = vcmp.ge.s32.totalorder %v4419_v31, 0  ;;  %vm5482_vm1 = vcmp.ge.s32.totalorder %v4423_v41, 0  ;;  %v5595_v31 = vld [vmem:[#allocation13_spill] sm:$0xff] }
 0x1f3   :  { %v1402_v23 = vsel %vm1390_vm3, %v1377_v60, %v3408_v10  ;;  %v1401_v14 = vsel %vm1390_vm3, %v1376_v49, %v3407_v24  ;;  %v3418_v46 = vunpack.i.h.bf16 %v3416_v28  ;;  %v3417_v0 = vunpack.i.l.bf16 %v3416_v28 }
 0x1f4   :  { %v1420_v40 = vpack.c.bf16 %v1402_v23, %v1401_v14  ;;  %v3411_v51 = vpop.permute.xlu1 %3410  ;;  %v5564_v8 = vand.u32 7, %v5563_v17  ;;  %v5566_v53 = vand.u32 7, %v3990_v6  ;;  %v5569_v10 = vand.u32 7, %v5568_v57  ;;  %v5574_v6 = vld [vmem:[#allocation25_spill] sm:$0xff] }
 0x1f5   :  { %v1403_v63 = vsel %vm1390_vm3, %v1378_v11, %v3417_v0  ;;  %v1404_v50 = vsel %vm1390_vm3, %v1379_v3, %v3418_v46  ;;  %v3413_v52 = vunpack.i.h.bf16 %v3411_v51  ;;  %v3412_v20 = vunpack.i.l.bf16 %v3411_v51 }
 0x1f6   :  { %v1421_v27 = vpack.c.bf16 %v1404_v50, %v1403_v63  ;;  %v3421_v37 = vpop.permute.xlu0 %3420  ;;  %3247 = vmatmul.mubr.msk.bf16.gmra.mrb[8].mxu1 %vm1469_vm4, %v1420_v40  ;;  %v4452_v18 = vadd.s32 4294967295, %v5564_v8  ;;  %v4456_v5 = vadd.s32 4294967295, %v5566_v53  ;;  %v4461_v24 = vadd.s32 4294967295, %v5569_v10  ;;  %v5575_v10 = vld [vmem:[#allocation18_spill] sm:$0xff] }
 0x1f7   :  { %v3423_v38 = vunpack.i.h.bf16 %v3421_v37  ;;  %v3422_v25 = vunpack.i.l.bf16 %v3421_v37  ;;  %v5571_v49 = vand.u32 7, %v4056_v39  ;;  %v1042_v16 = vsel %vm5484_vm15, %v5573_v56, 0.0 }
 0x1f8   :  { %5565 = vst [vmem:[#allocation20_spill] sm:$0xff] %v4452_v18  ;;  %5567 = vst [vmem:[#allocation16_spill] sm:$0xff] %v4456_v5  ;;  %3250 = vmatprep.mubr.msk.bf16.mxu1 %vm1469_vm4, %v1421_v27  ;;  %v1043_v28 = vsel %vm5483_vm14, %v5574_v6, 0.0  ;;  %v1380_v46 = vsel %vm1365_vm2, %v1042_v16, %v3412_v20  ;;  %v1044_v39 = vsel %vm5481_vm12, %v4195_v12, 0.0  ;;  %v1045_v3 = vsel %vm5482_vm1, %v4214_v54, 0.0  ;;  %v5578_v16 = vld [vmem:[#allocation19_spill] sm:$0xff] }
 0x1f9   :  { %v3426_v42 = vpop.permute.xlu1 %3425  ;;  %5570 = vst [vmem:[#allocation24_spill] sm:$0xff] %v4461_v24  ;;  %v4465_v60 = vadd.s32 4294967295, %v5571_v49  ;;  %v1381_v0 = vsel %vm1365_vm2, %v1043_v28, %v3413_v52  ;;  %v1383_v27 = vsel %vm1365_vm2, %v1045_v3, %v3423_v38  ;;  %v1382_v20 = vsel %vm1365_vm2, %v1044_v39, %v3422_v25 }
 0x1fa   :  { %v3428_v23 = vunpack.i.h.bf16 %v3426_v42  ;;  %v3427_v14 = vunpack.i.l.bf16 %v3426_v42  ;;  %vm5489_vm12 = vcmp.ge.s32.totalorder %v4456_v5, 0  ;;  %vm5490_vm1 = vcmp.ge.s32.totalorder %v4452_v18, 0 }
 0x1fb   :  { %5572 = vst [vmem:[#allocation33_spill] sm:$0xff] %v4465_v60  ;;  %v3436_v11 = vpop.permute.xlu0 %3435  ;;  %vm5485_vm14 = vcmp.ge.s32.totalorder %v4461_v24, 0  ;;  %vm5486_vm15 = vcmp.ge.s32.totalorder %v4465_v60, 0  ;;  %v5576_v49 = vand.u32 7, %v5575_v10  ;;  %v5579_v6 = vand.u32 7, %v5578_v16  ;;  %v5589_v24 = vld [vmem:[#allocation6_spill] sm:$0xff] }
 0x1fc   :  { %v1406_v40 = vsel %vm1390_vm3, %v1381_v0, %v3428_v23  ;;  %v1405_v51 = vsel %vm1390_vm3, %v1380_v46, %v3427_v14  ;;  %v3438_v63 = vunpack.i.h.bf16 %v3436_v11  ;;  %v3437_v50 = vunpack.i.l.bf16 %v3436_v11  ;;  %v5581_v14 = vld [vmem:[#allocation27_spill] sm:$0xff] }
 0x1fd   :  { %v1422_v52 = vpack.c.bf16 %v1406_v40, %v1405_v51  ;;  %v3431_v37 = vpop.permute.xlu1 %3430  ;;  %v4495_v56 = vadd.s32 4294967295, %v5576_v49  ;;  %v4499_v28 = vadd.s32 4294967295, %v5579_v6  ;;  %v1046_v23 = vsel %vm5490_vm1, %v4210_v44, 0.0 }
 0x1fe   :  { %v1407_v17 = vsel %vm1390_vm3, %v1382_v20, %v3437_v50  ;;  %v1408_v12 = vsel %vm1390_vm3, %v1383_v27, %v3438_v63  ;;  %v3433_v8 = vunpack.i.h.bf16 %v3431_v37  ;;  %v3432_v53 = vunpack.i.l.bf16 %v3431_v37 }
 0x1ff   :  { %v1423_v54 = vpack.c.bf16 %v1408_v12, %v1407_v17  ;;  %v3441_v42 = vpop.permute.xlu0 %3440  ;;  %3251 = vmatmul.mubr.msk.bf16.gmra.mrb[12].mxu1 %vm1469_vm4, %v1422_v52  ;;  %5577 = vst [vmem:[#allocation26_spill] sm:$0xff] %v4495_v56  ;;  %5580 = vst [vmem:[#allocation25_spill] sm:$0xff] %v4499_v28  ;;  %v1047_v46 = vsel %vm5489_vm12, %v5581_v14, 0.0  ;;  %v1048_v40 = vsel %vm5485_vm14, %v4239_v43, 0.0  ;;  %v1049_v51 = vsel %vm5486_vm15, %v4260_v29, 0.0 }
 0x200   :  { %v3443_v38 = vunpack.i.h.bf16 %v3441_v42  ;;  %v3442_v25 = vunpack.i.l.bf16 %v3441_v42  ;;  %v1384_v3 = vsel %vm1365_vm2, %v1046_v23, %v3432_v53  ;;  %v1385_v11 = vsel %vm1365_vm2, %v1047_v46, %v3433_v8  ;;  %v3600_v46 = vld [vmem:[%s5401_s4 + $0x10] sm:$0xff]  }
 0x201   :  { %v3446_v57 = vpop.permute.xlu1 %3445  ;;  %3254 = vmatprep.mubr.msk.bf16.mxu1 %vm1469_vm4, %v1423_v54  ;;  %vm5487_vm14 = vcmp.ge.s32.totalorder %v4499_v28, 0  ;;  %vm5488_vm15 = vcmp.ge.s32.totalorder %v4495_v56, 0 }
 0x202   :  { %v3448_v0 = vunpack.i.h.bf16 %v3446_v57  ;;  %v3447_v39 = vunpack.i.l.bf16 %v3446_v57  ;;  %v1387_v52 = vsel %vm1365_vm2, %v1049_v51, %v3443_v38  ;;  %v1386_v37 = vsel %vm1365_vm2, %v1048_v40, %v3442_v25 }
 0x203   :  { %v3456_v63 = vpop.permute.xlu0 %3455  ;;  %v1050_v38 = vsel %vm5488_vm15, %v4256_v47, 0.0  ;;  %v1051_v25 = vsel %vm5487_vm14, %v4243_v35, 0.0  ;;  %v3598_v47 = vld [vmem:[%s5401_s4] sm:$0xff]   ;;  %v3599_v35 = vld [vmem:[%s5401_s4 + $0x8] sm:$0xff]  }
 0x204   :  { %v1410_v44 = vsel %vm1390_vm3, %v1385_v11, %v3448_v0  ;;  %v1409_v50 = vsel %vm1390_vm3, %v1384_v3, %v3447_v39  ;;  %v3458_v27 = vunpack.i.h.bf16 %v3456_v63  ;;  %v3457_v20 = vunpack.i.l.bf16 %v3456_v63  ;;  %3262 = vmatprep.subr.bf16.mxu1 %v3598_v47  ;;  %v3601_v0 = vld [vmem:[%s5401_s4 + $0x18] sm:$0xff]   ;;  %v3602_v39 = vld [vmem:[%s5401_s4 + $0x20] sm:$0xff]  }
 0x205   :  { %v1424_v17 = vpack.c.bf16 %v1410_v44, %v1409_v50  ;;  %v3451_v12 = vpop.permute.xlu1 %3450  ;;  %3263 = vmatpush3.bf16.msra.mxu1 %v3598_v47  ;;  %v4554_v3 = vld [vmem:[%s5402_s3] ss:$0 sm:$0xff] }
 0x206   :  { %v1411_v54 = vsel %vm1390_vm3, %v1386_v37, %v3457_v20  ;;  %v1412_v43 = vsel %vm1390_vm3, %v1387_v52, %v3458_v27  ;;  %v3453_v8 = vunpack.i.h.bf16 %v3451_v12  ;;  %v3452_v53 = vunpack.i.l.bf16 %v3451_v12  ;;  %3264 = vmatprep.subr.bf16.mxu1 %v3599_v35 }
 0x207   :  { %v1425_v29 = vpack.c.bf16 %v1412_v43, %v1411_v54  ;;  %3255 = vmatmul.mubr.msk.bf16.gmra.mrb[16].mxu1 %vm1469_vm4, %v1424_v17 }
 0x208   :  { %v1388_v49 = vsel %vm1365_vm2, %v1050_v38, %v3452_v53  ;;  %v1389_v16 = vsel %vm1365_vm2, %v1051_v25, %v3453_v8 }
 0x209   :  { %v3461_v42 = vpop.permute.xlu1 %3460  ;;  %3258 = vmatprep.mubr.msk.bf16.mxu1 %vm1469_vm4, %v1425_v29  ;;  %3265 = vmatpush3.bf16.msra.mxu1 %v3599_v35 }
 0x20a   :  { %v3463_v57 = vunpack.i.h.bf16 %v3461_v42  ;;  %v3462_v10 = vunpack.i.l.bf16 %v3461_v42  ;;  %3266 = vmatprep.subr.bf16.mxu1 %v3600_v46 }
 0x20c   :  { %v1413_v6 = vsel %vm1390_vm3, %v1388_v49, %v3462_v10  ;;  %v1414_v23 = vsel %vm1390_vm3, %v1389_v16, %v3463_v57  ;;  %v3603_v49 = vld [vmem:[%s5401_s4 + $0x28] sm:$0xff]  }
 0x20d   :  { %v1426_v14 = vpack.c.bf16 %v1414_v23, %v1413_v6  ;;  %3267 = vmatpush3.bf16.msra.mxu1 %v3600_v46 }
 0x20e   :  { %3268 = vmatprep.subr.bf16.mxu1 %v3601_v0 }
 0x20f   :  { %3259 = vmatmul.mubr.msk.bf16.gmra.mrb[20].mxu1 %vm1469_vm4, %v1426_v14 }
 0x211   :  { %3269 = vmatpush3.bf16.msra.mxu1 %v3601_v0 }
 0x212   :  { %3270 = vmatprep.subr.bf16.mxu1 %v3602_v39 }
 0x215   :  { %3271 = vmatpush3.bf16.msra.mxu1 %v3602_v39 }
 0x216   :  { %3272 = vmatprep.subr.bf16.mxu1 %v3603_v49 }
 0x219   :  { %3273 = vmatpush3.bf16.msra.mxu1 %v3603_v49 }
 0x2b9   :  { %v3240_v11 = vpop.f32.mrb[0].mxu1 }
 0x2ba   :  { %v1549_v40 = vadd.f32 %v3240_v11, %v4554_v3  ;;  %v1540_v51 = vpop.f32.mrb[1].mxu1 }
 0x2bb   :  { %v1541_v63 = vadd.f32 %v4554_v3, %v1540_v51  ;;  %v3241_v44 = vpop.f32.mrb[2].mxu1 }
 0x2bc   :  { %vm1637_vm14 = vcmp.ge.f32.partialorder %v1549_v40, 0.0  ;;  %v1661_v50 = vmul.f32 0.22916667, %v1549_v40  ;;  %v1552_v27 = vadd.f32 %v3241_v44, %v4554_v3  ;;  %v1543_v20 = vpop.f32.mrb[3].mxu1 }
 0x2bd   :  { %v1659_v52 = vmul.f32 0.22916667, %v1541_v63  ;;  %v1544_v37 = vadd.f32 %v4554_v3, %v1543_v20  ;;  %vm1635_vm15 = vcmp.ge.f32.partialorder %v1541_v63, 0.0 }
 0x2be   :  { %vm1638_vm12 = vcmp.ge.f32.partialorder %v1552_v27, 0.0  ;;  %v1662_v17 = vmul.f32 0.22916667, %v1552_v27  ;;  %v4560_v12 = vsel %vm1637_vm14, %v1549_v40, %v1661_v50 }
 0x2bf   :  { %vm1636_vm1 = vcmp.ge.f32.partialorder %v1544_v37, 0.0  ;;  %v1660_v43 = vmul.f32 0.22916667, %v1544_v37  ;;  %v4564_v29 = vsel %vm1635_vm15, %v1541_v63, %v1659_v52  ;;  %v1794_v38 = vrot.slane %v4560_v12, 1 }
 0x2c0   :  { %v4562_v54 = vsel %vm1638_vm12, %v1552_v27, %v1662_v17  ;;  %v5491_v47 = vrot.slane %v4564_v29, 1 }
 0x2c1   :  { %v1795_v8 = vrot.slane %v4562_v54, 1  ;;  %v3244_v53 = vpop.f32.mrb[4].mxu1  ;;  %v3464_v42 = vpack.i.bf16 %v4562_v54, %v4560_v12  ;;  %v4570_v25 = vsel %vm1636_vm1, %v1544_v37, %v1660_v43 }
 0x2c2   :  { %v1565_v57 = vadd.f32 %v3244_v53, %v4554_v3  ;;  %v1556_v10 = vpop.f32.mrb[5].mxu1  ;;  %v1793_v16 = vrot.slane %v4570_v25, 1  ;;  %v3469_v14 = vpack.i.bf16 %v4570_v25, %v4564_v29 }
 0x2c3   :  { %v1557_v6 = vadd.f32 %v4554_v3, %v1556_v10  ;;  %3465 = vrot.lane.b32.xlu1 %v3464_v42, %s3612_s13  ;;  %v3245_v23 = vpop.f32.mrb[6].mxu1  ;;  %v1836_v46 = vsel %vm1076_vm5, %v1794_v38, %v1795_v8 }
 0x2c4   :  { %v1559_v35 = vpop.f32.mrb[7].mxu1  ;;  %3470 = vrot.lane.b32.xlu0 %v3469_v14, %s3612_s13  ;;  %v1837_v11 = vsel %vm1076_vm5, %v1793_v16, %v1794_v38  ;;  %v1665_v40 = vmul.f32 0.22916667, %v1565_v57  ;;  %v1838_v51 = vsel %vm1076_vm5, %v5491_v47, %v1793_v16  ;;  %vm1641_vm14 = vcmp.ge.f32.partialorder %v1565_v57, 0.0 }
 0x2c5   :  { %vm1639_vm12 = vcmp.ge.f32.partialorder %v1557_v6, 0.0  ;;  %v1663_v0 = vmul.f32 0.22916667, %v1557_v6  ;;  %v1560_v39 = vadd.f32 %v4554_v3, %v1559_v35  ;;  %v1568_v44 = vadd.f32 %v3245_v23, %v4554_v3 }
 0x2c6   :  { %v1840_v52 = vsel %vm870_vm6, %v1838_v51, 0.0  ;;  %v1841_v17 = vsel %vm871_vm7, %v1837_v11, 0.0  ;;  %v4600_v53 = vsel %vm1641_vm14, %v1565_v57, %v1665_v40 }
 0x2c7   :  { %v4592_v63 = vsel %vm1639_vm12, %v1557_v6, %v1663_v0  ;;  %vm1640_vm15 = vcmp.ge.f32.partialorder %v1560_v39, 0.0  ;;  %v1664_v27 = vmul.f32 0.22916667, %v1560_v39  ;;  %v3474_v38 = vpack.i.bf16 %v1841_v17, %v1840_v52 }
 0x2c8   :  { %v1796_v50 = vrot.slane %v4592_v63, 1  ;;  %vm1642_vm1 = vcmp.ge.f32.partialorder %v1568_v44, 0.0  ;;  %v1666_v16 = vmul.f32 0.22916667, %v1568_v44 }
 0x2c9   :  { %v3248_v43 = vpop.f32.mrb[8].mxu1  ;;  %v4602_v42 = vsel %vm1640_vm15, %v1560_v39, %v1664_v27  ;;  %3475 = vrot.lane.b32.xlu0 %v3474_v38, %s3613_s2  ;;  %vm5590_vm15 = vcmp.lt.s32.totalorder %v5589_v24, 8 }
 0x2ca   :  { %v1572_v10 = vpop.f32.mrb[9].mxu1  ;;  %v1835_v49 = vsel %vm1076_vm5, %v1795_v8, %v1796_v50  ;;  %v3479_v14 = vpack.i.bf16 %v4602_v42, %v4592_v63  ;;  %v1797_v35 = vrot.slane %v4602_v42, 1  ;;  %v1581_v57 = vadd.f32 %v3248_v43, %v4554_v3 }
 0x2cb   :  { %v1573_v6 = vadd.f32 %v4554_v3, %v1572_v10  ;;  %v3249_v23 = vpop.f32.mrb[10].mxu1  ;;  %v1842_v8 = vsel %vm872_vm8, %v1836_v46, 0.0  ;;  %v1843_v20 = vsel %vm873_vm9, %v1835_v49, 0.0  ;;  %v1798_v10 = vrot.slane %v4600_v53, 1 }
 0x2cc   :  { %v1584_v0 = vadd.f32 %v3249_v23, %v4554_v3  ;;  %v1575_v39 = vpop.f32.mrb[11].mxu1  ;;  %v3484_v43 = vpack.i.bf16 %v1843_v20, %v1842_v8  ;;  %v4626_v46 = vsel %vm1642_vm1, %v1568_v44, %v1666_v16  ;;  %vm1645_vm8 = vcmp.ge.f32.partialorder %v1581_v57, 0.0 }
 0x2cd   :  { %vm1643_vm6 = vcmp.ge.f32.partialorder %v1573_v6, 0.0  ;;  %v1667_v40 = vmul.f32 0.22916667, %v1573_v6  ;;  %v1576_v51 = vadd.f32 %v4554_v3, %v1575_v39  ;;  %v1669_v39 = vmul.f32 0.22916667, %v1581_v57  ;;  %3480 = vrot.lane.b32.xlu0 %v3479_v14, %s3612_s13 }
 0x2ce   :  { %3485 = vrot.lane.b32.xlu1 %v3484_v43, %s3613_s2  ;;  %v1670_v8 = vmul.f32 0.22916667, %v1584_v0  ;;  %v1833_v27 = vsel %vm1076_vm5, %v1797_v35, %v1798_v10  ;;  %v1799_v52 = vrot.slane %v4626_v46, 1  ;;  %vm1646_vm9 = vcmp.ge.f32.partialorder %v1584_v0, 0.0 }
 0x2cf   :  { %v4623_v23 = vsel %vm1643_vm6, %v1573_v6, %v1667_v40  ;;  %vm1644_vm7 = vcmp.ge.f32.partialorder %v1576_v51, 0.0  ;;  %v1668_v49 = vmul.f32 0.22916667, %v1576_v51  ;;  %v1834_v6 = vsel %vm1076_vm5, %v1796_v50, %v1797_v35 }
 0x2d0   :  { %v1800_v11 = vrot.slane %v4623_v23, 1  ;;  %v1844_v16 = vsel %vm874_vm11, %v1834_v6, 0.0  ;;  %v1845_v14 = vsel %vm875_vm10, %v1833_v27, 0.0  ;;  %v4645_v50 = vsel %vm1645_vm8, %v1581_v57, %v1669_v39  ;;  %v5593_v39 = vld [vmem:[#allocation12_spill] sm:$0xff] }
 0x2d1   :  { %v4635_v20 = vsel %vm1644_vm7, %v1576_v51, %v1668_v49  ;;  %v3494_v17 = vpack.i.bf16 %v1845_v14, %v1844_v16  ;;  %v3489_v51 = vpack.i.bf16 %v4626_v46, %v4600_v53  ;;  %v1802_v16 = vrot.slane %v4645_v50, 1 }
 0x2d2   :  { %v3252_v40 = vpop.f32.mrb[12].mxu1  ;;  %v1801_v57 = vrot.slane %v4635_v20, 1  ;;  %vm5594_vm1 = vcmp.lt.s32.totalorder %v5593_v39, 8 }
 0x2d3   :  { %v1597_v43 = vadd.f32 %v3252_v40, %v4554_v3  ;;  %v1588_v38 = vpop.f32.mrb[13].mxu1  ;;  %3495 = vrot.lane.b32.xlu0 %v3494_v17, %s3613_s2  ;;  %v4654_v40 = vsel %vm1646_vm9, %v1584_v0, %v1670_v8  ;;  %3490 = vrot.lane.b32.xlu1 %v3489_v51, %s3612_s13  ;;  %v1832_v51 = vsel %vm1076_vm5, %v1798_v10, %v1799_v52  ;;  %v5591_v10 = vld [vmem:[#allocation10_spill] sm:$0xff] }
 0x2d4   :  { %v1589_v47 = vadd.f32 %v4554_v3, %v1588_v38  ;;  %v3253_v28 = vpop.f32.mrb[14].mxu1  ;;  %v3499_v38 = vpack.i.bf16 %v4635_v20, %v4623_v23  ;;  %v1803_v8 = vrot.slane %v4654_v40, 1 }
 0x2d5   :  { %v1673_v35 = vmul.f32 0.22916667, %v1597_v43  ;;  %v1600_v37 = vadd.f32 %v3253_v28, %v4554_v3  ;;  %v1591_v49 = vpop.f32.mrb[15].mxu1  ;;  %vm1649_vm11 = vcmp.ge.f32.partialorder %v1597_v43, 0.0  ;;  %v1831_v28 = vsel %vm1076_vm5, %v1799_v52, %v1800_v11 }
 0x2d6   :  { %vm1647_vm10 = vcmp.ge.f32.partialorder %v1589_v47, 0.0  ;;  %v1671_v27 = vmul.f32 0.22916667, %v1589_v47  ;;  %v1592_v6 = vadd.f32 %v4554_v3, %v1591_v49  ;;  %v1847_v17 = vsel %vm877_vm13, %v1831_v28, 0.0 }
 0x2d7   :  { %v1674_v44 = vmul.f32 0.22916667, %v1600_v37  ;;  %vm1650_vm14 = vcmp.ge.f32.partialorder %v1600_v37, 0.0  ;;  %v4666_v49 = vsel %vm1649_vm11, %v1597_v43, %v1673_v35  ;;  %3500 = vrot.lane.b32.xlu0 %v3499_v38, %s3612_s13  ;;  %v1830_v43 = vsel %vm1076_vm5, %v1800_v11, %v1801_v57 }
 0x2d8   :  { %vm1648_vm12 = vcmp.ge.f32.partialorder %v1592_v6, 0.0  ;;  %v4663_v14 = vsel %vm1647_vm10, %v1589_v47, %v1671_v27  ;;  %v1672_v0 = vmul.f32 0.22916667, %v1592_v6  ;;  %v1846_v47 = vsel %vm5590_vm15, %v1832_v51, 0.0 }
 0x2d9   :  { %v1829_v27 = vsel %vm1076_vm5, %v1801_v57, %v1802_v16  ;;  %v1804_v38 = vrot.slane %v4663_v14, 1  ;;  %v4682_v5 = vsel %vm1650_vm14, %v1600_v37, %v1674_v44  ;;  %v3504_v52 = vpack.i.bf16 %v1847_v17, %v1846_v47 }
 0x2da   :  { %v3256_v56 = vpop.f32.mrb[16].mxu1  ;;  %v4673_v60 = vsel %vm1648_vm12, %v1592_v6, %v1672_v0  ;;  %vm5592_vm13 = vcmp.lt.s32.totalorder %v5591_v10, 8  ;;  %v1849_v24 = vsel %vm5594_vm1, %v1829_v27, 0.0  ;;  %v3509_v11 = vpack.i.bf16 %v4654_v40, %v4645_v50 }
 0x2db   :  { %v1604_v35 = vpop.f32.mrb[17].mxu1  ;;  %v1848_v28 = vsel %vm5592_vm13, %v1830_v43, 0.0  ;;  %v1613_v0 = vadd.f32 %v3256_v56, %v4554_v3  ;;  %3505 = vrot.lane.b32.xlu1 %v3504_v52, %s3613_s2  ;;  %v3519_v47 = vpack.i.bf16 %v4673_v60, %v4663_v14  ;;  %v1805_v27 = vrot.slane %v4673_v60, 1 }
 0x2dc   :  { %v3257_v6 = vpop.f32.mrb[18].mxu1  ;;  %v1605_v51 = vadd.f32 %v4554_v3, %v1604_v35  ;;  %v3514_v37 = vpack.i.bf16 %v1849_v24, %v1848_v28  ;;  %v1827_v28 = vsel %vm1076_vm5, %v1803_v8, %v1804_v38  ;;  %vm5596_vm10 = vcmp.lt.s32.totalorder %v5595_v31, 8 }
 0x2dd   :  { %v1607_v57 = vpop.f32.mrb[19].mxu1  ;;  %v1616_v17 = vadd.f32 %v3257_v6, %v4554_v3  ;;  %v1677_v43 = vmul.f32 0.22916667, %v1613_v0  ;;  %vm1653_vm7 = vcmp.ge.f32.partialorder %v1613_v0, 0.0  ;;  %v1828_v6 = vsel %vm1076_vm5, %v1802_v16, %v1803_v8 }
 0x2de   :  { %v1608_v44 = vadd.f32 %v4554_v3, %v1607_v57  ;;  %vm1651_vm6 = vcmp.ge.f32.partialorder %v1605_v51, 0.0  ;;  %v1675_v56 = vmul.f32 0.22916667, %v1605_v51  ;;  %3515 = vrot.lane.b32.xlu0 %v3514_v37, %s3613_s2  ;;  %v1806_v37 = vrot.slane %v4666_v49, 1 }
 0x2df   :  { %v1678_v35 = vmul.f32 0.22916667, %v1616_v17  ;;  %vm1654_vm9 = vcmp.ge.f32.partialorder %v1616_v17, 0.0  ;;  %3510 = vrot.lane.b32.xlu1 %v3509_v11, %s3612_s13  ;;  %v1851_v16 = vsel %vm5596_vm10, %v1827_v28, 0.0  ;;  %v5597_v11 = vld [vmem:[#allocation11_spill] sm:$0xff]  ;;  %v1826_v31 = vsel %vm1076_vm5, %v1804_v38, %v1805_v27  ;;  %v5601_v28 = vld [vmem:[#allocation17_spill] sm:$0xff] }
 0x2e0   :  { %vm1652_vm8 = vcmp.ge.f32.partialorder %v1608_v44, 0.0  ;;  %v1676_v10 = vmul.f32 0.22916667, %v1608_v44  ;;  %v4699_v52 = vsel %vm1651_vm6, %v1605_v51, %v1675_v56  ;;  %v1807_v51 = vrot.slane %v4682_v5, 1 }
 0x2e1   :  { %v4711_v56 = vsel %vm1653_vm7, %v1613_v0, %v1677_v43  ;;  %v1808_v39 = vrot.slane %v4699_v52, 1  ;;  %v4718_v24 = vsel %vm1654_vm9, %v1616_v17, %v1678_v35  ;;  %vm5598_vm11 = vcmp.lt.s32.totalorder %v5597_v11, 8  ;;  %v5599_v17 = vld [vmem:[#allocation15_spill] sm:$0xff] }
 0x2e2   :  { %v3260_v18 = vpop.f32.mrb[20].mxu1  ;;  %v4713_v41 = vsel %vm1652_vm8, %v1608_v44, %v1676_v10  ;;  %3520 = vrot.lane.b32.xlu0 %v3519_v47, %s3612_s13  ;;  %v1850_v59 = vsel %vm5598_vm11, %v1828_v6, 0.0  ;;  %v1825_v44 = vsel %vm1076_vm5, %v1805_v27, %v1806_v37  ;;  %vm5600_vm12 = vcmp.lt.s32.totalorder %v5599_v17, 8  ;;  %v5603_v17 = vld [vmem:[#allocation21_spill] sm:$0xff] }
 0x2e3   :  { %v1620_v8 = vpop.f32.mrb[21].mxu1  ;;  %v1809_v57 = vrot.slane %v4713_v41, 1  ;;  %v3524_v0 = vpack.i.bf16 %v1851_v16, %v1850_v59  ;;  %v1629_v43 = vadd.f32 %v3260_v18, %v4554_v3  ;;  %v1852_v35 = vsel %vm5600_vm12, %v1826_v31, 0.0 }
 0x2e4   :  { %v3261_v15 = vpop.f32.mrb[22].mxu1  ;;  %vm5602_vm14 = vcmp.lt.s32.totalorder %v5601_v28, 8  ;;  %v1621_v11 = vadd.f32 %v4554_v3, %v1620_v8  ;;  %v3529_v59 = vpack.i.bf16 %v4682_v5, %v4666_v49  ;;  %v3539_v31 = vpack.i.bf16 %v4713_v41, %v4699_v52 }
 0x2e5   :  { %v1623_v10 = vpop.f32.mrb[23].mxu1  ;;  %v1853_v47 = vsel %vm5602_vm14, %v1825_v44, 0.0  ;;  %3525 = vrot.lane.b32.xlu1 %v3524_v0, %s3613_s2  ;;  %vm1657_vm15 = vcmp.ge.f32.partialorder %v1629_v43, 0.0  ;;  %v1681_v16 = vmul.f32 0.22916667, %v1629_v43  ;;  %v1632_v38 = vadd.f32 %v3261_v15, %v4554_v3 }
 0x2e6   :  { %v3534_v6 = vpack.i.bf16 %v1853_v47, %v1852_v35  ;;  %vm1655_vm13 = vcmp.ge.f32.partialorder %v1621_v11, 0.0  ;;  %v1679_v18 = vmul.f32 0.22916667, %v1621_v11  ;;  %v1624_v27 = vadd.f32 %v4554_v3, %v1623_v10 }
 0x2e7   :  { %v4742_v8 = vsel %vm1657_vm15, %v1629_v43, %v1681_v16  ;;  %vm1658_vm1 = vcmp.ge.f32.partialorder %v1632_v38, 0.0  ;;  %v1682_v44 = vmul.f32 0.22916667, %v1632_v38  ;;  %v1823_v0 = vsel %vm1076_vm5, %v1807_v51, %v1808_v39 }
 0x2e8   :  { %3535 = vrot.lane.b32.xlu0 %v3534_v6, %s3613_s2  ;;  %v1810_v15 = vrot.slane %v4711_v56, 1  ;;  %v4748_v35 = vsel %vm1655_vm13, %v1621_v11, %v1679_v18  ;;  %vm1656_vm6 = vcmp.ge.f32.partialorder %v1624_v27, 0.0  ;;  %v1811_v3 = vrot.slane %v4718_v24, 1 }
 0x2e9   :  { %v1812_v10 = vrot.slane %v4748_v35, 1  ;;  %3530 = vrot.lane.b32.xlu1 %v3529_v59, %s3612_s13  ;;  %v4753_v43 = vsel %vm1658_vm1, %v1632_v38, %v1682_v44  ;;  %v1680_v28 = vmul.f32 0.22916667, %v1624_v27  ;;  %v1814_v47 = vrot.slane %v4742_v8, 1 }
 0x2ea   :  { %v1824_v16 = vsel %vm1076_vm5, %v1806_v37, %v1807_v51  ;;  %vm5604_vm7 = vcmp.lt.s32.totalorder %v5603_v17, 8  ;;  %vm5606_vm8 = vcmp.lt.s32.totalorder %v5605_v48, 8  ;;  %v1821_v38 = vsel %vm1076_vm5, %v1809_v57, %v1810_v15 }
 0x2eb   :  { %v1855_v11 = vsel %vm5604_vm7, %v1823_v0, 0.0  ;;  %v4761_v18 = vsel %vm1656_vm6, %v1624_v27, %v1680_v28  ;;  %v1854_v59 = vsel %vm5606_vm8, %v1824_v16, 0.0  ;;  %v1822_v44 = vsel %vm1076_vm5, %v1808_v39, %v1809_v57  ;;  %v5608_v0 = vld [vmem:[#allocation23_spill] sm:$0xff] }
 0x2ec   :  { %3540 = vrot.lane.b32.xlu0 %v3539_v31, %s3612_s13  ;;  %v1815_v6 = vrot.slane %v4753_v43, 1  ;;  %v1813_v37 = vrot.slane %v4761_v18, 1  ;;  %v3544_v51 = vpack.i.bf16 %v1855_v11, %v1854_v59  ;;  %v1856_v27 = vsel %vm886_vm0, %v1822_v44, 0.0 }
 0x2ed   :  { %vm5609_vm9 = vcmp.lt.s32.totalorder %v5608_v0, 8  ;;  %v3549_v48 = vpack.i.bf16 %v4718_v24, %v4711_v56  ;;  %v3559_v28 = vpack.i.bf16 %v4761_v18, %v4748_v35  ;;  %v1819_v39 = vsel %vm1076_vm5, %v1811_v3, %v1812_v10 }
 0x2ee   :  { %v1857_v31 = vsel %vm5609_vm9, %v1821_v38, 0.0  ;;  %3545 = vrot.lane.b32.xlu1 %v3544_v51, %s3613_s2  ;;  %v1820_v16 = vsel %vm1076_vm5, %v1810_v15, %v1811_v3  ;;  %vm5610_vm0 = vcmp.lt.s32.totalorder %v4170_v61, 8  ;;  %v1817_v59 = vsel %vm1076_vm5, %v1813_v37, %v1814_v47 }
 0x2ef   :  { %v3554_v57 = vpack.i.bf16 %v1857_v31, %v1856_v27  ;;  %v1859_v11 = vsel %vm5610_vm0, %v1819_v39, 0.0  ;;  %vm5611_vm10 = vcmp.lt.s32.totalorder %v4114_v58, 8  ;;  %v1818_v44 = vsel %vm1076_vm5, %v1812_v10, %v1813_v37 }
 0x2f0   :  { %v1858_v38 = vsel %vm5611_vm10, %v1820_v16, 0.0  ;;  %vm5612_vm11 = vcmp.lt.s32.totalorder %v4188_v55, 8  ;;  %v3569_v51 = vpack.i.bf16 %v4753_v43, %v4742_v8  ;;  %vm5613_vm12 = vcmp.lt.s32.totalorder %v4175_v7, 8 }
 0x2f1   :  { %v1861_v17 = vsel %vm5612_vm11, %v1817_v59, 0.0  ;;  %3555 = vrot.lane.b32.xlu0 %v3554_v57, %s3613_s2  ;;  %v3564_v15 = vpack.i.bf16 %v1859_v11, %v1858_v38  ;;  %v1860_v61 = vsel %vm5613_vm12, %v1818_v44, 0.0  ;;  %v1816_v3 = vsel %vm1076_vm5, %v1814_v47, %v1815_v6 }
 0x2f2   :  { %v5614_v58 = vrot.slane %v4564_v29, 1  ;;  %v3574_v37 = vpack.i.bf16 %v1861_v17, %v1860_v61  ;;  %vm5615_vm14 = vcmp.lt.s32.totalorder %v4179_v32, 8  ;;  %vm5616_vm15 = vcmp.lt.s32.totalorder %v4183_v33, 8  ;;  %3550 = vrot.lane.b32.xlu1 %v3549_v48, %s3612_s13 }
 0x2f3   :  { %v1862_v55 = vsel %vm5615_vm14, %v1816_v3, 0.0  ;;  %v5617_v0 = vrot.slane %v4562_v54, 7  ;;  %v5618_v7 = vrot.slane %v4560_v12, 7  ;;  %vm5619_vm13 = vcmp.lt.s32.totalorder %v3804_v62, 1 }
 0x2f4   :  { %v1839_v10 = vsel %vm1076_vm5, %v1815_v6, %v5614_v58  ;;  %v1731_v47 = vrot.slane %v4654_v40, 7  ;;  %v5621_v32 = vrot.slane %v4570_v25, 7  ;;  %vm5622_vm5 = vmmov %vm5619_vm13  ;;  %v5624_v16 = vrot.slane %v4564_v29, 7 }
 0x2f5   :  { %v1863_v27 = vsel %vm5616_vm15, %v1839_v10, 0.0  ;;  %v4816_v31 = vsel %vm5619_vm13, %v5618_v7, %v5617_v0  ;;  %v5620_v39 = vmov %v5618_v7  ;;  %vm5625_vm1 = vmmov %vm5622_vm5  ;;  %v1730_v40 = vrot.slane %v4645_v50, 7  ;;  %3560 = vrot.lane.b32.xlu0 %v3559_v28, %s3612_s13 }
 0x2f6   :  { %v3579_v6 = vpack.i.bf16 %v1863_v27, %v1862_v55  ;;  %v4826_v33 = vsel %vm5622_vm5, %v5621_v32, %v5620_v39  ;;  %v5623_v57 = vmov %v5621_v32  ;;  %v1733_v48 = vrot.slane %v4673_v60, 7  ;;  %vm5628_vm6 = vmmov %vm5625_vm1  ;;  %3565 = vrot.lane.b32.xlu1 %v3564_v15, %s3613_s2 }
 0x2f7   :  { %v1766_v11 = vsel %vm5625_vm1, %v5624_v16, %v5623_v57  ;;  %v5626_v59 = vmov %v5624_v16  ;;  %v5627_v12 = vrot.slane %v4753_v43, 7  ;;  %v5629_v44 = vrot.slane %v4602_v42, 7  ;;  %vm5631_vm7 = vmmov %vm5625_vm1 }
 0x2f8   :  { %v5630_v25 = vrot.slane %v4592_v63, 7  ;;  %v1732_v61 = vrot.slane %v4663_v14, 7  ;;  %v1735_v50 = vrot.slane %v4682_v5, 7  ;;  %v5633_v29 = vmov %v5617_v0  ;;  %vm5634_vm8 = vmmov %vm5625_vm1 }
 0x2f9   :  { %v1767_v38 = vsel %vm5628_vm6, %v5627_v12, %v5626_v59  ;;  %v5635_v58 = vrot.slane %v4626_v46, 7  ;;  %v5636_v10 = vrot.slane %v4600_v53, 7  ;;  %vm5637_vm9 = vmmov %vm5625_vm1  ;;  %v1734_v5 = vrot.slane %v4666_v49, 7  ;;  %3575 = vrot.lane.b32.xlu0 %v3574_v37, %s3613_s2 }
 0x2fa   :  { %v4848_v17 = vsel %vm5631_vm7, %v5630_v25, %v5629_v44  ;;  %v5632_v60 = vmov %v5630_v25  ;;  %v1737_v14 = vrot.slane %v4713_v41, 7  ;;  %v5639_v54 = vmov %v5629_v44  ;;  %vm5640_vm0 = vmmov %vm5625_vm1  ;;  %3570 = vrot.lane.b32.xlu1 %v3569_v51, %s3612_s13 }
 0x2fb   :  { %v4859_v3 = vsel %vm5634_vm8, %v5633_v29, %v5632_v60  ;;  %v4867_v55 = vsel %vm5637_vm9, %v5636_v10, %v5635_v58  ;;  %v5638_v63 = vmov %v5636_v10  ;;  %v5641_v27 = vrot.slane %v4635_v20, 7  ;;  %vm5643_vm10 = vmmov %vm5640_vm0 }
 0x2fc   :  { %v4877_v28 = vsel %vm5640_vm0, %v5639_v54, %v5638_v63  ;;  %v5642_v0 = vrot.slane %v4623_v23, 7  ;;  %v1736_v49 = vrot.slane %v4699_v52, 7  ;;  %v1739_v41 = vrot.slane %v4718_v24, 7  ;;  %vm5646_vm11 = vmmov %vm5640_vm0 }
 0x2fd   :  { %v5645_v42 = vmov %v5635_v58  ;;  %vm5647_vm12 = vmmov %vm5640_vm0  ;;  %v1741_v57 = vrot.slane %v4761_v18, 7  ;;  %v5648_v52 = vmov %v5641_v27  ;;  %v1738_v46 = vrot.slane %v4711_v56, 7  ;;  %v3604_v18 = vld [vmem:[%s5403_s8] sm:$0xff]   ;;  %v3605_v56 = vld [vmem:[%s5403_s8 + $0x8] sm:$0xff]  }
 0x2fe   :  { %v4885_v7 = vsel %vm5643_vm10, %v5642_v0, %v5641_v27  ;;  %v5644_v53 = vmov %v5642_v0  ;;  %v4900_v32 = vsel %vm5647_vm12, %v1730_v40, %v1731_v47  ;;  %vm5649_vm14 = vmmov %vm5640_vm0  ;;  %v1740_v15 = vrot.slane %v4748_v35, 7  ;;  %3308 = vmatprep.subr.bf16.mxu0 %v3604_v18  ;;  %3580 = vrot.lane.b32.xlu1 %v3579_v6, %s3613_s2 }
 0x2ff   :  { %v4896_v39 = vsel %vm5646_vm11, %v5645_v42, %v5644_v53  ;;  %v4907_v24 = vsel %vm5649_vm14, %v5648_v52, %v1730_v40  ;;  %vm5650_vm15 = vmmov %vm5640_vm0  ;;  %3309 = vmatpush3.bf16.msra.mxu0 %v3604_v18  ;;  %v5659_v51 = vrot.slane %v4753_v43, 7  ;;  %vm5662_vm14 = vcmp.ge.s32.totalorder %v4287_v30, 0 }
 0x300   :  { %v4911_v23 = vsel %vm5650_vm15, %v1732_v61, %v1733_v48  ;;  %vm5651_vm13 = vmmov %vm5640_vm0  ;;  %v4954_v12 = vsel %vm5640_vm0, %v1740_v15, %v1741_v57  ;;  %3310 = vmatprep.subr.bf16.mxu0 %v3605_v56  ;;  %v1768_v43 = vsel %vm5662_vm14, %v1767_v38, 0.0  ;;  %vm5663_vm15 = vcmp.ge.s32.totalorder %v4291_v34, 0 }
 0x301   :  { %v4918_v16 = vsel %vm5651_vm13, %v1731_v47, %v1732_v61  ;;  %vm5652_vm5 = vmmov %vm5640_vm0  ;;  %v1742_v47 = vrot.slane %v4742_v8, 7  ;;  %v1769_v10 = vsel %vm5663_vm15, %v1766_v11, 0.0  ;;  %vm5664_vm13 = vcmp.ge.s32.totalorder %v4297_v22, 0 }
 0x302   :  { %v4922_v20 = vsel %vm5652_vm5, %v1734_v5, %v1735_v50  ;;  %vm5653_vm1 = vmmov %vm5640_vm0  ;;  %v1770_v30 = vsel %vm5664_vm13, %v4826_v33, 0.0  ;;  %vm5665_vm5 = vcmp.ge.s32.totalorder %v4301_v26, 0 }
 0x303   :  { %v4932_v35 = vsel %vm5653_vm1, %v1733_v48, %v1734_v5  ;;  %vm5654_vm6 = vmmov %vm5640_vm0  ;;  %3311 = vmatpush3.bf16.msra.mxu0 %v3605_v56  ;;  %v1771_v34 = vsel %vm5665_vm5, %v4816_v31, 0.0  ;;  %vm5666_vm1 = vcmp.ge.s32.totalorder %v4310_v19, 0 }
 0x304   :  { %v4936_v37 = vsel %vm5654_vm6, %v1736_v49, %v1737_v14  ;;  %vm5655_vm7 = vmmov %vm5640_vm0  ;;  %v1772_v26 = vsel %vm5666_vm1, %v4859_v3, 0.0  ;;  %vm5667_vm6 = vcmp.ge.s32.totalorder %v4314_v36, 0 }
 0x305   :  { %v4942_v40 = vsel %vm5655_vm7, %v1735_v50, %v1736_v49  ;;  %vm5656_vm8 = vmmov %vm5640_vm0  ;;  %v1773_v31 = vsel %vm5667_vm6, %v4848_v17, 0.0  ;;  %vm5668_vm7 = vcmp.ge.s32.totalorder %v4327_v21, 0 }
 0x306   :  { %v4946_v59 = vsel %vm5656_vm8, %v1738_v46, %v1739_v41  ;;  %vm5657_vm9 = vmmov %vm5640_vm0  ;;  %vm5669_vm8 = vcmp.ge.s32.totalorder %v4331_v1, 0 }
 0x307   :  { %v4950_v48 = vsel %vm5657_vm9, %v1737_v14, %v1738_v46  ;;  %vm5658_vm10 = vmmov %vm5640_vm0  ;;  %vm5670_vm9 = vcmp.ge.s32.totalorder %v4335_v2, 0 }
 0x308   :  { %v4958_v8 = vsel %vm5658_vm10, %v1739_v41, %v1740_v15  ;;  %vm5660_vm11 = vmmov %vm5640_vm0  ;;  %vm5672_vm10 = vcmp.ge.s32.totalorder %v4368_v9, 0 }
 0x309   :  { %v4964_v44 = vsel %vm5660_vm11, %v1742_v47, %v5659_v51  ;;  %vm5661_vm12 = vmmov %vm5640_vm0  ;;  %vm5671_vm0 = vcmp.ge.s32.totalorder %v4339_v4, 0  ;;  %vm5673_vm11 = vcmp.ge.s32.totalorder %v4372_v45, 0 }
 0x30a   :  { %v4968_v25 = vsel %vm5661_vm12, %v1741_v57, %v1742_v47  ;;  %vm5674_vm12 = vcmp.ge.s32.totalorder %v4377_v13, 0 }
 0x335   :  { %v3466_v29 = vpop.permute.xlu1 %3465 }
 0x336   :  { %v3471_v61 = vpop.permute.xlu0 %3470  ;;  %v3468_v63 = vunpack.i.h.bf16 %v3466_v29  ;;  %v3467_v62 = vunpack.i.l.bf16 %v3466_v29 }
 0x337   :  { %v3473_v50 = vunpack.i.h.bf16 %v3471_v61  ;;  %v3472_v60 = vunpack.i.l.bf16 %v3471_v61 }
 0x338   :  { %v2058_v42 = vsel %vm1365_vm2, %v1770_v30, %v3467_v62  ;;  %v2059_v57 = vsel %vm1365_vm2, %v1771_v34, %v3468_v63 }
 0x339   :  { %v2056_v54 = vsel %vm1365_vm2, %v1768_v43, %v3472_v60  ;;  %v2057_v6 = vsel %vm1365_vm2, %v1769_v10, %v3473_v50 }
 0x33b   :  { %v3476_v58 = vpop.permute.xlu0 %3475 }
 0x33c   :  { %v3478_v5 = vunpack.i.h.bf16 %v3476_v58  ;;  %v3477_v14 = vunpack.i.l.bf16 %v3476_v58 }
 0x33e   :  { %v2080_v27 = vsel %vm1390_vm3, %v2056_v54, %v3477_v14  ;;  %v2081_v0 = vsel %vm1390_vm3, %v2057_v6, %v3478_v5  ;;  %v1774_v5 = vsel %vm5668_vm7, %v4877_v28, 0.0  ;;  %v1775_v14 = vsel %vm5669_vm8, %v4867_v55, 0.0 }
 0x33f   :  { %v2104_v49 = vpack.c.bf16 %v2081_v0, %v2080_v27  ;;  %v3481_v41 = vpop.permute.xlu0 %3480  ;;  %v1776_v27 = vsel %vm5670_vm9, %v4896_v39, 0.0  ;;  %v1777_v0 = vsel %vm5671_vm0, %v4885_v7, 0.0 }
 0x340   :  { %v3486_v53 = vpop.permute.xlu1 %3485  ;;  %v3483_v52 = vunpack.i.h.bf16 %v3481_v41  ;;  %v3482_v46 = vunpack.i.l.bf16 %v3481_v41 }
 0x341   :  { %v3488_v11 = vunpack.i.h.bf16 %v3486_v53  ;;  %v3487_v38 = vunpack.i.l.bf16 %v3486_v53  ;;  %3274 = vmatprep.mubr.msk.bf16.mxu1 %vm1469_vm4, %v2104_v49 }
 0x342   :  { %v2061_v51 = vsel %vm1365_vm2, %v1773_v31, %v3483_v52  ;;  %v2060_v61 = vsel %vm1365_vm2, %v1772_v26, %v3482_v46  ;;  %v1778_v46 = vsel %vm5672_vm10, %v4907_v24, 0.0  ;;  %v1780_v31 = vsel %vm5674_vm12, %v4918_v16, 0.0 }
 0x343   :  { %v2083_v15 = vsel %vm1390_vm3, %v2059_v57, %v3488_v11  ;;  %v2082_v18 = vsel %vm1390_vm3, %v2058_v42, %v3487_v38 }
 0x344   :  { %v2105_v22 = vpack.c.bf16 %v2083_v15, %v2082_v18  ;;  %v1779_v15 = vsel %vm5673_vm11, %v4900_v32, 0.0 }
 0x345   :  { %v3496_v33 = vpop.permute.xlu0 %3495  ;;  %v3491_v50 = vpop.permute.xlu1 %3490 }
 0x346   :  { %v3498_v56 = vunpack.i.h.bf16 %v3496_v33  ;;  %v3497_v47 = vunpack.i.l.bf16 %v3496_v33  ;;  %3275 = vmatmul.mubr.msk.bf16.vlgmr.msra.gmra.mrb[24].mxu1 %vm1469_vm4, %v2105_v22  ;;  %v3493_v3 = vunpack.i.h.bf16 %v3491_v50  ;;  %v3492_v43 = vunpack.i.l.bf16 %v3491_v50 }
 0x348   :  { %v2084_v60 = vsel %vm1390_vm3, %v2060_v61, %v3497_v47  ;;  %v2085_v29 = vsel %vm1390_vm3, %v2061_v51, %v3498_v56  ;;  %v2063_v54 = vsel %vm1365_vm2, %v1775_v14, %v3493_v3  ;;  %v2062_v6 = vsel %vm1365_vm2, %v1774_v5, %v3492_v43  ;;  %v5675_v56 = vld [vmem:[#allocation28_spill] sm:$0xff]  ;;  %v5679_v14 = vld [vmem:[#allocation30_spill] sm:$0xff] }
 0x349   :  { %v2106_v58 = vpack.c.bf16 %v2085_v29, %v2084_v60  ;;  %v3501_v19 = vpop.permute.xlu0 %3500  ;;  %vm5676_vm14 = vcmp.ge.s32.totalorder %v5675_v56, 0  ;;  %vm5680_vm13 = vcmp.ge.s32.totalorder %v5679_v14, 0  ;;  %v5689_v56 = vld [vmem:[#allocation24_spill] sm:$0xff] }
 0x34a   :  { %v3503_v36 = vunpack.i.h.bf16 %v3501_v19  ;;  %v3502_v17 = vunpack.i.l.bf16 %v3501_v19  ;;  %v1781_v47 = vsel %vm5676_vm14, %v4911_v23, 0.0  ;;  %vm5690_vm8 = vcmp.ge.s32.totalorder %v5689_v56, 0 }
 0x34b   :  { %3278 = vmatprep.mubr.msk.bf16.mxu1 %vm1469_vm4, %v2106_v58 }
 0x34c   :  { %v2065_v41 = vsel %vm1365_vm2, %v1777_v0, %v3503_v36  ;;  %v2064_v53 = vsel %vm1365_vm2, %v1776_v27, %v3502_v17  ;;  %v5681_v0 = vld [vmem:[#allocation31_spill] sm:$0xff] }
 0x34d   :  { %v3506_v10 = vpop.permute.xlu1 %3505  ;;  %vm5682_vm5 = vcmp.ge.s32.totalorder %v5681_v0, 0  ;;  %v5116_v0 = vld [vmem:[%s5405_s5] ss:$0 sm:$0xff] }
 0x34e   :  { %v3508_v63 = vunpack.i.h.bf16 %v3506_v10  ;;  %v3507_v62 = vunpack.i.l.bf16 %v3506_v10  ;;  %v5677_v10 = vld [vmem:[#allocation29_spill] sm:$0xff] }
 0x34f   :  { %vm5678_vm15 = vcmp.ge.s32.totalorder %v5677_v10, 0 }
 0x350   :  { %v3516_v21 = vpop.permute.xlu0 %3515  ;;  %v2086_v28 = vsel %vm1390_vm3, %v2062_v6, %v3507_v62  ;;  %v2087_v1 = vsel %vm1390_vm3, %v2063_v54, %v3508_v63  ;;  %v1782_v5 = vsel %vm5678_vm15, %v4932_v35, 0.0  ;;  %v1783_v63 = vsel %vm5680_vm13, %v4922_v20, 0.0 }
 0x351   :  { %v3518_v55 = vunpack.i.h.bf16 %v3516_v21  ;;  %v3517_v49 = vunpack.i.l.bf16 %v3516_v21  ;;  %v2107_v30 = vpack.c.bf16 %v2087_v1, %v2086_v28  ;;  %v3511_v34 = vpop.permute.xlu1 %3510  ;;  %v1784_v21 = vsel %vm5682_vm5, %v4942_v40, 0.0  ;;  %v5683_v28 = vld [vmem:[#allocation32_spill] sm:$0xff] }
 0x352   :  { %v3513_v7 = vunpack.i.h.bf16 %v3511_v34  ;;  %v3512_v38 = vunpack.i.l.bf16 %v3511_v34  ;;  %vm5684_vm1 = vcmp.ge.s32.totalorder %v5683_v28, 0  ;;  %vm2649_vm13 = vcmask 1041409  }
 0x353   :  { %v2088_v2 = vsel %vm1390_vm3, %v2064_v53, %v3517_v49  ;;  %v2089_v39 = vsel %vm1390_vm3, %v2065_v41, %v3518_v55  ;;  %3279 = vmatmul.mubr.msk.bf16.gmra.mrb[28].mxu1 %vm1469_vm4, %v2107_v30  ;;  %v1785_v1 = vsel %vm5684_vm1, %v4936_v37, 0.0  ;;  %vm2651_vm5 = vcmask 1042434  }
 0x354   :  { %v2108_v11 = vpack.c.bf16 %v2089_v39, %v2088_v2  ;;  %v3521_v4 = vpop.permute.xlu0 %3520  ;;  %v2067_v33 = vsel %vm1365_vm2, %v1779_v15, %v3513_v7  ;;  %v2066_v26 = vsel %vm1365_vm2, %v1778_v46, %v3512_v38  ;;  %v5687_v15 = vld [vmem:[#allocation16_spill] sm:$0xff] }
 0x355   :  { %v3523_v42 = vunpack.i.h.bf16 %v3521_v4  ;;  %v3522_v57 = vunpack.i.l.bf16 %v3521_v4  ;;  %vm5688_vm7 = vcmp.ge.s32.totalorder %v5687_v15, 0 }
 0x356   :  { %3282 = vmatprep.mubr.msk.bf16.mxu1 %vm1469_vm4, %v2108_v11 }
 0x357   :  { %v3526_v52 = vpop.permute.xlu1 %3525  ;;  %v2069_v61 = vsel %vm1365_vm2, %v1781_v47, %v3523_v42  ;;  %v2068_v50 = vsel %vm1365_vm2, %v1780_v31, %v3522_v57  ;;  %v1788_v47 = vsel %vm5690_vm8, %v4958_v8, 0.0 }
 0x358   :  { %v3528_v18 = vunpack.i.h.bf16 %v3526_v52  ;;  %v3527_v22 = vunpack.i.l.bf16 %v3526_v52  ;;  %v5685_v52 = vld [vmem:[#allocation20_spill] sm:$0xff] }
 0x359   :  { %vm5686_vm6 = vcmp.ge.s32.totalorder %v5685_v52, 0 }
 0x35a   :  { %v3536_v9 = vpop.permute.xlu0 %3535  ;;  %v2090_v24 = vsel %vm1390_vm3, %v2066_v26, %v3527_v22  ;;  %v2091_v45 = vsel %vm1390_vm3, %v2067_v33, %v3528_v18  ;;  %v1786_v46 = vsel %vm5686_vm6, %v4950_v48, 0.0  ;;  %v1787_v18 = vsel %vm5688_vm7, %v4946_v59, 0.0 }
 0x35b   :  { %v3538_v32 = vunpack.i.h.bf16 %v3536_v9  ;;  %v3537_v51 = vunpack.i.l.bf16 %v3536_v9  ;;  %v2109_v60 = vpack.c.bf16 %v2091_v45, %v2090_v24  ;;  %v3531_v29 = vpop.permute.xlu1 %3530  ;;  %v5691_v9 = vld [vmem:[#allocation33_spill] sm:$0xff] }
 0x35c   :  { %v3533_v23 = vunpack.i.h.bf16 %v3531_v29  ;;  %v3532_v3 = vunpack.i.l.bf16 %v3531_v29  ;;  %vm5692_vm9 = vcmp.ge.s32.totalorder %v5691_v9, 0 }
 0x35d   :  { %v2092_v13 = vsel %vm1390_vm3, %v2068_v50, %v3537_v51  ;;  %v2093_v16 = vsel %vm1390_vm3, %v2069_v61, %v3538_v32  ;;  %3283 = vmatmul.mubr.msk.bf16.gmra.mrb[32].mxu1 %vm1469_vm4, %v2109_v60  ;;  %v1789_v24 = vsel %vm5692_vm9, %v4954_v12, 0.0 }
 0x35e   :  { %v2110_v58 = vpack.c.bf16 %v2093_v16, %v2092_v13  ;;  %v3541_v19 = vpop.permute.xlu0 %3540  ;;  %v2071_v6 = vsel %vm1365_vm2, %v1783_v63, %v3533_v23  ;;  %v2070_v27 = vsel %vm1365_vm2, %v1782_v5, %v3532_v3  ;;  %v5693_v23 = vld [vmem:[#allocation26_spill] sm:$0xff] }
 0x35f   :  { %v3543_v43 = vunpack.i.h.bf16 %v3541_v19  ;;  %v3542_v36 = vunpack.i.l.bf16 %v3541_v19  ;;  %vm5694_vm0 = vcmp.ge.s32.totalorder %v5693_v23, 0 }
 0x360   :  { %3286 = vmatprep.mubr.msk.bf16.mxu1 %vm1469_vm4, %v2110_v58  ;;  %v3546_v17 = vpop.permute.xlu1 %3545  ;;  %v1790_v3 = vsel %vm5694_vm0, %v4968_v25, 0.0  ;;  %v3606_v25 = vld [vmem:[%s5403_s8 + $0x10] sm:$0xff]  }
 0x361   :  { %v3548_v62 = vunpack.i.h.bf16 %v3546_v17  ;;  %v3547_v54 = vunpack.i.l.bf16 %v3546_v17  ;;  %v2073_v53 = vsel %vm1365_vm2, %v1785_v1, %v3543_v43  ;;  %v2072_v30 = vsel %vm1365_vm2, %v1784_v21, %v3542_v36  ;;  %v5695_v43 = vld [vmem:[#allocation25_spill] sm:$0xff]  ;;  %3312 = vmatprep.subr.bf16.mxu0 %v3606_v25 }
 0x362   :  { %vm5696_vm10 = vcmp.ge.s32.totalorder %v5695_v43, 0  ;;  %3313 = vmatpush3.bf16.msra.mxu0 %v3606_v25 }
 0x363   :  { %v3556_v55 = vpop.permute.xlu0 %3555  ;;  %v2094_v35 = vsel %vm1390_vm3, %v2070_v27, %v3547_v54  ;;  %v2095_v49 = vsel %vm1390_vm3, %v2071_v6, %v3548_v62  ;;  %v1791_v36 = vsel %vm5696_vm10, %v4964_v44, 0.0  ;;  %v3607_v44 = vld [vmem:[%s5404_s6] sm:$0xff]   ;;  %v3608_v6 = vld [vmem:[%s5404_s6 + $0x8] sm:$0xff]   ;;  %v3609_v27 = vld [vmem:[%s5404_s6 + $0x10] sm:$0xff]  }
 0x364   :  { %v3558_v20 = vunpack.i.h.bf16 %v3556_v55  ;;  %v3557_v41 = vunpack.i.l.bf16 %v3556_v55  ;;  %v2111_v34 = vpack.c.bf16 %v2095_v49, %v2094_v35  ;;  %v3551_v2 = vpop.permute.xlu1 %3550  ;;  %3298 = vmatprep.subr.bf16.mxu1 %v3607_v44 }
 0x365   :  { %v3553_v4 = vunpack.i.h.bf16 %v3551_v2  ;;  %v3552_v37 = vunpack.i.l.bf16 %v3551_v2  ;;  %3299 = vmatpush3.bf16.msra.mxu1 %v3607_v44 }
 0x366   :  { %v2096_v39 = vsel %vm1390_vm3, %v2072_v30, %v3557_v41  ;;  %v2097_v40 = vsel %vm1390_vm3, %v2073_v53, %v3558_v20  ;;  %3287 = vmatmul.mubr.msk.bf16.gmra.mrb[36].mxu1 %vm1469_vm4, %v2111_v34  ;;  %3300 = vmatprep.subr.bf16.mxu1 %v3608_v6 }
 0x367   :  { %v2112_v11 = vpack.c.bf16 %v2097_v40, %v2096_v39  ;;  %v3561_v7 = vpop.permute.xlu0 %3560  ;;  %v2075_v26 = vsel %vm1365_vm2, %v1787_v18, %v3553_v4  ;;  %v2074_v31 = vsel %vm1365_vm2, %v1786_v46, %v3552_v37 }
 0x368   :  { %v3563_v38 = vunpack.i.h.bf16 %v3561_v7  ;;  %v3562_v42 = vunpack.i.l.bf16 %v3561_v7  ;;  %v3566_v57 = vpop.permute.xlu1 %3565 }
 0x369   :  { %3290 = vmatprep.mubr.msk.bf16.mxu1 %vm1469_vm4, %v2112_v11  ;;  %v3568_v22 = vunpack.i.h.bf16 %v3566_v57  ;;  %v3567_v33 = vunpack.i.l.bf16 %v3566_v57  ;;  %3301 = vmatpush3.bf16.msra.mxu1 %v3608_v6 }
 0x36a   :  { %v2077_v61 = vsel %vm1365_vm2, %v1789_v24, %v3563_v38  ;;  %v2076_v50 = vsel %vm1365_vm2, %v1788_v47, %v3562_v42  ;;  %3302 = vmatprep.subr.bf16.mxu1 %v3609_v27 }
 0x36b   :  { %v3576_v45 = vpop.permute.xlu0 %3575  ;;  %v2098_v48 = vsel %vm1390_vm3, %v2074_v31, %v3567_v33  ;;  %v2099_v32 = vsel %vm1390_vm3, %v2075_v26, %v3568_v22 }
 0x36c   :  { %v3578_v59 = vunpack.i.h.bf16 %v3576_v45  ;;  %v3577_v51 = vunpack.i.l.bf16 %v3576_v45  ;;  %v2113_v60 = vpack.c.bf16 %v2099_v32, %v2098_v48  ;;  %v3571_v29 = vpop.permute.xlu1 %3570 }
 0x36d   :  { %v3573_v58 = vunpack.i.h.bf16 %v3571_v29  ;;  %v3572_v12 = vunpack.i.l.bf16 %v3571_v29  ;;  %3303 = vmatpush3.bf16.msra.mxu1 %v3609_v27 }
 0x36e   :  { %v2100_v13 = vsel %vm1390_vm3, %v2076_v50, %v3577_v51  ;;  %v2101_v8 = vsel %vm1390_vm3, %v2077_v61, %v3578_v59  ;;  %3291 = vmatmul.mubr.msk.bf16.gmra.mrb[40].mxu1 %vm1469_vm4, %v2113_v60 }
 0x36f   :  { %v2114_v16 = vpack.c.bf16 %v2101_v8, %v2100_v13  ;;  %v2079_v5 = vsel %vm1365_vm2, %v1791_v36, %v3573_v58  ;;  %v2078_v14 = vsel %vm1365_vm2, %v1790_v3, %v3572_v12  ;;  %vm2395_vm2 = vcmask 392192  }
 0x370   :  { %v3581_v19 = vpop.permute.xlu1 %3580 }
 0x371   :  { %3294 = vmatprep.mubr.msk.bf16.mxu1 %vm1469_vm4, %v2114_v16  ;;  %v3583_v17 = vunpack.i.h.bf16 %v3581_v19  ;;  %v3582_v10 = vunpack.i.l.bf16 %v3581_v19 }
 0x373   :  { %v2103_v63 = vsel %vm1390_vm3, %v2079_v5, %v3583_v17  ;;  %v2102_v62 = vsel %vm1390_vm3, %v2078_v14, %v3582_v10 }
 0x374   :  { %v2115_v54 = vpack.c.bf16 %v2103_v63, %v2102_v62 }
 0x376   :  { %3295 = vmatmul.mubr.msk.bf16.gmra.mrb[44].mxu1 %vm1469_vm4, %v2115_v54 }
 0x419   :  { %v3276_v21 = vpop.f32.mrb[24].mxu1 }
 0x41a   :  { %v2237_v28 = vadd.f32 %v3276_v21, %v5116_v0  ;;  %v2228_v1 = vpop.f32.mrb[25].mxu1 }
 0x41b   :  { %v2229_v55 = vadd.f32 %v5116_v0, %v2228_v1  ;;  %v3277_v35 = vpop.f32.mrb[26].mxu1 }
 0x41c   :  { %vm2325_vm4 = vcmp.ge.f32.partialorder %v2237_v28, 0.0  ;;  %v2349_v49 = vmul.f32 0.22916667, %v2237_v28  ;;  %v2240_v20 = vadd.f32 %v3277_v35, %v5116_v0  ;;  %v2231_v41 = vpop.f32.mrb[27].mxu1 }
 0x41d   :  { %vm2323_vm3 = vcmp.ge.f32.partialorder %v2229_v55, 0.0  ;;  %v2347_v53 = vmul.f32 0.22916667, %v2229_v55  ;;  %v2232_v30 = vadd.f32 %v5116_v0, %v2231_v41 }
 0x41e   :  { %v2373_v34 = vsel %vm2325_vm4, %v2237_v28, %v2349_v49  ;;  %vm2326_vm11 = vcmp.ge.f32.partialorder %v2240_v20, 0.0  ;;  %v2350_v2 = vmul.f32 0.22916667, %v2240_v20 }
 0x41f   :  { %v2410_v39 = vsel %vm2395_vm2, %v2373_v34, -inf  ;;  %v2371_v40 = vsel %vm2323_vm3, %v2229_v55, %v2347_v53  ;;  %vm2324_vm12 = vcmp.ge.f32.partialorder %v2232_v30, 0.0  ;;  %v2348_v11 = vmul.f32 0.22916667, %v2232_v30 }
 0x420   :  { %v2411_v4 = vrot.slane %v2410_v39, 4  ;;  %v2396_v37 = vsel %vm2395_vm2, %v2371_v40, -inf  ;;  %v2374_v7 = vsel %vm2326_vm11, %v2240_v20, %v2350_v2 }
 0x421   :  { %v2397_v38 = vrot.slane %v2396_v37, 4  ;;  %v2417_v42 = vsel %vm2395_vm2, %v2374_v7, -inf  ;;  %v2755_v57 = vpack.c.bf16 %v2374_v7, %v2373_v34  ;;  %v2372_v52 = vsel %vm2324_vm12, %v2232_v30, %v2348_v11 }
 0x422   :  { %v2412_v46 = vmax.f32 %v2410_v39, %v2411_v4  ;;  %v2418_v15 = vrot.slane %v2417_v42, 4  ;;  %v2403_v18 = vsel %vm2395_vm2, %v2372_v52, -inf  ;;  %v2754_v22 = vpack.c.bf16 %v2372_v52, %v2371_v40 }
 0x423   :  { %v2398_v33 = vmax.f32 %v2396_v37, %v2397_v38  ;;  %v2404_v26 = vrot.slane %v2403_v18, 4 }
 0x424   :  { %v2413_v31 = vrot.slane %v2412_v46, 2  ;;  %v2419_v56 = vmax.f32 %v2417_v42, %v2418_v15  ;;  %3314 = vmatprep.mubr.msk.bf16.mxu0 %vm2395_vm2, %v2754_v22 }
 0x425   :  { %v2399_v47 = vrot.slane %v2398_v33, 2  ;;  %v2405_v9 = vmax.f32 %v2403_v18, %v2404_v26  ;;  %3315 = vmatmul.mubr.msk.bf16.vlgmr.msra.gmra.mrb[24].mxu0 %vm2395_vm2, %v2755_v57 }
 0x426   :  { %v2414_v24 = vmax.f32 %v2412_v46, %v2413_v31  ;;  %v2420_v45 = vrot.slane %v2419_v56, 2  ;;  %v3280_v48 = vpop.f32.mrb[28].mxu1 }
 0x427   :  { %v2400_v32 = vmax.f32 %v2398_v33, %v2399_v47  ;;  %v2406_v59 = vrot.slane %v2405_v9, 2  ;;  %v2253_v51 = vadd.f32 %v3280_v48, %v5116_v0  ;;  %v2244_v61 = vpop.f32.mrb[29].mxu1 }
 0x428   :  { %v2415_v50 = vrot.slane %v2414_v24, 1  ;;  %v2245_v60 = vadd.f32 %v5116_v0, %v2244_v61  ;;  %v3281_v29 = vpop.f32.mrb[30].mxu1  ;;  %v2421_v19 = vmax.f32 %v2419_v56, %v2420_v45 }
 0x429   :  { %v2401_v13 = vrot.slane %v2400_v32, 1  ;;  %v2407_v8 = vmax.f32 %v2405_v9, %v2406_v59  ;;  %vm2329_vm14 = vcmp.ge.f32.partialorder %v2253_v51, 0.0  ;;  %v2353_v16 = vmul.f32 0.22916667, %v2253_v51  ;;  %v2247_v58 = vpop.f32.mrb[31].mxu1 }
 0x42a   :  { %v2416_v12 = vmax.f32 %v2414_v24, %v2415_v50  ;;  %vm2327_vm15 = vcmp.ge.f32.partialorder %v2245_v60, 0.0  ;;  %v2351_v23 = vmul.f32 0.22916667, %v2245_v60  ;;  %v2256_v17 = vadd.f32 %v3281_v29, %v5116_v0 }
 0x42b   :  { %v2402_v3 = vmax.f32 %v2400_v32, %v2401_v13  ;;  %v2408_v43 = vrot.slane %v2407_v8, 1  ;;  %v5130_v36 = vsel %vm2329_vm14, %v2253_v51, %v2353_v16  ;;  %v2422_v44 = vrot.slane %v2421_v19, 1 }
 0x42c   :  { %v2566_v10 = vpack.c.bf16 %v2416_v12, %v2416_v12  ;;  %v2438_v5 = vsel %vm2395_vm2, %v5130_v36, -inf  ;;  %v2375_v14 = vsel %vm2327_vm15, %v2245_v60, %v2351_v23  ;;  %vm2330_vm1 = vcmp.ge.f32.partialorder %v2256_v17, 0.0 }
 0x42d   :  { %v2564_v63 = vpack.c.bf16 %v2402_v3, %v2402_v3  ;;  %v2409_v62 = vmax.f32 %v2407_v8, %v2408_v43  ;;  %v2439_v54 = vrot.slane %v2438_v5, 4  ;;  %v2424_v25 = vsel %vm2395_vm2, %v2375_v14, -inf }
 0x42e   :  { %v2425_v6 = vrot.slane %v2424_v25, 4  ;;  %v2627_v27 = vunpack.c.l.b16 %v2566_v10  ;;  %v2354_v1 = vmul.f32 0.22916667, %v2256_v17  ;;  %v2248_v20 = vadd.f32 %v5116_v0, %v2247_v58 }
 0x42f   :  { %v2565_v21 = vpack.c.bf16 %v2409_v62, %v2409_v62  ;;  %v2440_v28 = vmax.f32 %v2438_v5, %v2439_v54  ;;  %v2625_v35 = vunpack.c.l.b16 %v2564_v63  ;;  %v2423_v46 = vmax.f32 %v2421_v19, %v2422_v44 }
 0x430   :  { %v3284_v55 = vpop.f32.mrb[32].mxu1  ;;  %v2426_v49 = vmax.f32 %v2424_v25, %v2425_v6  ;;  %v2378_v2 = vsel %vm2330_vm1, %v2256_v17, %v2354_v1  ;;  %vm2328_vm6 = vcmp.ge.f32.partialorder %v2248_v20, 0.0  ;;  %v2352_v52 = vmul.f32 0.22916667, %v2248_v20 }
 0x431   :  { %v2269_v41 = vadd.f32 %v3284_v55, %v5116_v0  ;;  %v2260_v53 = vpop.f32.mrb[33].mxu1  ;;  %v2626_v30 = vunpack.c.l.b16 %v2565_v21  ;;  %v2441_v34 = vrot.slane %v2440_v28, 2  ;;  %v2445_v4 = vsel %vm2395_vm2, %v2378_v2, -inf }
 0x432   :  { %v2261_v39 = vadd.f32 %v5116_v0, %v2260_v53  ;;  %v3285_v40 = vpop.f32.mrb[34].mxu1  ;;  %v2427_v11 = vrot.slane %v2426_v49, 2  ;;  %v2757_v37 = vpack.c.bf16 %v2378_v2, %v5130_v36  ;;  %v2446_v57 = vrot.slane %v2445_v4, 4 }
 0x433   :  { %v2263_v7 = vpop.f32.mrb[35].mxu1  ;;  %v2650_v38 = vsel %vm2649_vm13, %v2626_v30, %v2625_v35  ;;  %v2442_v42 = vmax.f32 %v2440_v28, %v2441_v34  ;;  %vm2333_vm7 = vcmp.ge.f32.partialorder %v2269_v41, 0.0  ;;  %v2357_v18 = vmul.f32 0.22916667, %v2269_v41 }
 0x434   :  { %v5143_v15 = vsel %vm2651_vm5, %v2627_v27, %v2650_v38  ;;  %v2428_v22 = vmax.f32 %v2426_v49, %v2427_v11  ;;  %v2447_v33 = vmax.f32 %v2445_v4, %v2446_v57  ;;  %v2376_v26 = vsel %vm2328_vm6, %v2248_v20, %v2352_v52 }
 0x435   :  { %v2443_v31 = vrot.slane %v2442_v42, 1  ;;  %v2431_v56 = vsel %vm2395_vm2, %v2376_v26, -inf  ;;  %v2756_v47 = vpack.c.bf16 %v2376_v26, %v2375_v14  ;;  %v5146_v9 = vsel %vm2333_vm7, %v2269_v41, %v2357_v18 }
 0x436   :  { %v2432_v24 = vrot.slane %v2431_v56, 4  ;;  %v2466_v45 = vsel %vm2395_vm2, %v5146_v9, -inf  ;;  %vm2331_vm8 = vcmp.ge.f32.partialorder %v2261_v39, 0.0  ;;  %v2567_v48 = vpack.c.bf16 %v2423_v46, %v2423_v46 }
 0x437   :  { %v2467_v32 = vrot.slane %v2466_v45, 4  ;;  %v2355_v59 = vmul.f32 0.22916667, %v2261_v39  ;;  %v2272_v51 = vadd.f32 %v3285_v40, %v5116_v0  ;;  %3318 = vmatprep.mubr.msk.bf16.mxu0 %vm2395_vm2, %v2756_v47  ;;  %v2429_v50 = vrot.slane %v2428_v22, 1 }
 0x438   :  { %v2448_v60 = vrot.slane %v2447_v33, 2  ;;  %v2433_v29 = vmax.f32 %v2431_v56, %v2432_v24  ;;  %v2264_v13 = vadd.f32 %v5116_v0, %v2263_v7  ;;  %3319 = vmatmul.mubr.msk.bf16.gmra.mrb[28].mxu0 %vm2395_vm2, %v2757_v37  ;;  %v2444_v16 = vmax.f32 %v2442_v42, %v2443_v31 }
 0x439   :  { %v3288_v61 = vpop.f32.mrb[36].mxu1  ;;  %v2468_v58 = vmax.f32 %v2466_v45, %v2467_v32  ;;  %v2379_v12 = vsel %vm2331_vm8, %v2261_v39, %v2355_v59  ;;  %vm2334_vm9 = vcmp.ge.f32.partialorder %v2272_v51, 0.0  ;;  %v5155_v36 = vunpack.c.l.b16 %v2567_v48 }
 0x43a   :  { %v2276_v8 = vpop.f32.mrb[37].mxu1  ;;  %v2434_v23 = vrot.slane %v2433_v29, 2  ;;  %v2452_v3 = vsel %vm2395_vm2, %v2379_v12, -inf  ;;  %v2358_v5 = vmul.f32 0.22916667, %v2272_v51  ;;  %v5157_v14 = vmax.f32 %v2428_v22, %v2429_v50 }
 0x43b   :  { %v3289_v19 = vpop.f32.mrb[38].mxu1  ;;  %v2469_v17 = vrot.slane %v2468_v58, 2  ;;  %v2453_v10 = vrot.slane %v2452_v3, 4  ;;  %v2449_v63 = vmax.f32 %v2447_v33, %v2448_v60  ;;  %vm2332_vm0 = vcmp.ge.f32.partialorder %v2264_v13, 0.0 }
 0x43c   :  { %v2279_v43 = vpop.f32.mrb[39].mxu1  ;;  %v2356_v62 = vmul.f32 0.22916667, %v2264_v13  ;;  %v2570_v54 = vpack.c.bf16 %v2444_v16, %v2444_v16  ;;  %v2382_v6 = vsel %vm2334_vm9, %v2272_v51, %v2358_v5  ;;  %v2435_v27 = vmax.f32 %v2433_v29, %v2434_v23 }
 0x43d   :  { %v2470_v25 = vmax.f32 %v2468_v58, %v2469_v17  ;;  %v2454_v44 = vmax.f32 %v2452_v3, %v2453_v10  ;;  %v2473_v21 = vsel %vm2395_vm2, %v2382_v6, -inf  ;;  %v2759_v28 = vpack.c.bf16 %v2382_v6, %v5146_v9 }
 0x43e   :  { %v2285_v1 = vadd.f32 %v3288_v61, %v5116_v0  ;;  %v2474_v49 = vrot.slane %v2473_v21, 4  ;;  %v2380_v20 = vsel %vm2332_vm0, %v2264_v13, %v2356_v62  ;;  %v2568_v53 = vpack.c.bf16 %v5157_v14, %v5157_v14 }
 0x43f   :  { %v2471_v55 = vrot.slane %v2470_v25, 1  ;;  %v2455_v35 = vrot.slane %v2454_v44, 2  ;;  %v2450_v30 = vrot.slane %v2449_v63, 1  ;;  %v2459_v34 = vsel %vm2395_vm2, %v2380_v20, -inf }
 0x440   :  { %v2758_v2 = vpack.c.bf16 %v2380_v20, %v2379_v12  ;;  %v2475_v4 = vmax.f32 %v2473_v21, %v2474_v49  ;;  %v2460_v37 = vrot.slane %v2459_v34, 4  ;;  %v5169_v38 = vunpack.c.l.b16 %v2570_v54 }
 0x441   :  { %v3292_v41 = vpop.f32.mrb[40].mxu1  ;;  %v2472_v40 = vmax.f32 %v2470_v25, %v2471_v55  ;;  %v2456_v11 = vmax.f32 %v2454_v44, %v2455_v35  ;;  %vm2337_vm10 = vcmp.ge.f32.partialorder %v2285_v1, 0.0  ;;  %v2361_v42 = vmul.f32 0.22916667, %v2285_v1 }
 0x442   :  { %v5165_v39 = vpop.f32.mrb[41].mxu1  ;;  %v2277_v57 = vadd.f32 %v5116_v0, %v2276_v8  ;;  %3322 = vmatprep.mubr.msk.bf16.mxu0 %vm2395_vm2, %v2758_v2  ;;  %v2436_v46 = vrot.slane %v2435_v27, 1  ;;  %v2476_v22 = vrot.slane %v2475_v4, 2  ;;  %v2461_v33 = vmax.f32 %v2459_v34, %v2460_v37 }
 0x443   :  { %v5167_v7 = vpop.f32.mrb[42].mxu1  ;;  %v2457_v18 = vrot.slane %v2456_v11, 1  ;;  %3323 = vmatmul.mubr.msk.bf16.gmra.mrb[32].mxu0 %vm2395_vm2, %v2759_v28  ;;  %v2574_v26 = vpack.c.bf16 %v2472_v40, %v2472_v40  ;;  %v2385_v31 = vsel %vm2337_vm10, %v2285_v1, %v2361_v42  ;;  %v5176_v47 = vmax.f32 %v2449_v63, %v2450_v30 }
 0x444   :  { %v5173_v52 = vpop.f32.mrb[43].mxu1  ;;  %vm2335_vm4 = vcmp.ge.f32.partialorder %v2277_v57, 0.0  ;;  %v2359_v56 = vmul.f32 0.22916667, %v2277_v57  ;;  %v2477_v24 = vmax.f32 %v2475_v4, %v2476_v22  ;;  %v2462_v45 = vrot.slane %v2461_v33, 2 }
 0x445   :  { %v2458_v9 = vmax.f32 %v2456_v11, %v2457_v18  ;;  %v2494_v48 = vsel %vm2395_vm2, %v2385_v31, -inf  ;;  %v2288_v59 = vadd.f32 %v3289_v19, %v5116_v0  ;;  %v2280_v51 = vadd.f32 %v5116_v0, %v2279_v43 }
 0x446   :  { %v2383_v32 = vsel %vm2335_vm4, %v2277_v57, %v2359_v56  ;;  %v5181_v61 = vmax.f32 %v2435_v27, %v2436_v46  ;;  %v2463_v60 = vmax.f32 %v2461_v33, %v2462_v45  ;;  %v2495_v29 = vrot.slane %v2494_v48, 4 }
 0x447   :  { %v2572_v50 = vpack.c.bf16 %v2458_v9, %v2458_v9  ;;  %v2635_v8 = vunpack.c.l.b16 %v2574_v26  ;;  %v2480_v16 = vsel %vm2395_vm2, %v2383_v32, -inf  ;;  %vm2338_vm3 = vcmp.ge.f32.partialorder %v2288_v59, 0.0 }
 0x448   :  { %v2362_v58 = vmul.f32 0.22916667, %v2288_v59  ;;  %v2478_v23 = vrot.slane %v2477_v24, 1  ;;  %v2464_v3 = vrot.slane %v2463_v60, 1  ;;  %v2496_v17 = vmax.f32 %v2494_v48, %v2495_v29 }
 0x449   :  { %v5183_v13 = vpop.f32.mrb[44].mxu1  ;;  %vm2336_vm11 = vcmp.ge.f32.partialorder %v2280_v51, 0.0  ;;  %v2633_v43 = vunpack.c.l.b16 %v2572_v50  ;;  %v2481_v10 = vrot.slane %v2480_v16, 4  ;;  %v2360_v63 = vmul.f32 0.22916667, %v2280_v51 }
 0x44a   :  { %v5186_v12 = vpop.f32.mrb[45].mxu1  ;;  %v2386_v5 = vsel %vm2338_vm3, %v2288_v59, %v2362_v58  ;;  %v2465_v54 = vmax.f32 %v2463_v60, %v2464_v3  ;;  %v2497_v25 = vrot.slane %v2496_v17, 2  ;;  %v2301_v6 = vadd.f32 %v3292_v41, %v5116_v0 }
 0x44b   :  { %v5188_v19 = vpop.f32.mrb[46].mxu1  ;;  %v2501_v44 = vsel %vm2395_vm2, %v2386_v5, -inf  ;;  %v2482_v27 = vmax.f32 %v2480_v16, %v2481_v10  ;;  %v2761_v28 = vpack.c.bf16 %v2386_v5, %v2385_v31  ;;  %v2384_v1 = vsel %vm2336_vm11, %v2280_v51, %v2360_v63 }
 0x44c   :  { %v5190_v62 = vpop.f32.mrb[47].mxu1  ;;  %v2502_v21 = vrot.slane %v2501_v44, 4  ;;  %v2479_v55 = vmax.f32 %v2477_v24, %v2478_v23  ;;  %v2573_v35 = vpack.c.bf16 %v2465_v54, %v2465_v54  ;;  %v2498_v49 = vmax.f32 %v2496_v17, %v2497_v25 }
 0x44d   :  { %v2487_v20 = vsel %vm2395_vm2, %v2384_v1, -inf  ;;  %v2483_v30 = vrot.slane %v2482_v27, 2  ;;  %v2760_v40 = vpack.c.bf16 %v2384_v1, %v2383_v32  ;;  %vm2341_vm12 = vcmp.ge.f32.partialorder %v2301_v6, 0.0 }
 0x44e   :  { %v2503_v34 = vmax.f32 %v2501_v44, %v2502_v21  ;;  %v2488_v2 = vrot.slane %v2487_v20, 4  ;;  %v2634_v11 = vunpack.c.l.b16 %v2573_v35  ;;  %v2499_v4 = vrot.slane %v2498_v49, 1 }
 0x44f   :  { %v2365_v37 = vmul.f32 0.22916667, %v2301_v6  ;;  %v2484_v42 = vmax.f32 %v2482_v27, %v2483_v30  ;;  %v2293_v46 = vadd.f32 %v5116_v0, %v5165_v39  ;;  %3326 = vmatprep.mubr.msk.bf16.mxu0 %vm2395_vm2, %v2760_v40  ;;  %v2304_v26 = vadd.f32 %v5167_v7, %v5116_v0 }
 0x450   :  { %v2504_v57 = vrot.slane %v2503_v34, 2  ;;  %v2489_v41 = vmax.f32 %v2487_v20, %v2488_v2  ;;  %v2663_v18 = vsel %vm2649_vm13, %v2634_v11, %v2633_v43  ;;  %v2500_v22 = vmax.f32 %v2498_v49, %v2499_v4  ;;  %3327 = vmatmul.mubr.msk.bf16.gmra.mrb[36].mxu0 %vm2395_vm2, %v2761_v28 }
 0x451   :  { %v5199_v33 = vsel %vm2341_vm12, %v2301_v6, %v2365_v37  ;;  %v2571_v31 = vpack.c.bf16 %v5176_v47, %v5176_v47  ;;  %v5207_v56 = vsel %vm2651_vm5, %v2635_v8, %v2663_v18  ;;  %v2485_v9 = vrot.slane %v2484_v42, 1 }
 0x452   :  { %v2490_v39 = vrot.slane %v2489_v41, 2  ;;  %v5212_v24 = vunpack.c.l.b16 %v2568_v53  ;;  %v2522_v45 = vsel %vm2395_vm2, %v5199_v33, -inf  ;;  %vm2339_vm14 = vcmp.ge.f32.partialorder %v2293_v46, 0.0 }
 0x453   :  { %v2363_v7 = vmul.f32 0.22916667, %v2293_v46  ;;  %v2569_v48 = vpack.c.bf16 %v5181_v61, %v5181_v61  ;;  %v2575_v32 = vpack.c.bf16 %v2479_v55, %v2479_v55  ;;  %v2505_v47 = vmax.f32 %v2503_v34, %v2504_v57 }
 0x454   :  { %v2523_v59 = vrot.slane %v2522_v45, 4  ;;  %v2578_v51 = vpack.c.bf16 %v2500_v22, %v2500_v22  ;;  %vm2342_vm15 = vcmp.ge.f32.partialorder %v2304_v26, 0.0  ;;  %v2366_v60 = vmul.f32 0.22916667, %v2304_v26 }
 0x455   :  { %v2387_v50 = vsel %vm2339_vm14, %v2293_v46, %v2363_v7  ;;  %v5218_v29 = vunpack.c.l.b16 %v2571_v31  ;;  %v2486_v14 = vmax.f32 %v2484_v42, %v2485_v9  ;;  %v2491_v53 = vmax.f32 %v2489_v41, %v2490_v39 }
 0x456   :  { %v2524_v8 = vmax.f32 %v2522_v45, %v2523_v59  ;;  %v2508_v16 = vsel %vm2395_vm2, %v2387_v50, -inf  ;;  %v2390_v58 = vsel %vm2342_vm15, %v2304_v26, %v2366_v60  ;;  %v2296_v23 = vadd.f32 %v5116_v0, %v5173_v52 }
 0x457   :  { %v2317_v61 = vadd.f32 %v5183_v13, %v5116_v0  ;;  %v5225_v3 = vunpack.c.l.b16 %v2569_v48  ;;  %v5227_v17 = vunpack.c.l.b16 %v2575_v32  ;;  %v2506_v43 = vrot.slane %v2505_v47, 1 }
 0x458   :  { %v2525_v10 = vrot.slane %v2524_v8, 2  ;;  %v5229_v5 = vunpack.c.l.b16 %v2578_v51  ;;  %v2509_v63 = vrot.slane %v2508_v16, 4  ;;  %v2529_v54 = vsel %vm2395_vm2, %v2390_v58, -inf }
 0x459   :  { %v2763_v25 = vpack.c.bf16 %v2390_v58, %v5199_v33  ;;  %v2576_v44 = vpack.c.bf16 %v2486_v14, %v2486_v14  ;;  %v2492_v6 = vrot.slane %v2491_v53, 1  ;;  %v2530_v27 = vrot.slane %v2529_v54, 4 }
 0x45a   :  { %vm2340_vm1 = vcmp.ge.f32.partialorder %v2296_v23, 0.0  ;;  %v2510_v52 = vmax.f32 %v2508_v16, %v2509_v63  ;;  %v2364_v21 = vmul.f32 0.22916667, %v2296_v23  ;;  %vm2345_vm6 = vcmp.ge.f32.partialorder %v2317_v61, 0.0 }
 0x45b   :  { %v2369_v13 = vmul.f32 0.22916667, %v2317_v61  ;;  %v5233_v28 = vmax.f32 %v2505_v47, %v2506_v43  ;;  %v2526_v1 = vmax.f32 %v2524_v8, %v2525_v10  ;;  %v2531_v55 = vmax.f32 %v2529_v54, %v2530_v27 }
 0x45c   :  { %v2309_v35 = vadd.f32 %v5116_v0, %v5186_v12  ;;  %vm2653_vm7 = vcmask 1043459   ;;  %v2511_v49 = vrot.slane %v2510_v52, 2  ;;  %v2388_v20 = vsel %vm2340_vm1, %v2296_v23, %v2364_v21 }
 0x45d   :  { %v5237_v30 = vsel %vm2345_vm6, %v2317_v61, %v2369_v13  ;;  %v2320_v34 = vadd.f32 %v5188_v19, %v5116_v0  ;;  %v2493_v2 = vmax.f32 %v2491_v53, %v2492_v6  ;;  %v2532_v40 = vrot.slane %v2531_v55, 2 }
 0x45e   :  { %v2515_v11 = vsel %vm2395_vm2, %v2388_v20, -inf  ;;  %v2762_v4 = vpack.c.bf16 %v2388_v20, %v2387_v50  ;;  %vm2655_vm8 = vcmask 1044484   ;;  %v2512_v37 = vmax.f32 %v2510_v52, %v2511_v49 }
 0x45f   :  { %v2516_v42 = vrot.slane %v2515_v11, 4  ;;  %v2550_v57 = vsel %vm2395_vm2, %v5237_v30, -inf  ;;  %vm2343_vm9 = vcmp.ge.f32.partialorder %v2309_v35, 0.0  ;;  %vm2657_vm0 = vcmask 1045509  }
 0x460   :  { %v2527_v12 = vrot.slane %v2526_v1, 1  ;;  %v2533_v41 = vmax.f32 %v2531_v55, %v2532_v40  ;;  %v2551_v46 = vrot.slane %v2550_v57, 4  ;;  %v2367_v18 = vmul.f32 0.22916667, %v2309_v35  ;;  %3330 = vmatprep.mubr.msk.bf16.mxu0 %vm2395_vm2, %v2762_v4 }
 0x461   :  { %vm2659_vm10 = vcmask 1046534   ;;  %v2513_v19 = vrot.slane %v2512_v37, 1  ;;  %v2517_v22 = vmax.f32 %v2515_v11, %v2516_v42  ;;  %vm2346_vm4 = vcmp.ge.f32.partialorder %v2320_v34, 0.0  ;;  %3331 = vmatmul.mubr.msk.bf16.gmra.mrb[40].mxu0 %vm2395_vm2, %v2763_v25 }
 0x462   :  { %v2370_v33 = vmul.f32 0.22916667, %v2320_v34  ;;  %v2637_v26 = vunpack.c.l.b16 %v2576_v44  ;;  %v2577_v31 = vpack.c.bf16 %v2493_v2, %v2493_v2  ;;  %v2534_v9 = vrot.slane %v2533_v41, 1 }
 0x463   :  { %v2391_v39 = vsel %vm2343_vm9, %v2309_v35, %v2367_v18  ;;  %vm2661_vm3 = vcmask 1047559   ;;  %v2518_v45 = vrot.slane %v2517_v22, 2  ;;  %v2552_v7 = vmax.f32 %v2550_v57, %v2551_v46 }
 0x464   :  { %v2536_v48 = vsel %vm2395_vm2, %v2391_v39, -inf  ;;  %v2394_v32 = vsel %vm2346_vm4, %v2320_v34, %v2370_v33  ;;  %v2528_v47 = vmax.f32 %v2526_v1, %v2527_v12  ;;  %v2514_v59 = vmax.f32 %v2512_v37, %v2513_v19 }
 0x465   :  { %v2537_v51 = vrot.slane %v2536_v48, 4  ;;  %v2557_v50 = vsel %vm2395_vm2, %v2394_v32, -inf  ;;  %v2579_v60 = vpack.c.bf16 %v5233_v28, %v5233_v28  ;;  %v2519_v14 = vmax.f32 %v2517_v22, %v2518_v45 }
 0x466   :  { %v2558_v53 = vrot.slane %v2557_v50, 4  ;;  %v2765_v8 = vpack.c.bf16 %v2394_v32, %v5237_v30  ;;  %v2638_v16 = vunpack.c.l.b16 %v2577_v31  ;;  %v2535_v58 = vmax.f32 %v2533_v41, %v2534_v9 }
 0x467   :  { %v2538_v23 = vmax.f32 %v2536_v48, %v2537_v51  ;;  %v2312_v61 = vadd.f32 %v5116_v0, %v5190_v62  ;;  %v2520_v43 = vrot.slane %v2519_v14, 1  ;;  %v2553_v10 = vrot.slane %v2552_v7, 2 }
 0x468   :  { %v2559_v63 = vmax.f32 %v2557_v50, %v2558_v53  ;;  %v2654_v54 = vsel %vm2653_vm7, %v5155_v36, %v5143_v15  ;;  %v2582_v25 = vpack.c.bf16 %v2528_v47, %v2528_v47  ;;  %v2580_v44 = vpack.c.bf16 %v2514_v59, %v2514_v59 }
 0x469   :  { %v2539_v6 = vrot.slane %v2538_v23, 2  ;;  %vm2344_vm11 = vcmp.ge.f32.partialorder %v2312_v61, 0.0  ;;  %v2521_v27 = vmax.f32 %v2519_v14, %v2520_v43  ;;  %v2368_v21 = vmul.f32 0.22916667, %v2312_v61 }
 0x46a   :  { %v2560_v52 = vrot.slane %v2559_v63, 2  ;;  %v2656_v13 = vsel %vm2655_vm8, %v5212_v24, %v2654_v54  ;;  %v2583_v28 = vpack.c.bf16 %v2535_v58, %v2535_v58  ;;  %v2665_v62 = vsel %vm2653_vm7, %v5227_v17, %v5207_v56  ;;  %v5288_v58 = vld [vmem:[%s5406_s9] ss:$0 sm:$0xff] }
 0x46b   :  { %v2540_v1 = vmax.f32 %v2538_v23, %v2539_v6  ;;  %v2658_v0 = vsel %vm2657_vm0, %v5225_v3, %v2656_v13  ;;  %v2581_v15 = vpack.c.bf16 %v2521_v27, %v2521_v27  ;;  %v2554_v36 = vmax.f32 %v2552_v7, %v2553_v10 }
 0x46c   :  { %v2392_v55 = vsel %vm2344_vm11, %v2312_v61, %v2368_v21  ;;  %v2660_v35 = vsel %vm2659_vm10, %v5169_v38, %v2658_v0  ;;  %v2641_v49 = vunpack.c.l.b16 %v2580_v44  ;;  %v2561_v2 = vmax.f32 %v2559_v63, %v2560_v52 }
 0x46d   :  { %v2541_v20 = vrot.slane %v2540_v1, 1  ;;  %v2543_v30 = vsel %vm2395_vm2, %v2392_v55, -inf  ;;  %v2764_v24 = vpack.c.bf16 %v2392_v55, %v2391_v39  ;;  %v2642_v34 = vunpack.c.l.b16 %v2581_v15 }
 0x46e   :  { %v2544_v40 = vrot.slane %v2543_v30, 4  ;;  %v2662_v3 = vsel %vm2661_vm3, %v5218_v29, %v2660_v35  ;;  %v2640_v11 = vunpack.c.l.b16 %v2579_v60  ;;  %v2643_v4 = vunpack.c.l.b16 %v2582_v25 }
 0x46f   :  { %v2542_v56 = vmax.f32 %v2540_v1, %v2541_v20  ;;  %3334 = vmatprep.mubr.msk.bf16.mxu0 %vm2395_vm2, %v2764_v24  ;;  %v2666_v17 = vsel %vm2655_vm8, %v2637_v26, %v2665_v62  ;;  %v2644_v37 = vunpack.c.l.b16 %v2583_v28  ;;  %v2670_v38 = vsel %vm2649_vm13, %v2642_v34, %v2641_v49 }
 0x470   :  { %v2545_v42 = vmax.f32 %v2543_v30, %v2544_v40  ;;  %3335 = vmatmul.mubr.msk.bf16.gmra.mrb[44].mxu0 %vm2395_vm2, %v2765_v8  ;;  %v2667_v57 = vsel %vm2657_vm0, %v2638_v16, %v2666_v17  ;;  %v2671_v12 = vsel %vm2651_vm5, %v2643_v4, %v2670_v38  ;;  %v2555_v41 = vrot.slane %v2554_v36, 1 }
 0x471   :  { %v2584_v46 = vpack.c.bf16 %v2542_v56, %v2542_v56  ;;  %v2668_v29 = vsel %vm2659_vm10, %v5229_v5, %v2667_v57  ;;  %v2672_v18 = vsel %vm2653_vm7, %v2644_v37, %v2671_v12  ;;  %v2562_v19 = vrot.slane %v2561_v2, 1 }
 0x472   :  { %v2546_v22 = vrot.slane %v2545_v42, 2  ;;  %v2669_v33 = vsel %vm2661_vm3, %v2640_v11, %v2668_v29  ;;  %v2556_v39 = vmax.f32 %v2554_v36, %v2555_v41 }
 0x473   :  { %v2645_v26 = vunpack.c.l.b16 %v2584_v46  ;;  %v2677_v31 = vpack.c.b16 %v2669_v33, %v2662_v3  ;;  %v2563_v7 = vmax.f32 %v2561_v2, %v2562_v19 }
 0x474   :  { %v2547_v9 = vmax.f32 %v2545_v42, %v2546_v22  ;;  %v2586_v47 = vpack.c.bf16 %v2556_v39, %v2556_v39  ;;  %v3088_v39 = vld [vmem:[%s5408_s7] ss:$0 sm:$0xff] }
 0x475   :  { %v2673_v45 = vsel %vm2655_vm8, %v2645_v26, %v2672_v18  ;;  %3304 = vmatprep.mubr.msk.bf16.mxu1 %vm2395_vm2, %v2677_v31  ;;  %v2587_v59 = vpack.c.bf16 %v2563_v7, %v2563_v7 }
 0x476   :  { %v2548_v48 = vrot.slane %v2547_v9, 1  ;;  %v2647_v50 = vunpack.c.l.b16 %v2586_v47 }
 0x477   :  { %v2648_v60 = vunpack.c.l.b16 %v2587_v59 }
 0x478   :  { %v2549_v32 = vmax.f32 %v2547_v9, %v2548_v48 }
 0x47a   :  { %v2585_v5 = vpack.c.bf16 %v2549_v32, %v2549_v32 }
 0x47c   :  { %v2646_v51 = vunpack.c.l.b16 %v2585_v5 }
 0x47e   :  { %v2674_v14 = vsel %vm2657_vm0, %v2646_v51, %v2673_v45 }
 0x47f   :  { %v2675_v53 = vsel %vm2659_vm10, %v2647_v50, %v2674_v14 }
 0x480   :  { %v2676_v8 = vsel %vm2661_vm3, %v2648_v60, %v2675_v53 }
 0x481   :  { %v2678_v16 = vpack.c.b16 %v2676_v8, %v2676_v8 }
 0x483   :  { %3305 = vmatmul.mubr.msk.bf16.vlgmr.msra.gmra.mrb[48].mxu1 %vm2395_vm2, %v2678_v16 }
 0x4f8   :  { %v3316_v23 = vpop.f32.mrb[24].mxu0 }
 0x4f9   :  { %v2876_v61 = vadd.f32 %v3316_v23, %v5288_v58  ;;  %v2867_v43 = vpop.f32.mrb[25].mxu0 }
 0x4fa   :  { %v2868_v10 = vadd.f32 %v5288_v58, %v2867_v43  ;;  %v3317_v63 = vpop.f32.mrb[26].mxu0 }
 0x4fb   :  { %2964 = vst [vmem:[%s5407_s11 + $0x10] sm:$0xff] %v2876_v61  ;;  %v2879_v54 = vadd.f32 %v3317_v63, %v5288_v58  ;;  %v2870_v25 = vpop.f32.mrb[27].mxu0 }
 0x4fc   :  { %2962 = vst [vmem:[%s5407_s11] sm:$0xff] %v2868_v10  ;;  %v2871_v44 = vadd.f32 %v5288_v58, %v2870_v25 }
 0x4fd   :  { %2965 = vst [vmem:[%s5407_s11 + $0x18] sm:$0xff] %v2879_v54 }
 0x4fe   :  { %2963 = vst [vmem:[%s5407_s11 + $0x8] sm:$0xff] %v2871_v44 }
 0x50b   :  { %v3320_v6 = vpop.f32.mrb[28].mxu0 }
 0x50c   :  { %v2892_v27 = vadd.f32 %v3320_v6, %v5288_v58  ;;  %v2883_v52 = vpop.f32.mrb[29].mxu0 }
 0x50d   :  { %v2884_v21 = vadd.f32 %v5288_v58, %v2883_v52  ;;  %v3321_v13 = vpop.f32.mrb[30].mxu0 }
 0x50e   :  { %2968 = vst [vmem:[%s5407_s11 + $0x30] sm:$0xff] %v2892_v27  ;;  %v2895_v28 = vadd.f32 %v3321_v13, %v5288_v58  ;;  %v2886_v1 = vpop.f32.mrb[31].mxu0 }
 0x50f   :  { %2966 = vst [vmem:[%s5407_s11 + $0x20] sm:$0xff] %v2884_v21  ;;  %v2887_v0 = vadd.f32 %v5288_v58, %v2886_v1 }
 0x510   :  { %2969 = vst [vmem:[%s5407_s11 + $0x38] sm:$0xff] %v2895_v28 }
 0x511   :  { %2967 = vst [vmem:[%s5407_s11 + $0x28] sm:$0xff] %v2887_v0 }
 0x516   :  { %v3324_v62 = vpop.f32.mrb[32].mxu0 }
 0x517   :  { %v2908_v15 = vadd.f32 %v3324_v62, %v5288_v58  ;;  %v2899_v36 = vpop.f32.mrb[33].mxu0 }
 0x518   :  { %v2900_v55 = vadd.f32 %v5288_v58, %v2899_v36  ;;  %v3325_v35 = vpop.f32.mrb[34].mxu0 }
 0x519   :  { %2972 = vst [vmem:[%s5407_s11 + $0x50] sm:$0xff] %v2908_v15  ;;  %v2911_v49 = vadd.f32 %v3325_v35, %v5288_v58  ;;  %v2902_v20 = vpop.f32.mrb[35].mxu0 }
 0x51a   :  { %2970 = vst [vmem:[%s5407_s11 + $0x40] sm:$0xff] %v2900_v55  ;;  %v2903_v30 = vadd.f32 %v5288_v58, %v2902_v20 }
 0x51b   :  { %2973 = vst [vmem:[%s5407_s11 + $0x58] sm:$0xff] %v2911_v49 }
 0x51c   :  { %2971 = vst [vmem:[%s5407_s11 + $0x48] sm:$0xff] %v2903_v30 }
 0x523   :  { %v3328_v24 = vpop.f32.mrb[36].mxu0 }
 0x524   :  { %v2924_v34 = vadd.f32 %v3328_v24, %v5288_v58  ;;  %v2915_v2 = vpop.f32.mrb[37].mxu0 }
 0x525   :  { %v2916_v40 = vadd.f32 %v5288_v58, %v2915_v2  ;;  %v3329_v3 = vpop.f32.mrb[38].mxu0 }
 0x526   :  { %2976 = vst [vmem:[%s5407_s11 + $0x70] sm:$0xff] %v2924_v34  ;;  %v2927_v11 = vadd.f32 %v3329_v3, %v5288_v58  ;;  %v2918_v4 = vpop.f32.mrb[39].mxu0 }
 0x527   :  { %2974 = vst [vmem:[%s5407_s11 + $0x60] sm:$0xff] %v2916_v40  ;;  %v2919_v56 = vadd.f32 %v5288_v58, %v2918_v4 }
 0x528   :  { %2977 = vst [vmem:[%s5407_s11 + $0x78] sm:$0xff] %v2927_v11 }
 0x529   :  { %2975 = vst [vmem:[%s5407_s11 + $0x68] sm:$0xff] %v2919_v56 }
 0x534   :  { %v3332_v17 = vpop.f32.mrb[40].mxu0 }
 0x535   :  { %v2940_v37 = vadd.f32 %v3332_v17, %v5288_v58  ;;  %v2931_v38 = vpop.f32.mrb[41].mxu0 }
 0x536   :  { %v2932_v42 = vadd.f32 %v5288_v58, %v2931_v38  ;;  %v3333_v57 = vpop.f32.mrb[42].mxu0 }
 0x537   :  { %2980 = vst [vmem:[%s5407_s11 + $0x90] sm:$0xff] %v2940_v37  ;;  %v2943_v12 = vadd.f32 %v3333_v57, %v5288_v58  ;;  %v2934_v41 = vpop.f32.mrb[43].mxu0 }
 0x538   :  { %2978 = vst [vmem:[%s5407_s11 + $0x80] sm:$0xff] %v2932_v42  ;;  %v2935_v46 = vadd.f32 %v5288_v58, %v2934_v41 }
 0x539   :  { %2981 = vst [vmem:[%s5407_s11 + $0x98] sm:$0xff] %v2943_v12 }
 0x53a   :  { %2979 = vst [vmem:[%s5407_s11 + $0x88] sm:$0xff] %v2935_v46 }
 0x543   :  { %v3336_v29 = vpop.f32.mrb[44].mxu0 }
 0x544   :  { %v2956_v18 = vadd.f32 %v3336_v29, %v5288_v58  ;;  %v2947_v19 = vpop.f32.mrb[45].mxu0 }
 0x545   :  { %v2948_v22 = vadd.f32 %v5288_v58, %v2947_v19  ;;  %v3337_v33 = vpop.f32.mrb[46].mxu0 }
 0x546   :  { %2984 = vst [vmem:[%s5407_s11 + $0xb0] sm:$0xff] %v2956_v18  ;;  %v2959_v26 = vadd.f32 %v3337_v33, %v5288_v58  ;;  %v2950_v31 = vpop.f32.mrb[47].mxu0 }
 0x547   :  { %2982 = vst [vmem:[%s5407_s11 + $0xa0] sm:$0xff] %v2948_v22  ;;  %v2951_v9 = vadd.f32 %v5288_v58, %v2950_v31 }
 0x548   :  { %2985 = vst [vmem:[%s5407_s11 + $0xb8] sm:$0xff] %v2959_v26 }
 0x549   :  { %2983 = vst [vmem:[%s5407_s11 + $0xa8] sm:$0xff] %v2951_v9 }
 0x556   :  { %v3306_v45 = vpop.f32.mrb[48].mxu1 }
 0x557   :  { %v2746_v7 = vadd.f32 %v3306_v45, %v3088_v39  ;;  %v2737_v48 = vpop.f32.mrb[49].mxu1 }
 0x558   :  { %v2738_v32 = vadd.f32 %v3088_v39, %v2737_v48  ;;  %v3307_v47 = vpop.f32.mrb[50].mxu1 }
 0x559   :  { %2753 = vst [vmem:[%s5409_s10 + $0x10] sm:$0xff] %v2746_v7  ;;  %v2740_v59 = vpop.f32.mrb[51].mxu1 }
 0x55a   :  { %2751 = vst [vmem:[%s5409_s10] sm:$0xff] %v2738_v32  ;;  %v2741_v5 = vadd.f32 %v3088_v39, %v2740_v59 }
 0x55c   :  { %2752 = vst [vmem:[%s5409_s10 + $0x8] sm:$0xff] %v2741_v5 }

</bundles_post_ra>
